<compile_context>
chip_gen: v7x
topology: tpu7x:2x2x1
jax: 0.10.0
libtpu: 0.0.40
codegen_flags: <defaults>
</compile_context>

<pallas_src>
import functools
import math

import jax
import jax.numpy as jnp
from jax.experimental import pallas as pl
from jax.experimental.pallas import tpu as pltpu

LANE = 128
NEG_SLOPE = 0.2
_VMEM_BUDGET = 24 * 1024 * 1024  # conservative per-image working-set cap


def _round_up(n, m):
    return ((n + m - 1) // m) * m


def _leaky(x, slope):
    return jnp.where(x >= 0.0, x, slope * x)


# -----------------------------------------------------------------------------
# In-kernel building blocks
# -----------------------------------------------------------------------------
def _conv3x3_lrelu(a_pad, w9_ref, b_ref, *, height, width, slope):
    """3x3 / stride-1 / pad-1 conv + LeakyReLU on a padded-layout activation.

    a_pad : (H+2, Wpad, Cin) bf16; pixel (i, j) lives at a_pad[i+1, j+1]; every
            entry outside rows 1..H / cols 1..W is exactly zero (= conv padding).
    w9_ref: (9, Cin, Cout) bf16 resident weights, k = kh*3 + kw.
    Returns (H, W, Cout) f32, post-LeakyReLU.
    """
    hh, ww = height, width
    wpad, cin = a_pad.shape[1], a_pad.shape[2]
    cout = w9_ref.shape[2]

    accs = []
    for kw in range(3):
        acc = jnp.zeros((hh * wpad, cout), jnp.float32)
        for kh in range(3):
            # Leading-dim slice + tile-exact reshape (Wpad % 16 == 0): no copies.
            band = a_pad[kh:kh + hh].reshape(hh * wpad, cin)
            acc = acc + jnp.dot(band, w9_ref[kh * 3 + kw],
                                preferred_element_type=jnp.float32)
        accs.append(acc.reshape(hh, wpad, cout))

    # Re-align the three kw taps ONCE on the f32 result (3 narrow slices total,
    # instead of 9 relayout copies of the input inside the matmul loop).
    s = accs[0][:, 0:ww] + accs[1][:, 1:ww + 1] + accs[2][:, 2:ww + 2]
    return _leaky(s + b_ref[...], slope)


def _pad_act(y, wpad):
    """(H, W, C) f32 activation -> (H+2, Wpad, C) bf16 padded layout.

    Valid pixel (i, j) ends up at [i+1, j+1]; everything else is exactly zero,
    which is what the next conv layer's zero padding requires.
    """
    hh, ww, cc = y.shape
    mid = jnp.concatenate(
        [jnp.zeros((hh, 1, cc), jnp.float32), y,
         jnp.zeros((hh, wpad - 1 - ww, cc), jnp.float32)], axis=1)
    zrow = jnp.zeros((1, wpad, cc), jnp.float32)
    return jnp.concatenate([zrow, mid, zrow], axis=0).astype(jnp.bfloat16)


# -----------------------------------------------------------------------------
# Fused Pallas kernel: conv1 + conv2 + conv3 (+LeakyReLU) + avg-pool + FC
# -----------------------------------------------------------------------------
def _discriminator_kernel(x_ref, w1_ref, b1_ref, w2_ref, b2_ref,
                          w3_ref, b3_ref, wfc_ref, bfc_ref, o_ref,
                          *, height, width, slope):
    hh, ww = height, width
    wpad = x_ref.shape[2]
    c1 = w1_ref.shape[1]

    # ---- layer 1: WSConv2d(3 -> d) as ONE K=32 matmul (input pre-im2col'd) ----
    x = x_ref[0]                                            # (H, Wpad, 32) bf16
    y1 = jnp.dot(x.reshape(hh * wpad, x.shape[-1]), w1_ref[...],
                 preferred_element_type=jnp.float32)
    y1 = _leaky(y1.reshape(hh, wpad, c1) + b1_ref[...], slope)
    col = jax.lax.broadcasted_iota(jnp.int32, (1, wpad, 1), 1)
    y1 = jnp.where((col >= 1) & (col <= ww), y1, 0.0)       # restore conv zero border
    zrow = jnp.zeros((1, wpad, c1), jnp.float32)
    a1 = jnp.concatenate([zrow, y1, zrow], axis=0).astype(jnp.bfloat16)

    # ---- layer 2: WSConv2d(d -> 2d) + LeakyReLU (activations stay in VMEM) ----
    y2 = _conv3x3_lrelu(a1, w2_ref, b2_ref, height=hh, width=ww, slope=slope)
    a2 = _pad_act(y2, wpad)

    # ---- layer 3 + AdaptiveAvgPool2d(1) + Flatten + Linear ---------------------
    y3 = _conv3x3_lrelu(a2, w3_ref, b3_ref, height=hh, width=ww, slope=slope)
    pooled = jnp.sum(jnp.sum(y3, axis=0), axis=0, keepdims=True)      # (1, C3)
    score = jnp.sum(pooled * wfc_ref[...], axis=1, keepdims=True)     # (1, 1)
    o_ref[...] = (score * (1.0 / (hh * ww)) + bfc_ref[...]).reshape(1, 1, 1)


# -----------------------------------------------------------------------------
# One-time parameter preparation (hoisted out of the jitted forward)
# -----------------------------------------------------------------------------
def _prep_conv(w_oihw, b, *, cin_pad, cout_pad):
    """torch (O, I, 3, 3) conv weight -> (9, cin_pad, cout_pad) bf16, WS-scale folded."""
    o, i, kh, kw = w_oihw.shape
    scale = math.sqrt(2.0 / (i * kh * kw))                  # WSConv2d scale (real in_ch)
    w = jnp.transpose(w_oihw, (2, 3, 1, 0)).reshape(kh * kw, i, o) * scale
    w = jnp.pad(w, ((0, 0), (0, cin_pad - i), (0, cout_pad - o))).astype(jnp.bfloat16)
    bp = jnp.pad(b.astype(jnp.float32), (0, cout_pad - o)).reshape(1, cout_pad)
    return w, bp


def prepare_params(params):
    """One-time weight prep: scale-fold, channel-pad, bf16 cast, im2col layout."""
    d = params["b1"].shape[0]
    c1 = _round_up(d, LANE)
    c2 = _round_up(2 * d, LANE)
    c3 = _round_up(4 * d, LANE)       # naturally 256-wide for d >= 64 (v6e/v7x MXU)

    # Layer 1 as a single im2col matmul: rows ordered (kh, kw, cin), padded 27 -> 32.
    w1 = params["w1"]                 # (d, 3, 3, 3) = (O, I, kh, kw)
    scale1 = math.sqrt(2.0 / (w1.shape[1] * 9))
    w1m = jnp.transpose(w1, (2, 3, 1, 0)).reshape(27, w1.shape[0]) * scale1
    w1m = jnp.pad(w1m, ((0, 32 - 27), (0, c1 - w1.shape[0]))).astype(jnp.bfloat16)
    b1 = jnp.pad(params["b1"].astype(jnp.float32), (0, c1 - d)).reshape(1, c1)

    w2, b2 = _prep_conv(params["w2"], params["b2"], cin_pad=c1, cout_pad=c2)
    w3, b3 = _prep_conv(params["w3"], params["b3"], cin_pad=c2, cout_pad=c3)

    wfc = params["w_fc"].reshape(-1).astype(jnp.float32)
    wfc = jnp.pad(wfc, (0, c3 - wfc.shape[0])).reshape(1, c3)
    bfc = params["b_fc"].astype(jnp.float32).reshape(1, 1)
    return {"w1": w1m, "b1": b1, "w2": w2, "b2": b2, "w3": w3, "b3": b3,
            "wfc": wfc, "bfc": bfc}


# -----------------------------------------------------------------------------
# JAX glue
# -----------------------------------------------------------------------------
def _im2col_layer1(x_nhwc, wpad):
    """(B, H, W, 3) f32 -> (B, H, Wpad, 32) bf16 3x3 patches.

    Patch channel order is (kh, kw, cin) to match the layer-1 weight matrix; real
    data sits at columns 1..W so the matmul result is already in the padded layout.
    """
    b, h, w, c = x_nhwc.shape
    xp = jnp.pad(x_nhwc, ((0, 0), (1, 1), (1, 1), (0, 0)))
    taps = [xp[:, kh:kh + h, kw:kw + w, :]
            for kh in range(3) for kw in range(3)]
    patches = jnp.concatenate(taps, axis=-1)                # (B, H, W, 27)
    patches = jnp.pad(patches,
                      ((0, 0), (0, 0), (1, wpad - 1 - w), (0, 32 - 27)))
    return patches.astype(jnp.bfloat16)


@jax.jit
def discriminator_forward(x_nchw, prep):
    """x_nchw: (B, 3, H, W) f32  ->  (B,) f32 (matches Discriminator.forward)."""
    bsz, _, h, w = x_nchw.shape
    wpad = _round_up(w + 2, 16)   # 16: keeps bf16 (16,128)-tiled reshapes layout-exact

    c1 = prep["w1"].shape[1]
    c2 = prep["w2"].shape[2]
    c3 = prep["w3"].shape[2]

    # Per-image VMEM working-set guard (everything stays in VMEM in the fused kernel).
    est_bytes = (2 * h * wpad * 32 * 2                       # double-buffered input block
                 + 2 * (h + 2) * wpad * max(c1, c2) * 2      # padded bf16 activations
                 + 4 * h * wpad * max(c2, c3) * 4            # f32 kw-accumulators + epilogue
                 + (32 * c1 + 9 * c1 * c2 + 9 * c2 * c3) * 2)  # resident bf16 weights
    assert est_bytes < _VMEM_BUDGET, (
        f"fused discriminator kernel needs ~{est_bytes / 2**20:.1f} MiB VMEM per image; "
        "add a row-tiled variant for this resolution")

    x_cols = _im2col_layer1(jnp.transpose(x_nchw, (0, 2, 3, 1)), wpad)

    out = pl.pallas_call(
        functools.partial(_discriminator_kernel, height=h, width=w, slope=NEG_SLOPE),
        out_shape=jax.ShapeDtypeStruct((bsz, 1, 1), jnp.float32),
        grid=(bsz,),
        in_specs=[
            pl.BlockSpec((1, h, wpad, 32), lambda i: (i, 0, 0, 0)),   # streamed input
            pl.BlockSpec(prep["w1"].shape, lambda i: (0, 0)),         # resident weights
            pl.BlockSpec(prep["b1"].shape, lambda i: (0, 0)),
            pl.BlockSpec(prep["w2"].shape, lambda i: (0, 0, 0)),
            pl.BlockSpec(prep["b2"].shape, lambda i: (0, 0)),
            pl.BlockSpec(prep["w3"].shape, lambda i: (0, 0, 0)),
            pl.BlockSpec(prep["b3"].shape, lambda i: (0, 0)),
            pl.BlockSpec(prep["wfc"].shape, lambda i: (0, 0)),
            pl.BlockSpec(prep["bfc"].shape, lambda i: (0, 0)),
        ],
        out_specs=pl.BlockSpec((1, 1, 1), lambda i: (i, 0, 0)),
        compiler_params=pltpu.CompilerParams(
            dimension_semantics=("parallel",),     # batch across TCs (v7x megacore)
            vmem_limit_bytes=32 * 1024 * 1024),
    )(x_cols, prep["w1"], prep["b1"], prep["w2"], prep["b2"],
      prep["w3"], prep["b3"], prep["wfc"], prep["bfc"])
    return out[:, 0, 0]


# -----------------------------------------------------------------------------
# Reference + test harness
# -----------------------------------------------------------------------------
def init_params(key, d_channels):
    """Conv weights ~ N(0,1) (WSConv2d init), conv biases = 0; synthetic FC init."""
    d = d_channels
    k1, k2, k3, k4, k5 = jax.random.split(key, 5)
    return {
        "w1": jax.random.normal(k1, (d, 3, 3, 3), jnp.float32),
        "b1": jnp.zeros((d,), jnp.float32),
        "w2": jax.random.normal(k2, (2 * d, d, 3, 3), jnp.float32),
        "b2": jnp.zeros((2 * d,), jnp.float32),
        "w3": jax.random.normal(k3, (4 * d, 2 * d, 3, 3), jnp.float32),
        "b3": jnp.zeros((4 * d,), jnp.float32),
        "w_fc": 0.1 * jax.random.normal(k4, (4 * d, 1), jnp.float32),
        "b_fc": 0.1 * jax.random.normal(k5, (1,), jnp.float32),
    }


def reference_forward(x_nchw, params):
    """Pure-JAX f32 re-implementation of the PyTorch Discriminator forward."""
    def wsconv(x, w, b):
        scale = math.sqrt(2.0 / (w.shape[1] * w.shape[2] * w.shape[3]))
        y = jax.lax.conv_general_dilated(
            x * scale, w, window_strides=(1, 1), padding=((1, 1), (1, 1)),
            dimension_numbers=("NCHW", "OIHW", "NCHW"),
            precision=jax.lax.Precision.HIGHEST)
        return y + b.reshape(1, -1, 1, 1)

    h = _leaky(wsconv(x_nchw, params["w1"], params["b1"]), NEG_SLOPE)
    h = _leaky(wsconv(h, params["w2"], params["b2"]), NEG_SLOPE)
    h = _leaky(wsconv(h, params["w3"], params["b3"]), NEG_SLOPE)
    pooled = jnp.mean(h, axis=(2, 3))                                  # (B, 4d)
    out = jnp.dot(pooled, params["w_fc"],
                  precision=jax.lax.Precision.HIGHEST) + params["b_fc"]
    return out[:, 0]


if __name__ == "__main__":
    B, H, W = 2, 16, 16
    d_channels = 8                                                     # cfg.d_channels

    key = jax.random.PRNGKey(0)
    k_x, k_p = jax.random.split(key)
    x = jax.random.normal(k_x, (B, 3, H, W), jnp.float32)
    params = init_params(k_p, d_channels)

    prep = prepare_params(params)          # hoisted one-time weight preparation
    out = discriminator_forward(x, prep)
    out = jax.block_until_ready(out)

    assert out.shape == (B,) and out.dtype == jnp.float32
    assert bool(jnp.all(jnp.isfinite(out)))

    ref = reference_forward(x, params)
    err = float(jnp.max(jnp.abs(out - ref)))
    assert err < 5e-2, f"Pallas output mismatch vs reference: max|err|={err:.4f}"
    print("KERNEL_OK")
</pallas_src>

<mosaic_0001>
module attributes {stable_mosaic.version = 11 : i64} {
  func.func @_discriminator_kernel(%arg0: i32, %arg1: memref<1x16x32x32xbf16, #tpu.memory_space<vmem>>, %arg2: memref<32x128xbf16, #tpu.memory_space<vmem>>, %arg3: memref<1x128xf32, #tpu.memory_space<vmem>>, %arg4: memref<9x128x128xbf16, #tpu.memory_space<vmem>>, %arg5: memref<1x128xf32, #tpu.memory_space<vmem>>, %arg6: memref<9x128x128xbf16, #tpu.memory_space<vmem>>, %arg7: memref<1x128xf32, #tpu.memory_space<vmem>>, %arg8: memref<1x128xf32, #tpu.memory_space<vmem>>, %arg9: memref<1x1xf32, #tpu.memory_space<vmem>>, %arg10: memref<1x1x1xf32, #tpu.memory_space<vmem>>) attributes {dimension_semantics = [#tpu.dimension_semantics<parallel>], iteration_bounds = array<i64: 2>, scalar_prefetch = 0 : i64, scratch_operands = 0 : i64, tpu.core_type = #tpu.core_type<tc>, window_params = [{transform_indices = @transform_0, window_bounds = array<i64: 1, 16, 32, 32>}, {pipeline_mode = #tpu.pipeline_mode<synchronous>, transform_indices = @transform_1, window_bounds = array<i64: 32, 128>}, {pipeline_mode = #tpu.pipeline_mode<synchronous>, transform_indices = @transform_2, window_bounds = array<i64: 1, 128>}, {pipeline_mode = #tpu.pipeline_mode<synchronous>, transform_indices = @transform_3, window_bounds = array<i64: 9, 128, 128>}, {pipeline_mode = #tpu.pipeline_mode<synchronous>, transform_indices = @transform_4, window_bounds = array<i64: 1, 128>}, {pipeline_mode = #tpu.pipeline_mode<synchronous>, transform_indices = @transform_5, window_bounds = array<i64: 9, 128, 128>}, {pipeline_mode = #tpu.pipeline_mode<synchronous>, transform_indices = @transform_6, window_bounds = array<i64: 1, 128>}, {pipeline_mode = #tpu.pipeline_mode<synchronous>, transform_indices = @transform_7, window_bounds = array<i64: 1, 128>}, {pipeline_mode = #tpu.pipeline_mode<synchronous>, transform_indices = @transform_8, window_bounds = array<i64: 1, 1>}, {transform_indices = @transform_9, window_bounds = array<i64: 1, 1, 1>}]} {
    %c0 = arith.constant 0 : index
    %c0_0 = arith.constant 0 : index
    %c0_1 = arith.constant 0 : index
    %c0_2 = arith.constant 0 : index
    %0 = vector.load %arg1[%c0, %c0_0, %c0_1, %c0_2] : memref<1x16x32x32xbf16, #tpu.memory_space<vmem>>, vector<1x16x32x32xbf16>
    %1 = vector.shape_cast %0 : vector<1x16x32x32xbf16> to vector<16x32x32xbf16>
    %2 = vector.shape_cast %1 : vector<16x32x32xbf16> to vector<512x32xbf16>
    %c0_3 = arith.constant 0 : index
    %c0_4 = arith.constant 0 : index
    %3 = vector.load %arg2[%c0_3, %c0_4] : memref<32x128xbf16, #tpu.memory_space<vmem>>, vector<32x128xbf16>
    %cst = arith.constant dense<0.000000e+00> : vector<512x128xf32>
    %4 = tpu.matmul %2, %3, %cst {dimension_numbers = #tpu.dot_dimension_numbers<[1], [0], [0], [1], [0, 0, 1, 1], [], []>} : vector<512x32xbf16>, vector<32x128xbf16>, vector<512x128xf32> -> vector<512x128xf32>
    %5 = vector.shape_cast %4 : vector<512x128xf32> to vector<16x32x128xf32>
    %c0_5 = arith.constant 0 : index
    %c0_6 = arith.constant 0 : index
    %6 = vector.load %arg3[%c0_5, %c0_6] : memref<1x128xf32, #tpu.memory_space<vmem>>, vector<1x128xf32>
    %7 = vector.shape_cast %6 : vector<1x128xf32> to vector<1x1x128xf32>
    %8 = vector.broadcast %7 : vector<1x1x128xf32> to vector<16x32x128xf32>
    %9 = arith.addf %5, %8 : vector<16x32x128xf32>
    %cst_7 = arith.constant 0.000000e+00 : f32
    %10 = vector.broadcast %cst_7 : f32 to vector<16x32x128xf32>
    %11 = arith.cmpf oge, %9, %10 : vector<16x32x128xf32>
    %cst_8 = arith.constant 2.000000e-01 : f32
    %12 = vector.broadcast %cst_8 : f32 to vector<16x32x128xf32>
    %13 = arith.mulf %12, %9 : vector<16x32x128xf32>
    %14 = arith.select %11, %9, %13 : vector<16x32x128xi1>, vector<16x32x128xf32>
    %15 = tpu.iota {dimensions = array<i32: 1>} : vector<1x32x1xi32>
    %c1_i32 = arith.constant 1 : i32
    %16 = vector.broadcast %c1_i32 : i32 to vector<1x32x1xi32>
    %17 = arith.cmpi sge, %15, %16 : vector<1x32x1xi32>
    %c16_i32 = arith.constant 16 : i32
    %18 = vector.broadcast %c16_i32 : i32 to vector<1x32x1xi32>
    %19 = arith.cmpi sle, %15, %18 : vector<1x32x1xi32>
    %20 = arith.andi %17, %19 : vector<1x32x1xi1>
    %cst_9 = arith.constant 0.000000e+00 : f32
    %21 = vector.shape_cast %20 : vector<1x32x1xi1> to vector<1x32x1xi1>
    %22 = vector.broadcast %21 : vector<1x32x1xi1> to vector<16x32x128xi1>
    %23 = vector.broadcast %cst_9 : f32 to vector<16x32x128xf32>
    %24 = arith.select %22, %14, %23 : vector<16x32x128xi1>, vector<16x32x128xf32>
    %cst_10 = arith.constant 0.000000e+00 : f32
    %25 = vector.broadcast %cst_10 : f32 to vector<1x32x128xf32>
    %26 = tpu.concatenate %25, %24, %25 in 0 : vector<1x32x128xf32>, vector<16x32x128xf32>, vector<1x32x128xf32> -> vector<18x32x128xf32>
    %27 = arith.truncf %26 : vector<18x32x128xf32> to vector<18x32x128xbf16>
    %cst_11 = arith.constant 0.000000e+00 : f32
    %28 = vector.broadcast %cst_11 : f32 to vector<512x128xf32>
    %29 = vector.extract_strided_slice %27 {offsets = [0, 0, 0], sizes = [16, 32, 128], strides = [1, 1, 1]} : vector<18x32x128xbf16> to vector<16x32x128xbf16>
    %30 = vector.shape_cast %29 : vector<16x32x128xbf16> to vector<512x128xbf16>
    %c0_12 = arith.constant 0 : index
    %c0_13 = arith.constant 0 : index
    %c0_14 = arith.constant 0 : index
    %31 = vector.load %arg4[%c0_12, %c0_13, %c0_14] : memref<9x128x128xbf16, #tpu.memory_space<vmem>>, vector<1x128x128xbf16>
    %32 = vector.shape_cast %31 : vector<1x128x128xbf16> to vector<128x128xbf16>
    %cst_15 = arith.constant dense<0.000000e+00> : vector<512x128xf32>
    %33 = tpu.matmul %30, %32, %cst_15 {dimension_numbers = #tpu.dot_dimension_numbers<[1], [0], [0], [1], [0, 0, 1, 1], [], []>} : vector<512x128xbf16>, vector<128x128xbf16>, vector<512x128xf32> -> vector<512x128xf32>
    %34 = arith.addf %28, %33 : vector<512x128xf32>
    %35 = vector.extract_strided_slice %27 {offsets = [1, 0, 0], sizes = [16, 32, 128], strides = [1, 1, 1]} : vector<18x32x128xbf16> to vector<16x32x128xbf16>
    %36 = vector.shape_cast %35 : vector<16x32x128xbf16> to vector<512x128xbf16>
    %c3 = arith.constant 3 : index
    %c0_16 = arith.constant 0 : index
    %c0_17 = arith.constant 0 : index
    %37 = vector.load %arg4[%c3, %c0_16, %c0_17] : memref<9x128x128xbf16, #tpu.memory_space<vmem>>, vector<1x128x128xbf16>
    %38 = vector.shape_cast %37 : vector<1x128x128xbf16> to vector<128x128xbf16>
    %cst_18 = arith.constant dense<0.000000e+00> : vector<512x128xf32>
    %39 = tpu.matmul %36, %38, %cst_18 {dimension_numbers = #tpu.dot_dimension_numbers<[1], [0], [0], [1], [0, 0, 1, 1], [], []>} : vector<512x128xbf16>, vector<128x128xbf16>, vector<512x128xf32> -> vector<512x128xf32>
    %40 = arith.addf %34, %39 : vector<512x128xf32>
    %41 = vector.extract_strided_slice %27 {offsets = [2, 0, 0], sizes = [16, 32, 128], strides = [1, 1, 1]} : vector<18x32x128xbf16> to vector<16x32x128xbf16>
    %42 = vector.shape_cast %41 : vector<16x32x128xbf16> to vector<512x128xbf16>
    %c6 = arith.constant 6 : index
    %c0_19 = arith.constant 0 : index
    %c0_20 = arith.constant 0 : index
    %43 = vector.load %arg4[%c6, %c0_19, %c0_20] : memref<9x128x128xbf16, #tpu.memory_space<vmem>>, vector<1x128x128xbf16>
    %44 = vector.shape_cast %43 : vector<1x128x128xbf16> to vector<128x128xbf16>
    %cst_21 = arith.constant dense<0.000000e+00> : vector<512x128xf32>
    %45 = tpu.matmul %42, %44, %cst_21 {dimension_numbers = #tpu.dot_dimension_numbers<[1], [0], [0], [1], [0, 0, 1, 1], [], []>} : vector<512x128xbf16>, vector<128x128xbf16>, vector<512x128xf32> -> vector<512x128xf32>
    %46 = arith.addf %40, %45 : vector<512x128xf32>
    %47 = vector.shape_cast %46 : vector<512x128xf32> to vector<16x32x128xf32>
    %cst_22 = arith.constant 0.000000e+00 : f32
    %48 = vector.broadcast %cst_22 : f32 to vector<512x128xf32>
    %49 = vector.extract_strided_slice %27 {offsets = [0, 0, 0], sizes = [16, 32, 128], strides = [1, 1, 1]} : vector<18x32x128xbf16> to vector<16x32x128xbf16>
    %50 = vector.shape_cast %49 : vector<16x32x128xbf16> to vector<512x128xbf16>
    %c1 = arith.constant 1 : index
    %c0_23 = arith.constant 0 : index
    %c0_24 = arith.constant 0 : index
    %51 = vector.load %arg4[%c1, %c0_23, %c0_24] : memref<9x128x128xbf16, #tpu.memory_space<vmem>>, vector<1x128x128xbf16>
    %52 = vector.shape_cast %51 : vector<1x128x128xbf16> to vector<128x128xbf16>
    %cst_25 = arith.constant dense<0.000000e+00> : vector<512x128xf32>
    %53 = tpu.matmul %50, %52, %cst_25 {dimension_numbers = #tpu.dot_dimension_numbers<[1], [0], [0], [1], [0, 0, 1, 1], [], []>} : vector<512x128xbf16>, vector<128x128xbf16>, vector<512x128xf32> -> vector<512x128xf32>
    %54 = arith.addf %48, %53 : vector<512x128xf32>
    %55 = vector.extract_strided_slice %27 {offsets = [1, 0, 0], sizes = [16, 32, 128], strides = [1, 1, 1]} : vector<18x32x128xbf16> to vector<16x32x128xbf16>
    %56 = vector.shape_cast %55 : vector<16x32x128xbf16> to vector<512x128xbf16>
    %c4 = arith.constant 4 : index
    %c0_26 = arith.constant 0 : index
    %c0_27 = arith.constant 0 : index
    %57 = vector.load %arg4[%c4, %c0_26, %c0_27] : memref<9x128x128xbf16, #tpu.memory_space<vmem>>, vector<1x128x128xbf16>
    %58 = vector.shape_cast %57 : vector<1x128x128xbf16> to vector<128x128xbf16>
    %cst_28 = arith.constant dense<0.000000e+00> : vector<512x128xf32>
    %59 = tpu.matmul %56, %58, %cst_28 {dimension_numbers = #tpu.dot_dimension_numbers<[1], [0], [0], [1], [0, 0, 1, 1], [], []>} : vector<512x128xbf16>, vector<128x128xbf16>, vector<512x128xf32> -> vector<512x128xf32>
    %60 = arith.addf %54, %59 : vector<512x128xf32>
    %61 = vector.extract_strided_slice %27 {offsets = [2, 0, 0], sizes = [16, 32, 128], strides = [1, 1, 1]} : vector<18x32x128xbf16> to vector<16x32x128xbf16>
    %62 = vector.shape_cast %61 : vector<16x32x128xbf16> to vector<512x128xbf16>
    %c7 = arith.constant 7 : index
    %c0_29 = arith.constant 0 : index
    %c0_30 = arith.constant 0 : index
    %63 = vector.load %arg4[%c7, %c0_29, %c0_30] : memref<9x128x128xbf16, #tpu.memory_space<vmem>>, vector<1x128x128xbf16>
    %64 = vector.shape_cast %63 : vector<1x128x128xbf16> to vector<128x128xbf16>
    %cst_31 = arith.constant dense<0.000000e+00> : vector<512x128xf32>
    %65 = tpu.matmul %62, %64, %cst_31 {dimension_numbers = #tpu.dot_dimension_numbers<[1], [0], [0], [1], [0, 0, 1, 1], [], []>} : vector<512x128xbf16>, vector<128x128xbf16>, vector<512x128xf32> -> vector<512x128xf32>
    %66 = arith.addf %60, %65 : vector<512x128xf32>
    %67 = vector.shape_cast %66 : vector<512x128xf32> to vector<16x32x128xf32>
    %cst_32 = arith.constant 0.000000e+00 : f32
    %68 = vector.broadcast %cst_32 : f32 to vector<512x128xf32>
    %69 = vector.extract_strided_slice %27 {offsets = [0, 0, 0], sizes = [16, 32, 128], strides = [1, 1, 1]} : vector<18x32x128xbf16> to vector<16x32x128xbf16>
    %70 = vector.shape_cast %69 : vector<16x32x128xbf16> to vector<512x128xbf16>
    %c2 = arith.constant 2 : index
    %c0_33 = arith.constant 0 : index
    %c0_34 = arith.constant 0 : index
    %71 = vector.load %arg4[%c2, %c0_33, %c0_34] : memref<9x128x128xbf16, #tpu.memory_space<vmem>>, vector<1x128x128xbf16>
    %72 = vector.shape_cast %71 : vector<1x128x128xbf16> to vector<128x128xbf16>
    %cst_35 = arith.constant dense<0.000000e+00> : vector<512x128xf32>
    %73 = tpu.matmul %70, %72, %cst_35 {dimension_numbers = #tpu.dot_dimension_numbers<[1], [0], [0], [1], [0, 0, 1, 1], [], []>} : vector<512x128xbf16>, vector<128x128xbf16>, vector<512x128xf32> -> vector<512x128xf32>
    %74 = arith.addf %68, %73 : vector<512x128xf32>
    %75 = vector.extract_strided_slice %27 {offsets = [1, 0, 0], sizes = [16, 32, 128], strides = [1, 1, 1]} : vector<18x32x128xbf16> to vector<16x32x128xbf16>
    %76 = vector.shape_cast %75 : vector<16x32x128xbf16> to vector<512x128xbf16>
    %c5 = arith.constant 5 : index
    %c0_36 = arith.constant 0 : index
    %c0_37 = arith.constant 0 : index
    %77 = vector.load %arg4[%c5, %c0_36, %c0_37] : memref<9x128x128xbf16, #tpu.memory_space<vmem>>, vector<1x128x128xbf16>
    %78 = vector.shape_cast %77 : vector<1x128x128xbf16> to vector<128x128xbf16>
    %cst_38 = arith.constant dense<0.000000e+00> : vector<512x128xf32>
    %79 = tpu.matmul %76, %78, %cst_38 {dimension_numbers = #tpu.dot_dimension_numbers<[1], [0], [0], [1], [0, 0, 1, 1], [], []>} : vector<512x128xbf16>, vector<128x128xbf16>, vector<512x128xf32> -> vector<512x128xf32>
    %80 = arith.addf %74, %79 : vector<512x128xf32>
    %81 = vector.extract_strided_slice %27 {offsets = [2, 0, 0], sizes = [16, 32, 128], strides = [1, 1, 1]} : vector<18x32x128xbf16> to vector<16x32x128xbf16>
    %82 = vector.shape_cast %81 : vector<16x32x128xbf16> to vector<512x128xbf16>
    %c8 = arith.constant 8 : index
    %c0_39 = arith.constant 0 : index
    %c0_40 = arith.constant 0 : index
    %83 = vector.load %arg4[%c8, %c0_39, %c0_40] : memref<9x128x128xbf16, #tpu.memory_space<vmem>>, vector<1x128x128xbf16>
    %84 = vector.shape_cast %83 : vector<1x128x128xbf16> to vector<128x128xbf16>
    %cst_41 = arith.constant dense<0.000000e+00> : vector<512x128xf32>
    %85 = tpu.matmul %82, %84, %cst_41 {dimension_numbers = #tpu.dot_dimension_numbers<[1], [0], [0], [1], [0, 0, 1, 1], [], []>} : vector<512x128xbf16>, vector<128x128xbf16>, vector<512x128xf32> -> vector<512x128xf32>
    %86 = arith.addf %80, %85 : vector<512x128xf32>
    %87 = vector.shape_cast %86 : vector<512x128xf32> to vector<16x32x128xf32>
    %88 = vector.extract_strided_slice %47 {offsets = [0, 0, 0], sizes = [16, 16, 128], strides = [1, 1, 1]} : vector<16x32x128xf32> to vector<16x16x128xf32>
    %89 = vector.extract_strided_slice %67 {offsets = [0, 1, 0], sizes = [16, 16, 128], strides = [1, 1, 1]} : vector<16x32x128xf32> to vector<16x16x128xf32>
    %90 = arith.addf %88, %89 : vector<16x16x128xf32>
    %91 = vector.extract_strided_slice %87 {offsets = [0, 2, 0], sizes = [16, 16, 128], strides = [1, 1, 1]} : vector<16x32x128xf32> to vector<16x16x128xf32>
    %92 = arith.addf %90, %91 : vector<16x16x128xf32>
    %c0_42 = arith.constant 0 : index
    %c0_43 = arith.constant 0 : index
    %93 = vector.load %arg5[%c0_42, %c0_43] : memref<1x128xf32, #tpu.memory_space<vmem>>, vector<1x128xf32>
    %94 = vector.shape_cast %93 : vector<1x128xf32> to vector<1x1x128xf32>
    %95 = vector.broadcast %94 : vector<1x1x128xf32> to vector<16x16x128xf32>
    %96 = arith.addf %92, %95 : vector<16x16x128xf32>
    %cst_44 = arith.constant 0.000000e+00 : f32
    %97 = vector.broadcast %cst_44 : f32 to vector<16x16x128xf32>
    %98 = arith.cmpf oge, %96, %97 : vector<16x16x128xf32>
    %cst_45 = arith.constant 2.000000e-01 : f32
    %99 = vector.broadcast %cst_45 : f32 to vector<16x16x128xf32>
    %100 = arith.mulf %99, %96 : vector<16x16x128xf32>
    %101 = arith.select %98, %96, %100 : vector<16x16x128xi1>, vector<16x16x128xf32>
    %cst_46 = arith.constant 0.000000e+00 : f32
    %102 = vector.broadcast %cst_46 : f32 to vector<16x1x128xf32>
    %cst_47 = arith.constant 0.000000e+00 : f32
    %103 = vector.broadcast %cst_47 : f32 to vector<16x15x128xf32>
    %104 = tpu.concatenate %102, %101, %103 in 1 : vector<16x1x128xf32>, vector<16x16x128xf32>, vector<16x15x128xf32> -> vector<16x32x128xf32>
    %cst_48 = arith.constant 0.000000e+00 : f32
    %105 = vector.broadcast %cst_48 : f32 to vector<1x32x128xf32>
    %106 = tpu.concatenate %105, %104, %105 in 0 : vector<1x32x128xf32>, vector<16x32x128xf32>, vector<1x32x128xf32> -> vector<18x32x128xf32>
    %107 = arith.truncf %106 : vector<18x32x128xf32> to vector<18x32x128xbf16>
    %cst_49 = arith.constant 0.000000e+00 : f32
    %108 = vector.broadcast %cst_49 : f32 to vector<512x128xf32>
    %109 = vector.extract_strided_slice %107 {offsets = [0, 0, 0], sizes = [16, 32, 128], strides = [1, 1, 1]} : vector<18x32x128xbf16> to vector<16x32x128xbf16>
    %110 = vector.shape_cast %109 : vector<16x32x128xbf16> to vector<512x128xbf16>
    %c0_50 = arith.constant 0 : index
    %c0_51 = arith.constant 0 : index
    %c0_52 = arith.constant 0 : index
    %111 = vector.load %arg6[%c0_50, %c0_51, %c0_52] : memref<9x128x128xbf16, #tpu.memory_space<vmem>>, vector<1x128x128xbf16>
    %112 = vector.shape_cast %111 : vector<1x128x128xbf16> to vector<128x128xbf16>
    %cst_53 = arith.constant dense<0.000000e+00> : vector<512x128xf32>
    %113 = tpu.matmul %110, %112, %cst_53 {dimension_numbers = #tpu.dot_dimension_numbers<[1], [0], [0], [1], [0, 0, 1, 1], [], []>} : vector<512x128xbf16>, vector<128x128xbf16>, vector<512x128xf32> -> vector<512x128xf32>
    %114 = arith.addf %108, %113 : vector<512x128xf32>
    %115 = vector.extract_strided_slice %107 {offsets = [1, 0, 0], sizes = [16, 32, 128], strides = [1, 1, 1]} : vector<18x32x128xbf16> to vector<16x32x128xbf16>
    %116 = vector.shape_cast %115 : vector<16x32x128xbf16> to vector<512x128xbf16>
    %c3_54 = arith.constant 3 : index
    %c0_55 = arith.constant 0 : index
    %c0_56 = arith.constant 0 : index
    %117 = vector.load %arg6[%c3_54, %c0_55, %c0_56] : memref<9x128x128xbf16, #tpu.memory_space<vmem>>, vector<1x128x128xbf16>
    %118 = vector.shape_cast %117 : vector<1x128x128xbf16> to vector<128x128xbf16>
    %cst_57 = arith.constant dense<0.000000e+00> : vector<512x128xf32>
    %119 = tpu.matmul %116, %118, %cst_57 {dimension_numbers = #tpu.dot_dimension_numbers<[1], [0], [0], [1], [0, 0, 1, 1], [], []>} : vector<512x128xbf16>, vector<128x128xbf16>, vector<512x128xf32> -> vector<512x128xf32>
    %120 = arith.addf %114, %119 : vector<512x128xf32>
    %121 = vector.extract_strided_slice %107 {offsets = [2, 0, 0], sizes = [16, 32, 128], strides = [1, 1, 1]} : vector<18x32x128xbf16> to vector<16x32x128xbf16>
    %122 = vector.shape_cast %121 : vector<16x32x128xbf16> to vector<512x128xbf16>
    %c6_58 = arith.constant 6 : index
    %c0_59 = arith.constant 0 : index
    %c0_60 = arith.constant 0 : index
    %123 = vector.load %arg6[%c6_58, %c0_59, %c0_60] : memref<9x128x128xbf16, #tpu.memory_space<vmem>>, vector<1x128x128xbf16>
    %124 = vector.shape_cast %123 : vector<1x128x128xbf16> to vector<128x128xbf16>
    %cst_61 = arith.constant dense<0.000000e+00> : vector<512x128xf32>
    %125 = tpu.matmul %122, %124, %cst_61 {dimension_numbers = #tpu.dot_dimension_numbers<[1], [0], [0], [1], [0, 0, 1, 1], [], []>} : vector<512x128xbf16>, vector<128x128xbf16>, vector<512x128xf32> -> vector<512x128xf32>
    %126 = arith.addf %120, %125 : vector<512x128xf32>
    %127 = vector.shape_cast %126 : vector<512x128xf32> to vector<16x32x128xf32>
    %cst_62 = arith.constant 0.000000e+00 : f32
    %128 = vector.broadcast %cst_62 : f32 to vector<512x128xf32>
    %129 = vector.extract_strided_slice %107 {offsets = [0, 0, 0], sizes = [16, 32, 128], strides = [1, 1, 1]} : vector<18x32x128xbf16> to vector<16x32x128xbf16>
    %130 = vector.shape_cast %129 : vector<16x32x128xbf16> to vector<512x128xbf16>
    %c1_63 = arith.constant 1 : index
    %c0_64 = arith.constant 0 : index
    %c0_65 = arith.constant 0 : index
    %131 = vector.load %arg6[%c1_63, %c0_64, %c0_65] : memref<9x128x128xbf16, #tpu.memory_space<vmem>>, vector<1x128x128xbf16>
    %132 = vector.shape_cast %131 : vector<1x128x128xbf16> to vector<128x128xbf16>
    %cst_66 = arith.constant dense<0.000000e+00> : vector<512x128xf32>
    %133 = tpu.matmul %130, %132, %cst_66 {dimension_numbers = #tpu.dot_dimension_numbers<[1], [0], [0], [1], [0, 0, 1, 1], [], []>} : vector<512x128xbf16>, vector<128x128xbf16>, vector<512x128xf32> -> vector<512x128xf32>
    %134 = arith.addf %128, %133 : vector<512x128xf32>
    %135 = vector.extract_strided_slice %107 {offsets = [1, 0, 0], sizes = [16, 32, 128], strides = [1, 1, 1]} : vector<18x32x128xbf16> to vector<16x32x128xbf16>
    %136 = vector.shape_cast %135 : vector<16x32x128xbf16> to vector<512x128xbf16>
    %c4_67 = arith.constant 4 : index
    %c0_68 = arith.constant 0 : index
    %c0_69 = arith.constant 0 : index
    %137 = vector.load %arg6[%c4_67, %c0_68, %c0_69] : memref<9x128x128xbf16, #tpu.memory_space<vmem>>, vector<1x128x128xbf16>
    %138 = vector.shape_cast %137 : vector<1x128x128xbf16> to vector<128x128xbf16>
    %cst_70 = arith.constant dense<0.000000e+00> : vector<512x128xf32>
    %139 = tpu.matmul %136, %138, %cst_70 {dimension_numbers = #tpu.dot_dimension_numbers<[1], [0], [0], [1], [0, 0, 1, 1], [], []>} : vector<512x128xbf16>, vector<128x128xbf16>, vector<512x128xf32> -> vector<512x128xf32>
    %140 = arith.addf %134, %139 : vector<512x128xf32>
    %141 = vector.extract_strided_slice %107 {offsets = [2, 0, 0], sizes = [16, 32, 128], strides = [1, 1, 1]} : vector<18x32x128xbf16> to vector<16x32x128xbf16>
    %142 = vector.shape_cast %141 : vector<16x32x128xbf16> to vector<512x128xbf16>
    %c7_71 = arith.constant 7 : index
    %c0_72 = arith.constant 0 : index
    %c0_73 = arith.constant 0 : index
    %143 = vector.load %arg6[%c7_71, %c0_72, %c0_73] : memref<9x128x128xbf16, #tpu.memory_space<vmem>>, vector<1x128x128xbf16>
    %144 = vector.shape_cast %143 : vector<1x128x128xbf16> to vector<128x128xbf16>
    %cst_74 = arith.constant dense<0.000000e+00> : vector<512x128xf32>
    %145 = tpu.matmul %142, %144, %cst_74 {dimension_numbers = #tpu.dot_dimension_numbers<[1], [0], [0], [1], [0, 0, 1, 1], [], []>} : vector<512x128xbf16>, vector<128x128xbf16>, vector<512x128xf32> -> vector<512x128xf32>
    %146 = arith.addf %140, %145 : vector<512x128xf32>
    %147 = vector.shape_cast %146 : vector<512x128xf32> to vector<16x32x128xf32>
    %cst_75 = arith.constant 0.000000e+00 : f32
    %148 = vector.broadcast %cst_75 : f32 to vector<512x128xf32>
    %149 = vector.extract_strided_slice %107 {offsets = [0, 0, 0], sizes = [16, 32, 128], strides = [1, 1, 1]} : vector<18x32x128xbf16> to vector<16x32x128xbf16>
    %150 = vector.shape_cast %149 : vector<16x32x128xbf16> to vector<512x128xbf16>
    %c2_76 = arith.constant 2 : index
    %c0_77 = arith.constant 0 : index
    %c0_78 = arith.constant 0 : index
    %151 = vector.load %arg6[%c2_76, %c0_77, %c0_78] : memref<9x128x128xbf16, #tpu.memory_space<vmem>>, vector<1x128x128xbf16>
    %152 = vector.shape_cast %151 : vector<1x128x128xbf16> to vector<128x128xbf16>
    %cst_79 = arith.constant dense<0.000000e+00> : vector<512x128xf32>
    %153 = tpu.matmul %150, %152, %cst_79 {dimension_numbers = #tpu.dot_dimension_numbers<[1], [0], [0], [1], [0, 0, 1, 1], [], []>} : vector<512x128xbf16>, vector<128x128xbf16>, vector<512x128xf32> -> vector<512x128xf32>
    %154 = arith.addf %148, %153 : vector<512x128xf32>
    %155 = vector.extract_strided_slice %107 {offsets = [1, 0, 0], sizes = [16, 32, 128], strides = [1, 1, 1]} : vector<18x32x128xbf16> to vector<16x32x128xbf16>
    %156 = vector.shape_cast %155 : vector<16x32x128xbf16> to vector<512x128xbf16>
    %c5_80 = arith.constant 5 : index
    %c0_81 = arith.constant 0 : index
    %c0_82 = arith.constant 0 : index
    %157 = vector.load %arg6[%c5_80, %c0_81, %c0_82] : memref<9x128x128xbf16, #tpu.memory_space<vmem>>, vector<1x128x128xbf16>
    %158 = vector.shape_cast %157 : vector<1x128x128xbf16> to vector<128x128xbf16>
    %cst_83 = arith.constant dense<0.000000e+00> : vector<512x128xf32>
    %159 = tpu.matmul %156, %158, %cst_83 {dimension_numbers = #tpu.dot_dimension_numbers<[1], [0], [0], [1], [0, 0, 1, 1], [], []>} : vector<512x128xbf16>, vector<128x128xbf16>, vector<512x128xf32> -> vector<512x128xf32>
    %160 = arith.addf %154, %159 : vector<512x128xf32>
    %161 = vector.extract_strided_slice %107 {offsets = [2, 0, 0], sizes = [16, 32, 128], strides = [1, 1, 1]} : vector<18x32x128xbf16> to vector<16x32x128xbf16>
    %162 = vector.shape_cast %161 : vector<16x32x128xbf16> to vector<512x128xbf16>
    %c8_84 = arith.constant 8 : index
    %c0_85 = arith.constant 0 : index
    %c0_86 = arith.constant 0 : index
    %163 = vector.load %arg6[%c8_84, %c0_85, %c0_86] : memref<9x128x128xbf16, #tpu.memory_space<vmem>>, vector<1x128x128xbf16>
    %164 = vector.shape_cast %163 : vector<1x128x128xbf16> to vector<128x128xbf16>
    %cst_87 = arith.constant dense<0.000000e+00> : vector<512x128xf32>
    %165 = tpu.matmul %162, %164, %cst_87 {dimension_numbers = #tpu.dot_dimension_numbers<[1], [0], [0], [1], [0, 0, 1, 1], [], []>} : vector<512x128xbf16>, vector<128x128xbf16>, vector<512x128xf32> -> vector<512x128xf32>
    %166 = arith.addf %160, %165 : vector<512x128xf32>
    %167 = vector.shape_cast %166 : vector<512x128xf32> to vector<16x32x128xf32>
    %168 = vector.extract_strided_slice %127 {offsets = [0, 0, 0], sizes = [16, 16, 128], strides = [1, 1, 1]} : vector<16x32x128xf32> to vector<16x16x128xf32>
    %169 = vector.extract_strided_slice %147 {offsets = [0, 1, 0], sizes = [16, 16, 128], strides = [1, 1, 1]} : vector<16x32x128xf32> to vector<16x16x128xf32>
    %170 = arith.addf %168, %169 : vector<16x16x128xf32>
    %171 = vector.extract_strided_slice %167 {offsets = [0, 2, 0], sizes = [16, 16, 128], strides = [1, 1, 1]} : vector<16x32x128xf32> to vector<16x16x128xf32>
    %172 = arith.addf %170, %171 : vector<16x16x128xf32>
    %c0_88 = arith.constant 0 : index
    %c0_89 = arith.constant 0 : index
    %173 = vector.load %arg7[%c0_88, %c0_89] : memref<1x128xf32, #tpu.memory_space<vmem>>, vector<1x128xf32>
    %174 = vector.shape_cast %173 : vector<1x128xf32> to vector<1x1x128xf32>
    %175 = vector.broadcast %174 : vector<1x1x128xf32> to vector<16x16x128xf32>
    %176 = arith.addf %172, %175 : vector<16x16x128xf32>
    %cst_90 = arith.constant 0.000000e+00 : f32
    %177 = vector.broadcast %cst_90 : f32 to vector<16x16x128xf32>
    %178 = arith.cmpf oge, %176, %177 : vector<16x16x128xf32>
    %cst_91 = arith.constant 2.000000e-01 : f32
    %179 = vector.broadcast %cst_91 : f32 to vector<16x16x128xf32>
    %180 = arith.mulf %179, %176 : vector<16x16x128xf32>
    %181 = arith.select %178, %176, %180 : vector<16x16x128xi1>, vector<16x16x128xf32>
    %cst_92 = arith.constant dense<0.000000e+00> : vector<16x128xf32>
    %182 = vector.multi_reduction <add>, %181, %cst_92 [0] : vector<16x16x128xf32> to vector<16x128xf32>
    %cst_93 = arith.constant dense<0.000000e+00> : vector<128xf32>
    %183 = vector.multi_reduction <add>, %182, %cst_93 [0] : vector<16x128xf32> to vector<128xf32>
    %184 = vector.shape_cast %183 : vector<128xf32> to vector<1x128xf32>
    %c0_94 = arith.constant 0 : index
    %c0_95 = arith.constant 0 : index
    %185 = vector.load %arg8[%c0_94, %c0_95] : memref<1x128xf32, #tpu.memory_space<vmem>>, vector<1x128xf32>
    %186 = arith.mulf %184, %185 : vector<1x128xf32>
    %cst_96 = arith.constant dense<0.000000e+00> : vector<1xf32>
    %187 = vector.multi_reduction <add>, %186, %cst_96 [1] : vector<1x128xf32> to vector<1xf32>
    %188 = vector.shape_cast %187 : vector<1xf32> to vector<1x1xf32>
    %cst_97 = arith.constant 3.906250e-03 : f32
    %189 = vector.broadcast %cst_97 : f32 to vector<1x1xf32>
    %190 = arith.mulf %188, %189 : vector<1x1xf32>
    %c0_98 = arith.constant 0 : index
    %c0_99 = arith.constant 0 : index
    %191 = vector.load %arg9[%c0_98, %c0_99] : memref<1x1xf32, #tpu.memory_space<vmem>>, vector<1x1xf32>
    %192 = arith.addf %190, %191 : vector<1x1xf32>
    %193 = vector.shape_cast %192 : vector<1x1xf32> to vector<1x1x1xf32>
    %c0_100 = arith.constant 0 : index
    %c0_101 = arith.constant 0 : index
    %c0_102 = arith.constant 0 : index
    %194 = vector.load %arg10[%c0_100, %c0_101, %c0_102] : memref<1x1x1xf32, #tpu.memory_space<vmem>>, vector<1x1x1xf32>
    tpu.vector_store %arg10[%c0_100, %c0_101, %c0_102], %193 {strides = array<i32>} : memref<1x1x1xf32, #tpu.memory_space<vmem>>, vector<1x1x1xf32>,
    return
  }
  func.func @transform_0(%arg0: i32) -> (i32, i32, i32, i32) {
    %c0_i32 = arith.constant 0 : i32
    %c0_i32_0 = arith.constant 0 : i32
    %c0_i32_1 = arith.constant 0 : i32
    %c0_i32_2 = arith.constant 0 : i32
    return %arg0, %c0_i32, %c0_i32_0, %c0_i32_1 : i32, i32, i32, i32
  }
  func.func @transform_1(%arg0: i32) -> (i32, i32) {
    %c0_i32 = arith.constant 0 : i32
    %c0_i32_0 = arith.constant 0 : i32
    %c0_i32_1 = arith.constant 0 : i32
    return %c0_i32, %c0_i32_0 : i32, i32
  }
  func.func @transform_2(%arg0: i32) -> (i32, i32) {
    %c0_i32 = arith.constant 0 : i32
    %c0_i32_0 = arith.constant 0 : i32
    %c0_i32_1 = arith.constant 0 : i32
    return %c0_i32, %c0_i32_0 : i32, i32
  }
  func.func @transform_3(%arg0: i32) -> (i32, i32, i32) {
    %c0_i32 = arith.constant 0 : i32
    %c0_i32_0 = arith.constant 0 : i32
    %c0_i32_1 = arith.constant 0 : i32
    %c0_i32_2 = arith.constant 0 : i32
    return %c0_i32, %c0_i32_0, %c0_i32_1 : i32, i32, i32
  }
  func.func @transform_4(%arg0: i32) -> (i32, i32) {
    %c0_i32 = arith.constant 0 : i32
    %c0_i32_0 = arith.constant 0 : i32
    %c0_i32_1 = arith.constant 0 : i32
    return %c0_i32, %c0_i32_0 : i32, i32
  }
  func.func @transform_5(%arg0: i32) -> (i32, i32, i32) {
    %c0_i32 = arith.constant 0 : i32
    %c0_i32_0 = arith.constant 0 : i32
    %c0_i32_1 = arith.constant 0 : i32
    %c0_i32_2 = arith.constant 0 : i32
    return %c0_i32, %c0_i32_0, %c0_i32_1 : i32, i32, i32
  }
  func.func @transform_6(%arg0: i32) -> (i32, i32) {
    %c0_i32 = arith.constant 0 : i32
    %c0_i32_0 = arith.constant 0 : i32
    %c0_i32_1 = arith.constant 0 : i32
    return %c0_i32, %c0_i32_0 : i32, i32
  }
  func.func @transform_7(%arg0: i32) -> (i32, i32) {
    %c0_i32 = arith.constant 0 : i32
    %c0_i32_0 = arith.constant 0 : i32
    %c0_i32_1 = arith.constant 0 : i32
    return %c0_i32, %c0_i32_0 : i32, i32
  }
  func.func @transform_8(%arg0: i32) -> (i32, i32) {
    %c0_i32 = arith.constant 0 : i32
    %c0_i32_0 = arith.constant 0 : i32
    %c0_i32_1 = arith.constant 0 : i32
    return %c0_i32, %c0_i32_0 : i32, i32
  }
  func.func @transform_9(%arg0: i32) -> (i32, i32, i32) {
    %c0_i32 = arith.constant 0 : i32
    %c0_i32_0 = arith.constant 0 : i32
    %c0_i32_1 = arith.constant 0 : i32
    return %arg0, %c0_i32, %c0_i32_0 : i32, i32, i32
  }
}

</mosaic_0001>

<bundles_post_ra>
// kernel: discriminator_forward.1
= control target key start
LH: loop header
LB: loop body
LE: loop exit
PB: predicated region body
PF: predicated region fallthrough
CT: control target
= control target key end

     0   :  { %s14216_s11 = smov 0   ;;  %s17534_s0 = inlined_call_operand.vmem [shape: bf16[2,16,32,32], index: 0, kind: input, shape index: {}]   ;;  %s17535_s1 = inlined_call_operand.vmem [shape: bf16[32,128], index: 1, kind: input, shape index: {}]   ;;  %s17536_s2 = inlined_call_operand.vmem [shape: f32[1,128], index: 2, kind: input, shape index: {}]   ;;  %s17537_s3 = inlined_call_operand.vmem [shape: bf16[9,128,128], index: 3, kind: input, shape index: {}]   ;;  %s17538_s4 = inlined_call_operand.vmem [shape: f32[1,128], index: 4, kind: input, shape index: {}]   ;;  %s17539_s5 = inlined_call_operand.vmem [shape: bf16[9,128,128], index: 5, kind: input, shape index: {}]   ;;  %s17540_s6 = inlined_call_operand.vmem [shape: f32[1,128], index: 6, kind: input, shape index: {}]   ;;  %s17541_s7 = inlined_call_operand.vmem [shape: f32[1,128], index: 7, kind: input, shape index: {}]   ;;  %s17542_s8 = inlined_call_operand.<no memory space> [shape: f32[1,1], index: 8, kind: input, shape index: {}]   ;;  %s17543_s9 = inlined_call_operand.vmem [shape: f32[2,1,1], index: 9, kind: output, shape index: {}]  }
   0x1   :  { %v14_v0 = vstv %s17542_s8 }
   0x2   :  { %15 = vst [vmem:[#allocation2] sm:$0x1] %v14_v0 }
   0x3 LB: > { %s8912_s12 = sadd.s32 4294967295, %s14158_s11   ;;  %p8916_p0 = scmp.ge.s32.totalorder %s14158_s11, 1  ;;  %s14158_s11 = sphi %s14216_s11, %s21_s11  }
   0x4   : > { %p289_p1 = scmp.lt.s32.totalorder %s14158_s11, 3 }
   0x6   : > { %p290_p2 = pnand %p8916_p0, %p289_p1 }
   0x8   : > { %293 = sbr.rel (%p290_p2) target bundleno = 2014 (0x7de), region = 56 }
   0xf   : > { %v13974_v1 = vld [vmem:[%s17535_s1] sm:$0xff]   ;;  %p323_p3 = scmp.lt.s32.totalorder %s8912_s12, 1  ;;  %v13975_v2 = vld [vmem:[%s17535_s1 + $0x8] sm:$0xff]   ;;  %vm572_vm0 = vcmask 261120   ;;  %v14010_v15 = vld [vmem:[%s17537_s3 + $0xd0] sm:$0xff]   ;;  %v17546_v50 = vmov 0.0|0.0   ;;  %v1221_v59 = vlaneseq }
  0x10   : > { %11939 = vmatprep.subr.bf16.mxu0 %v13974_v1  ;;  %13447 = vmatprep.subr.bf16.mxu1 %v13974_v1  ;;  %v14008_v3 = vld [vmem:[%s17537_s3 + $0xc0] sm:$0xff]   ;;  %v14009_v12 = vld [vmem:[%s17537_s3 + $0xc8] sm:$0xff]   ;;  %v14011_v20 = vld [vmem:[%s17537_s3 + $0xd8] sm:$0xff]   ;;  %vm14161_vm6 = vmmov 1  }
  0x11   : > { %s17634_s12 = smov (!%p323_p3, %s8912_s12), 1  ;;  %11940 = vmatpush3.bf16.msra.mxu0 %v13974_v1  ;;  %13449 = vmatpush3.bf16.msra.mxu1 %v13974_v1  ;;  %v14012_v25 = vld [vmem:[%s17537_s3] sm:$0xff]   ;;  %v14013_v26 = vld [vmem:[%s17537_s3 + $0x8] sm:$0xff]   ;;  %v14015_v28 = vld [vmem:[%s17537_s3 + $0x10] sm:$0xff]   ;;  %v1222_v63 = vshrl.u32 %v1221_v59, 7 }
  0x12   : > { %11941 = vmatprep.subr.bf16.mxu0 %v13975_v2  ;;  %s11184_s16 = sshll.u32 %s17634_s12, 8  ;;  %13448 = vmatprep.subr.bf16.mxu1 %v13975_v2  ;;  %v14014_v27 = vld [vmem:[%s17537_s3 + $0xe0] sm:$0xff]   ;;  %v14017_v29 = vld [vmem:[%s17537_s3 + $0xe8] sm:$0xff]   ;;  %v14016_v34 = vld [vmem:[%s17537_s3 + $0x18] sm:$0xff]   ;;  %s330_s18 = scalar_lea.vmem %s17543_s9, %s17634_s12 }
  0x13   : > { %s14239_s21 = scalar_lea.vmem %s17534_s0, %s11184_s16  ;;  %v14020_v35 = vld [vmem:[%s17537_s3 + $0xf0] sm:$0xff]   ;;  %v14018_v36 = vld [vmem:[%s17537_s3 + $0x20] sm:$0xff]   ;;  %v14019_v41 = vld [vmem:[%s17537_s3 + $0x28] sm:$0xff]   ;;  %vm1226_vm3 = vcmp.ge.s32.totalorder %v1222_v63, 1 }
  0x14   : > { %v13976_v4 = vld [vmem:[%s14239_s21] sm:$0xff]   ;;  %v13977_v5 = vld [vmem:[%s14239_s21 + $0x8] sm:$0xff]   ;;  %v13978_v6 = vld [vmem:[%s14239_s21 + $0x10] sm:$0xff]  }
  0x15   : > { %11942 = vmatpush3.bf16.msra.mxu0 %v13975_v2  ;;  %13450 = vmatpush3.bf16.msra.mxu1 %v13975_v2  ;;  %v13979_v7 = vld [vmem:[%s14239_s21 + $0x18] sm:$0xff]   ;;  %v13980_v8 = vld [vmem:[%s14239_s21 + $0x20] sm:$0xff]   ;;  %v13981_v9 = vld [vmem:[%s14239_s21 + $0x28] sm:$0xff]  }
  0x16   : > { %11943 = vmatprep.mubr.msk.bf16.mxu0 %vm572_vm0, %v13976_v4  ;;  %12007 = vmatprep.subr.bf16.mxu1 %v14008_v3  ;;  %v13982_v10 = vld [vmem:[%s14239_s21 + $0x30] sm:$0xff]   ;;  %v13992_v11 = vld [vmem:[%s14239_s21 + $0x80] sm:$0xff]   ;;  %v13993_v13 = vld [vmem:[%s14239_s21 + $0x88] sm:$0xff]  }
  0x17   : > { %11975 = vmatprep.mubr.msk.bf16.mxu1 %vm572_vm0, %v13992_v11  ;;  %v13994_v14 = vld [vmem:[%s14239_s21 + $0x90] sm:$0xff]   ;;  %v13983_v16 = vld [vmem:[%s14239_s21 + $0x38] sm:$0xff]   ;;  %v13996_v18 = vld [vmem:[%s14239_s21 + $0xa0] sm:$0xff]   ;;  %12087 = vmatprep.subr.bf16.mxu0 %v14012_v25 }
  0x18   : > { %11944 = vmatmul.mubr.msk.bf16.vlgmr.msra.gmra.mrb[0].mxu0 %vm572_vm0, %v13977_v5  ;;  %11976 = vmatmul.mubr.msk.bf16.vlgmr.msra.gmra.mrb[0].mxu1 %vm572_vm0, %v13993_v13  ;;  %v13995_v17 = vld [vmem:[%s14239_s21 + $0x98] sm:$0xff]   ;;  %v13984_v19 = vld [vmem:[%s14239_s21 + $0x40] sm:$0xff]   ;;  %v13985_v21 = vld [vmem:[%s14239_s21 + $0x48] sm:$0xff]   ;;  %v1224_v5 = vadd.s32 16, %v1222_v63 }
  0x19   : > { %11947 = vmatprep.mubr.msk.bf16.mxu0 %vm572_vm0, %v13978_v6  ;;  %11979 = vmatprep.mubr.msk.bf16.mxu1 %vm572_vm0, %v13994_v14  ;;  %v13997_v22 = vld [vmem:[%s14239_s21 + $0xa8] sm:$0xff]   ;;  %v13986_v23 = vld [vmem:[%s14239_s21 + $0x50] sm:$0xff]   ;;  %v13987_v30 = vld [vmem:[%s14239_s21 + $0x58] sm:$0xff]  }
  0x1a   : > { %12008 = vmatpush3.bf16.msra.mxu1 %v14008_v3  ;;  %v13998_v24 = vld [vmem:[%s14239_s21 + $0xb0] sm:$0xff]   ;;  %12088 = vmatpush3.bf16.msra.mxu0 %v14012_v25  ;;  %v13999_v31 = vld [vmem:[%s14239_s21 + $0xb8] sm:$0xff]   ;;  %v13988_v32 = vld [vmem:[%s14239_s21 + $0x60] sm:$0xff]   ;;  %vm1232_vm5 = vcmp.le.s32.totalorder %v1224_v5, 16 }
  0x1b   : > { %12009 = vmatprep.subr.bf16.mxu1 %v14009_v12  ;;  %12089 = vmatprep.subr.bf16.mxu0 %v14013_v26  ;;  %v14000_v33 = vld [vmem:[%s14239_s21 + $0xc0] sm:$0xff]   ;;  %v14001_v37 = vld [vmem:[%s14239_s21 + $0xc8] sm:$0xff]   ;;  %v14002_v39 = vld [vmem:[%s14239_s21 + $0xd0] sm:$0xff]  }
  0x1c   : > { %v13989_v38 = vld [vmem:[%s14239_s21 + $0x68] sm:$0xff]   ;;  %v13990_v40 = vld [vmem:[%s14239_s21 + $0x70] sm:$0xff]   ;;  %v14003_v43 = vld [vmem:[%s14239_s21 + $0xd8] sm:$0xff]  }
  0x1d   : > { %v14021_v42 = vld [vmem:[%s17537_s3 + $0x30] sm:$0xff]   ;;  %v13991_v44 = vld [vmem:[%s14239_s21 + $0x78] sm:$0xff]   ;;  %v14004_v45 = vld [vmem:[%s14239_s21 + $0xe0] sm:$0xff]  }
  0x1e   : > { %12010 = vmatpush3.bf16.msra.mxu1 %v14009_v12  ;;  %12090 = vmatpush3.bf16.msra.mxu0 %v14013_v26  ;;  %v14005_v46 = vld [vmem:[%s14239_s21 + $0xe8] sm:$0xff]   ;;  %v14006_v47 = vld [vmem:[%s14239_s21 + $0xf0] sm:$0xff]   ;;  %v14007_v48 = vld [vmem:[%s14239_s21 + $0xf8] sm:$0xff]  }
  0x1f   : > { %12011 = vmatprep.subr.bf16.mxu1 %v14010_v15  ;;  %12091 = vmatprep.subr.bf16.mxu0 %v14015_v28  ;;  %v14022_v49 = vld [vmem:[%s17537_s3 + $0x38] sm:$0xff]   ;;  %v14355_v52 = vld [vmem:[%s17537_s3 + $0x180] sm:$0xff]   ;;  %v14031_v54 = vld [vmem:[%s17537_s3 + $0x108] sm:$0xff]  }
  0x20   : > { %11948 = vmatmul.mubr.msk.bf16.gmra.mrb[4].mxu0 %vm572_vm0, %v13979_v7  ;;  %11980 = vmatmul.mubr.msk.bf16.gmra.mrb[4].mxu1 %vm572_vm0, %v13995_v17  ;;  %v14023_v51 = vld [vmem:[%s17537_s3 + $0xf8] sm:$0xff]   ;;  %v14030_v53 = vld [vmem:[%s17537_s3 + $0x100] sm:$0xff]   ;;  %v14033_v55 = vld [vmem:[%s17537_s3 + $0x110] sm:$0xff]  }
  0x21   : > { %11951 = vmatprep.mubr.msk.bf16.mxu0 %vm572_vm0, %v13980_v8  ;;  %11983 = vmatprep.mubr.msk.bf16.mxu1 %vm572_vm0, %v13996_v18  ;;  %v14034_v56 = vld [vmem:[%s17537_s3 + $0x118] sm:$0xff]   ;;  %v14035_v57 = vld [vmem:[%s17537_s3 + $0x120] sm:$0xff]   ;;  %v14036_v58 = vld [vmem:[%s17537_s3 + $0x128] sm:$0xff]  }
  0x22   : > { %12012 = vmatpush3.bf16.msra.mxu1 %v14010_v15  ;;  %12092 = vmatpush3.bf16.msra.mxu0 %v14015_v28  ;;  %v14038_v60 = vld [vmem:[%s17537_s3 + $0x130] sm:$0xff]   ;;  %v14039_v61 = vld [vmem:[%s17537_s3 + $0x138] sm:$0xff]   ;;  %v14385_v62 = vld [vmem:[%s17536_s2] ss:$0 sm:$0xff] }
  0x23   : > { %12013 = vmatprep.subr.bf16.mxu1 %v14011_v20  ;;  %12093 = vmatprep.subr.bf16.mxu0 %v14016_v34  ;;  %vm14391_vm7 = vmpackc.low %vm14161_vm6, %vm1226_vm3 }
  0x24   : > { %vm14399_vm8 = vmpackc.low %vm14161_vm6, %vm1232_vm5 }
  0x26   : > { %12014 = vmatpush3.bf16.msra.mxu1 %v14011_v20  ;;  %12094 = vmatpush3.bf16.msra.mxu0 %v14016_v34  ;;  %v17544_v20 = vmov 0.0  }
  0x27   : > { %12015 = vmatprep.subr.bf16.mxu1 %v14014_v27  ;;  %12095 = vmatprep.subr.bf16.mxu0 %v14018_v36 }
  0x28   : > { %11952 = vmatmul.mubr.msk.bf16.gmra.mrb[8].mxu0 %vm572_vm0, %v13981_v9  ;;  %11984 = vmatmul.mubr.msk.bf16.gmra.mrb[8].mxu1 %vm572_vm0, %v13997_v22 }
  0x29   : > { %11955 = vmatprep.mubr.msk.bf16.mxu0 %vm572_vm0, %v13982_v10  ;;  %11987 = vmatprep.mubr.msk.bf16.mxu1 %vm572_vm0, %v13998_v24  ;;  %v14025_v24 = vld [vmem:[%s17537_s3 + $0x188] sm:$0xff]  }
  0x2a   : > { %12016 = vmatpush3.bf16.msra.mxu1 %v14014_v27  ;;  %12096 = vmatpush3.bf16.msra.mxu0 %v14018_v36 }
  0x2b   : > { %12017 = vmatprep.subr.bf16.mxu1 %v14017_v29  ;;  %12097 = vmatprep.subr.bf16.mxu0 %v14019_v41 }
  0x2e   : > { %12018 = vmatpush3.bf16.msra.mxu1 %v14017_v29  ;;  %12098 = vmatpush3.bf16.msra.mxu0 %v14019_v41 }
  0x2f   : > { %12019 = vmatprep.subr.bf16.mxu1 %v14020_v35  ;;  %12099 = vmatprep.subr.bf16.mxu0 %v14021_v42 }
  0x30   : > { %11956 = vmatmul.mubr.msk.bf16.gmra.mrb[12].mxu0 %vm572_vm0, %v13983_v16  ;;  %11988 = vmatmul.mubr.msk.bf16.gmra.mrb[12].mxu1 %vm572_vm0, %v13999_v31 }
  0x31   : > { %11959 = vmatprep.mubr.msk.bf16.mxu0 %vm572_vm0, %v13984_v19  ;;  %11991 = vmatprep.mubr.msk.bf16.mxu1 %vm572_vm0, %v14000_v33  ;;  %v15801_v19 = vld [vmem:[%s17539_s5 + $0x180] sm:$0xff]  }
  0x32   : > { %12020 = vmatpush3.bf16.msra.mxu1 %v14020_v35  ;;  %12100 = vmatpush3.bf16.msra.mxu0 %v14021_v42 }
  0x33   : > { %12101 = vmatprep.subr.bf16.mxu0 %v14022_v49  ;;  %12021 = vmatprep.subr.bf16.mxu1 %v14023_v51 }
  0x36   : > { %12102 = vmatpush3.bf16.msra.mxu0 %v14022_v49  ;;  %12022 = vmatpush3.bf16.msra.mxu1 %v14023_v51 }
  0x37   : > { %12167 = vmatprep.subr.bf16.mxu1 %v14355_v52  ;;  %12247 = vmatprep.subr.bf16.mxu0 %v14030_v53 }
  0x38   : > { %11960 = vmatmul.mubr.msk.bf16.gmra.mrb[16].mxu0 %vm572_vm0, %v13985_v21  ;;  %11992 = vmatmul.mubr.msk.bf16.gmra.mrb[16].mxu1 %vm572_vm0, %v14001_v37 }
  0x39   : > { %11963 = vmatprep.mubr.msk.bf16.mxu0 %vm572_vm0, %v13986_v23  ;;  %11995 = vmatprep.mubr.msk.bf16.mxu1 %vm572_vm0, %v14002_v39 }
  0x40   : > { %11964 = vmatmul.mubr.msk.bf16.gmra.mrb[20].mxu0 %vm572_vm0, %v13987_v30  ;;  %11996 = vmatmul.mubr.msk.bf16.gmra.mrb[20].mxu1 %vm572_vm0, %v14003_v43  ;;  %v14026_v30 = vld [vmem:[%s17537_s3 + $0x190] sm:$0xff]  }
  0x41   : > { %11967 = vmatprep.mubr.msk.bf16.mxu0 %vm572_vm0, %v13988_v32  ;;  %11999 = vmatprep.mubr.msk.bf16.mxu1 %vm572_vm0, %v14004_v45  ;;  %v14027_v45 = vld [vmem:[%s17537_s3 + $0x198] sm:$0xff]  }
  0x48   : > { %11968 = vmatmul.mubr.msk.bf16.gmra.mrb[24].mxu0 %vm572_vm0, %v13989_v38  ;;  %12000 = vmatmul.mubr.msk.bf16.gmra.mrb[24].mxu1 %vm572_vm0, %v14005_v46 }
  0x49   : > { %11971 = vmatprep.mubr.msk.bf16.mxu0 %vm572_vm0, %v13990_v40  ;;  %12003 = vmatprep.mubr.msk.bf16.mxu1 %vm572_vm0, %v14006_v47 }
  0x50   : > { %11972 = vmatmul.mubr.msk.bf16.gmra.mrb[28].mxu0 %vm572_vm0, %v13991_v44  ;;  %12004 = vmatmul.mubr.msk.bf16.gmra.mrb[28].mxu1 %vm572_vm0, %v14007_v48 }
  0x51   : > { %12103 = vmatprep.mubr.bf16.mxu0 %v17546_v50 }
  0x58   : > { %12104 = vmatmul.mubr.bf16.vlgmr.msra.gmra.mrb[32].mxu0 %v17546_v50 }
  0x59   : > { %12248 = vmatpush3.bf16.msra.mxu0 %v14030_v53 }
  0x5a   : > { %12249 = vmatprep.subr.bf16.mxu0 %v14031_v54 }
  0x5d   : > { %12250 = vmatpush3.bf16.msra.mxu0 %v14031_v54 }
  0x5e   : > { %12251 = vmatprep.subr.bf16.mxu0 %v14033_v55 }
  0x61   : > { %12252 = vmatpush3.bf16.msra.mxu0 %v14033_v55  ;;  %v14028_v55 = vld [vmem:[%s17537_s3 + $0x1a0] sm:$0xff]  }
  0x62   : > { %12253 = vmatprep.subr.bf16.mxu0 %v14034_v56 }
  0x65   : > { %12254 = vmatpush3.bf16.msra.mxu0 %v14034_v56 }
  0x66   : > { %12255 = vmatprep.subr.bf16.mxu0 %v14035_v57 }
  0x69   : > { %12256 = vmatpush3.bf16.msra.mxu0 %v14035_v57 }
  0x6a   : > { %12257 = vmatprep.subr.bf16.mxu0 %v14036_v58 }
  0x6d   : > { %12258 = vmatpush3.bf16.msra.mxu0 %v14036_v58 }
  0x6e   : > { %12259 = vmatprep.subr.bf16.mxu0 %v14038_v60 }
  0x71   : > { %12260 = vmatpush3.bf16.msra.mxu0 %v14038_v60 }
  0x72   : > { %12261 = vmatprep.subr.bf16.mxu0 %v14039_v61 }
  0x75   : > { %12262 = vmatpush3.bf16.msra.mxu0 %v14039_v61 }
  0xeb   : > { %v11945_v0 = vpop.f32.mrb[0].mxu0  ;;  %v14427_v32 = vpop.f32.mrb[0].mxu1 }
  0xec   : > { %v967_v1 = vadd.f32 %v11945_v0, %v14385_v62  ;;  %v703_v2 = vpop.f32.mrb[1].mxu0  ;;  %v831_v36 = vpop.f32.mrb[1].mxu1 }
  0xed   : > { %v965_v3 = vadd.f32 %v14385_v62, %v703_v2  ;;  %v11946_v4 = vpop.f32.mrb[2].mxu0  ;;  %v997_v40 = vadd.f32 %v14385_v62, %v831_v36  ;;  %v11978_v41 = vpop.f32.mrb[2].mxu1 }
  0xee   : > { %v1095_v6 = vmul.f32 0.2, %v967_v1  ;;  %v706_v7 = vpop.f32.mrb[3].mxu0  ;;  %vm1031_vm1 = vcmp.ge.f32.partialorder %v967_v1, 0.0  ;;  %v834_v46 = vpop.f32.mrb[3].mxu1 }
  0xef   : > { %v1093_v8 = vmul.f32 0.2, %v965_v3  ;;  %v966_v9 = vadd.f32 %v14385_v62, %v706_v7  ;;  %vm1029_vm2 = vcmp.ge.f32.partialorder %v965_v3, 0.0  ;;  %v998_v49 = vadd.f32 %v14385_v62, %v834_v46 }
  0xf0   : > { %v1159_v11 = vsel %vm1031_vm1, %v967_v1, %v1095_v6  ;;  %vm1061_vm13 = vcmp.ge.f32.partialorder %v997_v40, 0.0  ;;  %v1125_v53 = vmul.f32 0.2, %v997_v40 }
  0xf1   : > { %vm1030_vm4 = vcmp.ge.f32.partialorder %v966_v9, 0.0  ;;  %v1094_v10 = vmul.f32 0.2, %v966_v9  ;;  %v1157_v12 = vsel %vm1029_vm2, %v965_v3, %v1093_v8  ;;  %v14404_v21 = vpack.c.bf16 %v17544_v20, %v1159_v11 }
  0xf2   : > { %vm1062_vm0 = vcmp.ge.f32.partialorder %v998_v49, 0.0  ;;  %v1189_v57 = vsel %vm1061_vm13, %v997_v40, %v1125_v53  ;;  %v1126_v58 = vmul.f32 0.2, %v998_v49 }
  0xf3   : > { %v1158_v13 = vsel %vm1030_vm4, %v966_v9, %v1094_v10  ;;  %v11949_v14 = vpop.f32.mrb[4].mxu0  ;;  %v14457_v59 = vpop.f32.mrb[4].mxu1 }
  0xf4   : > { %v14395_v16 = vpack.c.bf16 %v1158_v13, %v1157_v12  ;;  %v971_v17 = vadd.f32 %v11949_v14, %v14385_v62  ;;  %v719_v18 = vpop.f32.mrb[5].mxu0  ;;  %v847_v0 = vpop.f32.mrb[5].mxu1  ;;  %v1190_v4 = vsel %vm1062_vm0, %v998_v49, %v1126_v58  ;;  %v14029_v12 = vld [vmem:[%s17537_s3 + $0x1a8] sm:$0xff]  }
  0xf5   : > { %v969_v22 = vadd.f32 %v14385_v62, %v719_v18  ;;  %v11950_v23 = vpop.f32.mrb[6].mxu0  ;;  %v1001_v5 = vadd.f32 %v14385_v62, %v847_v0  ;;  %v11982_v6 = vpop.f32.mrb[6].mxu1  ;;  %v14467_v10 = vpack.c.bf16 %v1190_v4, %v1189_v57  ;;  %v14521_v57 = vld [vmem:[%s17537_s3 + $0x140] sm:$0xff]  }
  0xf6   : > { %v1099_v25 = vmul.f32 0.2, %v971_v17  ;;  %v722_v26 = vpop.f32.mrb[7].mxu0  ;;  %12023 = vmatprep.mubr.msk.bf16.mxu1 %vm14391_vm7, %v14395_v16  ;;  %12107 = vmatprep.mubr.msk.bf16.mxu0 %vm14391_vm7, %v14395_v16  ;;  %vm1035_vm9 = vcmp.ge.f32.partialorder %v971_v17, 0.0  ;;  %v850_v11 = vpop.f32.mrb[7].mxu1 }
  0xf7   : > { %v1097_v27 = vmul.f32 0.2, %v969_v22  ;;  %v970_v28 = vadd.f32 %v14385_v62, %v722_v26  ;;  %12024 = vmatmul.mubr.msk.bf16.vlgmr.msra.gmra.mrb[32].mxu1 %vm14399_vm8, %v14404_v21  ;;  %12108 = vmatmul.mubr.msk.bf16.gmra.mrb[36].mxu0 %vm14399_vm8, %v14404_v21  ;;  %vm1033_vm10 = vcmp.ge.f32.partialorder %v969_v22, 0.0  ;;  %vm1065_vm2 = vcmp.ge.f32.partialorder %v1001_v5, 0.0 }
  0xf8   : > { %12168 = vmatpush3.bf16.msra.mxu1 %v14355_v52  ;;  %v1163_v31 = vsel %vm1035_vm9, %v971_v17, %v1099_v25  ;;  %v1002_v17 = vadd.f32 %v14385_v62, %v850_v11  ;;  %v1129_v23 = vmul.f32 0.2, %v1001_v5  ;;  %v14032_v25 = vld [vmem:[%s17537_s3 + $0x1b0] sm:$0xff]  }
  0xf9   : > { %vm1034_vm11 = vcmp.ge.f32.partialorder %v970_v28, 0.0  ;;  %v1098_v29 = vmul.f32 0.2, %v970_v28  ;;  %12169 = vmatprep.subr.bf16.mxu1 %v14025_v24  ;;  %v1161_v33 = vsel %vm1033_vm10, %v969_v22, %v1097_v27  ;;  %v14434_v42 = vpack.c.bf16 %v17544_v20, %v1163_v31 }
  0xfa   : > { %vm1066_vm5 = vcmp.ge.f32.partialorder %v1002_v17, 0.0  ;;  %v1193_v27 = vsel %vm1065_vm2, %v1001_v5, %v1129_v23 }
  0xfb   : > { %v1162_v34 = vsel %vm1034_vm11, %v970_v28, %v1098_v29  ;;  %v11953_v35 = vpop.f32.mrb[8].mxu0  ;;  %v1130_v28 = vmul.f32 0.2, %v1002_v17  ;;  %v14489_v29 = vpop.f32.mrb[8].mxu1 }
  0xfc   : > { %v14429_v37 = vpack.c.bf16 %v1162_v34, %v1161_v33  ;;  %v975_v38 = vadd.f32 %v11953_v35, %v14385_v62  ;;  %v735_v39 = vpop.f32.mrb[9].mxu0  ;;  %12170 = vmatpush3.bf16.msra.mxu1 %v14025_v24  ;;  %v863_v34 = vpop.f32.mrb[9].mxu1 }
  0xfd   : > { %v973_v43 = vadd.f32 %v14385_v62, %v735_v39  ;;  %v11954_v44 = vpop.f32.mrb[10].mxu0  ;;  %12171 = vmatprep.subr.bf16.mxu1 %v14026_v30  ;;  %v1194_v39 = vsel %vm1066_vm5, %v1002_v17, %v1130_v28  ;;  %v1005_v40 = vadd.f32 %v14385_v62, %v863_v34  ;;  %v11986_v41 = vpop.f32.mrb[10].mxu1 }
  0xfe   : > { %v1103_v47 = vmul.f32 0.2, %v975_v38  ;;  %v738_v48 = vpop.f32.mrb[11].mxu0  ;;  %12027 = vmatprep.mubr.msk.bf16.mxu1 %vm14391_vm7, %v14429_v37  ;;  %12111 = vmatprep.mubr.msk.bf16.mxu0 %vm14391_vm7, %v14429_v37  ;;  %vm1039_vm12 = vcmp.ge.f32.partialorder %v975_v38, 0.0  ;;  %v14499_v46 = vpack.c.bf16 %v1194_v39, %v1193_v27 }
  0xff   : > { %v1101_v51 = vmul.f32 0.2, %v973_v43  ;;  %v974_v52 = vadd.f32 %v14385_v62, %v738_v48  ;;  %12028 = vmatmul.mubr.msk.bf16.gmra.mrb[36].mxu1 %vm14399_vm8, %v14434_v42  ;;  %12112 = vmatmul.mubr.msk.bf16.gmra.mrb[40].mxu0 %vm14399_vm8, %v14434_v42  ;;  %vm1037_vm14 = vcmp.ge.f32.partialorder %v973_v43, 0.0  ;;  %v14037_v48 = vld [vmem:[%s17537_s3 + $0x1b8] sm:$0xff]   ;;  %vm1069_vm10 = vcmp.ge.f32.partialorder %v1005_v40, 0.0 }
 0x100   : > { %12172 = vmatpush3.bf16.msra.mxu1 %v14026_v30  ;;  %v1167_v56 = vsel %vm1039_vm12, %v975_v38, %v1103_v47  ;;  %v866_v47 = vpop.f32.mrb[11].mxu1 }
 0x101   : > { %vm1038_vm15 = vcmp.ge.f32.partialorder %v974_v52, 0.0  ;;  %v1102_v54 = vmul.f32 0.2, %v974_v52  ;;  %12173 = vmatprep.subr.bf16.mxu1 %v14027_v45  ;;  %v1165_v60 = vsel %vm1037_vm14, %v973_v43, %v1101_v51  ;;  %v14464_v7 = vpack.c.bf16 %v17544_v20, %v1167_v56 }
 0x103   : > { %v1166_v61 = vsel %vm1038_vm15, %v974_v52, %v1102_v54  ;;  %v11957_v63 = vpop.f32.mrb[12].mxu0  ;;  %v1006_v52 = vadd.f32 %v14385_v62, %v866_v47 }
 0x104   : > { %v14459_v1 = vpack.c.bf16 %v1166_v61, %v1165_v60  ;;  %v979_v2 = vadd.f32 %v11957_v63, %v14385_v62  ;;  %v751_v3 = vpop.f32.mrb[13].mxu0  ;;  %12174 = vmatpush3.bf16.msra.mxu1 %v14027_v45  ;;  %v14523_v63 = vpop.f32.mrb[12].mxu1 }
 0x105   : > { %v977_v8 = vadd.f32 %v14385_v62, %v751_v3  ;;  %v11958_v9 = vpop.f32.mrb[14].mxu0  ;;  %12175 = vmatprep.subr.bf16.mxu1 %v14028_v55  ;;  %vm1070_vm13 = vcmp.ge.f32.partialorder %v1006_v52, 0.0  ;;  %v1134_v61 = vmul.f32 0.2, %v1006_v52  ;;  %v879_v4 = vpop.f32.mrb[13].mxu1 }
 0x106   : > { %v1107_v13 = vmul.f32 0.2, %v979_v2  ;;  %v754_v14 = vpop.f32.mrb[15].mxu0  ;;  %12031 = vmatprep.mubr.msk.bf16.mxu1 %vm14391_vm7, %v14459_v1  ;;  %12115 = vmatprep.mubr.msk.bf16.mxu0 %vm14391_vm7, %v14459_v1  ;;  %vm1043_vm1 = vcmp.ge.f32.partialorder %v979_v2, 0.0  ;;  %v1009_v11 = vadd.f32 %v14385_v62, %v879_v4 }
 0x107   : > { %v1105_v18 = vmul.f32 0.2, %v977_v8  ;;  %v978_v22 = vadd.f32 %v14385_v62, %v754_v14  ;;  %12032 = vmatmul.mubr.msk.bf16.gmra.mrb[40].mxu1 %vm14399_vm8, %v14464_v7  ;;  %12116 = vmatmul.mubr.msk.bf16.gmra.mrb[44].mxu0 %vm14399_vm8, %v14464_v7  ;;  %vm1041_vm3 = vcmp.ge.f32.partialorder %v977_v8, 0.0  ;;  %v1198_v9 = vsel %vm1070_vm13, %v1006_v52, %v1134_v61 }
 0x108   : > { %12176 = vmatpush3.bf16.msra.mxu1 %v14028_v55  ;;  %v1171_v26 = vsel %vm1043_vm1, %v979_v2, %v1107_v13  ;;  %v1133_v55 = vmul.f32 0.2, %v1005_v40  ;;  %vm1073_vm15 = vcmp.ge.f32.partialorder %v1009_v11, 0.0  ;;  %v1137_v28 = vmul.f32 0.2, %v1009_v11 }
 0x109   : > { %vm1042_vm4 = vcmp.ge.f32.partialorder %v978_v22, 0.0  ;;  %v1106_v24 = vmul.f32 0.2, %v978_v22  ;;  %12177 = vmatprep.subr.bf16.mxu1 %v14029_v12  ;;  %v1169_v30 = vsel %vm1041_vm3, %v977_v8, %v1105_v18  ;;  %v14496_v43 = vpack.c.bf16 %v17544_v20, %v1171_v26 }
 0x10a   : > { %v1197_v60 = vsel %vm1069_vm10, %v1005_v40, %v1133_v55 }
 0x10b   : > { %v1170_v31 = vsel %vm1042_vm4, %v978_v22, %v1106_v24  ;;  %v11961_v33 = vpop.f32.mrb[16].mxu0  ;;  %v14533_v18 = vpack.c.bf16 %v1198_v9, %v1197_v60 }
 0x10c   : > { %v14491_v35 = vpack.c.bf16 %v1170_v31, %v1169_v30  ;;  %v983_v36 = vadd.f32 %v11961_v33, %v14385_v62  ;;  %v767_v38 = vpop.f32.mrb[17].mxu0  ;;  %12178 = vmatpush3.bf16.msra.mxu1 %v14029_v12  ;;  %v11990_v12 = vpop.f32.mrb[14].mxu1  ;;  %v1201_v33 = vsel %vm1073_vm15, %v1009_v11, %v1137_v28 }
 0x10d   : > { %v981_v44 = vadd.f32 %v14385_v62, %v767_v38  ;;  %v11962_v45 = vpop.f32.mrb[18].mxu0  ;;  %12179 = vmatprep.subr.bf16.mxu1 %v14032_v25  ;;  %v882_v22 = vpop.f32.mrb[15].mxu1 }
 0x10e   : > { %v1111_v49 = vmul.f32 0.2, %v983_v36  ;;  %v770_v51 = vpop.f32.mrb[19].mxu0  ;;  %12035 = vmatprep.mubr.msk.bf16.mxu1 %vm14391_vm7, %v14491_v35  ;;  %12119 = vmatprep.mubr.msk.bf16.mxu0 %vm14391_vm7, %v14491_v35  ;;  %vm1047_vm9 = vcmp.ge.f32.partialorder %v983_v36, 0.0 }
 0x10f   : > { %v1109_v53 = vmul.f32 0.2, %v981_v44  ;;  %v982_v54 = vadd.f32 %v14385_v62, %v770_v51  ;;  %12036 = vmatmul.mubr.msk.bf16.gmra.mrb[44].mxu1 %vm14399_vm8, %v14496_v43  ;;  %12120 = vmatmul.mubr.msk.bf16.gmra.mrb[48].mxu0 %vm14399_vm8, %v14496_v43  ;;  %vm1045_vm11 = vcmp.ge.f32.partialorder %v981_v44, 0.0 }
 0x110   : > { %12180 = vmatpush3.bf16.msra.mxu1 %v14032_v25  ;;  %v1175_v58 = vsel %vm1047_vm9, %v983_v36, %v1111_v49  ;;  %v1010_v25 = vadd.f32 %v14385_v62, %v882_v22  ;;  %v14550_v36 = vpop.f32.mrb[16].mxu1 }
 0x111   : > { %vm1046_vm12 = vcmp.ge.f32.partialorder %v982_v54, 0.0  ;;  %v1110_v56 = vmul.f32 0.2, %v982_v54  ;;  %12181 = vmatprep.subr.bf16.mxu1 %v14037_v48  ;;  %v1173_v0 = vsel %vm1045_vm11, %v981_v44, %v1109_v53  ;;  %v14530_v13 = vpack.c.bf16 %v17544_v20, %v1175_v58  ;;  %v895_v41 = vpop.f32.mrb[17].mxu1 }
 0x112   : > { %vm1074_vm2 = vcmp.ge.f32.partialorder %v1010_v25, 0.0  ;;  %v1138_v34 = vmul.f32 0.2, %v1010_v25  ;;  %v1013_v49 = vadd.f32 %v14385_v62, %v895_v41  ;;  %v11994_v51 = vpop.f32.mrb[18].mxu1 }
 0x113   : > { %v1174_v2 = vsel %vm1046_vm12, %v982_v54, %v1110_v56  ;;  %v11965_v3 = vpop.f32.mrb[20].mxu0  ;;  %v898_v56 = vpop.f32.mrb[19].mxu1 }
 0x114   : > { %v14525_v5 = vpack.c.bf16 %v1174_v2, %v1173_v0  ;;  %v987_v6 = vadd.f32 %v11965_v3, %v14385_v62  ;;  %v783_v8 = vpop.f32.mrb[21].mxu0  ;;  %12182 = vmatpush3.bf16.msra.mxu1 %v14037_v48  ;;  %v1202_v48 = vsel %vm1074_vm2, %v1010_v25, %v1138_v34  ;;  %v1014_v61 = vadd.f32 %v14385_v62, %v898_v56  ;;  %v14576_v11 = vpop.f32.mrb[20].mxu1 }
 0x115   : > { %v985_v14 = vadd.f32 %v14385_v62, %v783_v8  ;;  %v11966_v17 = vpop.f32.mrb[22].mxu0  ;;  %12487 = vmatprep.subr.bf16.mxu1 %v14521_v57  ;;  %v14560_v55 = vpack.c.bf16 %v1202_v48, %v1201_v33  ;;  %vm1077_vm4 = vcmp.ge.f32.partialorder %v1013_v49, 0.0  ;;  %v1141_v3 = vmul.f32 0.2, %v1013_v49  ;;  %v911_v22 = vpop.f32.mrb[21].mxu1 }
 0x116   : > { %v1115_v23 = vmul.f32 0.2, %v987_v6  ;;  %v786_v24 = vpop.f32.mrb[23].mxu0  ;;  %12039 = vmatprep.mubr.msk.bf16.mxu1 %vm14391_vm7, %v14525_v5  ;;  %12123 = vmatprep.mubr.msk.bf16.mxu0 %vm14391_vm7, %v14525_v5  ;;  %vm1051_vm14 = vcmp.ge.f32.partialorder %v987_v6, 0.0  ;;  %vm1078_vm10 = vcmp.ge.f32.partialorder %v1014_v61, 0.0  ;;  %v11998_v28 = vpop.f32.mrb[22].mxu1 }
 0x117   : > { %v1113_v26 = vmul.f32 0.2, %v985_v14  ;;  %v986_v27 = vadd.f32 %v14385_v62, %v786_v24  ;;  %12040 = vmatmul.mubr.msk.bf16.gmra.mrb[48].mxu1 %vm14399_vm8, %v14530_v13  ;;  %12124 = vmatmul.mubr.msk.bf16.gmra.mrb[52].mxu0 %vm14399_vm8, %v14530_v13  ;;  %vm1049_vm0 = vcmp.ge.f32.partialorder %v985_v14, 0.0  ;;  %v1205_v8 = vsel %vm1077_vm4, %v1013_v49, %v1141_v3 }
 0x118   : > { %v1179_v31 = vsel %vm1051_vm14, %v987_v6, %v1115_v23  ;;  %v1142_v9 = vmul.f32 0.2, %v1014_v61 }
 0x119   : > { %vm1050_vm1 = vcmp.ge.f32.partialorder %v986_v27, 0.0  ;;  %v1114_v30 = vmul.f32 0.2, %v986_v27  ;;  %v1177_v38 = vsel %vm1049_vm0, %v985_v14, %v1113_v26  ;;  %v14557_v52 = vpack.c.bf16 %v17544_v20, %v1179_v31 }
 0x11a   : > { %v1206_v26 = vsel %vm1078_vm10, %v1014_v61, %v1142_v9 }
 0x11b   : > { %v1178_v39 = vsel %vm1050_vm1, %v986_v27, %v1114_v30  ;;  %v11969_v40 = vpop.f32.mrb[24].mxu0  ;;  %v1017_v27 = vadd.f32 %v14385_v62, %v911_v22  ;;  %v14586_v34 = vpack.c.bf16 %v1206_v26, %v1205_v8  ;;  %v1003_v26 = vadd.f32 %v14457_v59, %v14385_v62 }
 0x11c   : > { %v14552_v44 = vpack.c.bf16 %v1178_v39, %v1177_v38  ;;  %v991_v45 = vadd.f32 %v11969_v40, %v14385_v62  ;;  %v799_v47 = vpop.f32.mrb[25].mxu0  ;;  %v914_v38 = vpop.f32.mrb[23].mxu1 }
 0x11d   : > { %v989_v53 = vadd.f32 %v14385_v62, %v799_v47  ;;  %v11970_v54 = vpop.f32.mrb[26].mxu0  ;;  %v1018_v41 = vadd.f32 %v14385_v62, %v914_v38  ;;  %vm1081_vm12 = vcmp.ge.f32.partialorder %v1017_v27, 0.0  ;;  %v1145_v48 = vmul.f32 0.2, %v1017_v27 }
 0x11e   : > { %v1119_v58 = vmul.f32 0.2, %v991_v45  ;;  %v802_v60 = vpop.f32.mrb[27].mxu0  ;;  %12043 = vmatprep.mubr.msk.bf16.mxu1 %vm14391_vm7, %v14552_v44  ;;  %12127 = vmatprep.mubr.msk.bf16.mxu0 %vm14391_vm7, %v14552_v44  ;;  %vm1055_vm3 = vcmp.ge.f32.partialorder %v991_v45, 0.0  ;;  %vm1067_vm4 = vcmp.ge.f32.partialorder %v1003_v26, 0.0 }
 0x11f   : > { %v1117_v0 = vmul.f32 0.2, %v989_v53  ;;  %v990_v2 = vadd.f32 %v14385_v62, %v802_v60  ;;  %12044 = vmatmul.mubr.msk.bf16.gmra.mrb[52].mxu1 %vm14399_vm8, %v14557_v52  ;;  %12128 = vmatmul.mubr.msk.bf16.gmra.mrb[56].mxu0 %vm14399_vm8, %v14557_v52  ;;  %vm1053_vm5 = vcmp.ge.f32.partialorder %v989_v53, 0.0  ;;  %vm1082_vm15 = vcmp.ge.f32.partialorder %v1018_v41, 0.0 }
 0x120   : > { %v1183_v6 = vsel %vm1055_vm3, %v991_v45, %v1119_v58  ;;  %v1209_v54 = vsel %vm1081_vm12, %v1017_v27, %v1145_v48  ;;  %v1146_v56 = vmul.f32 0.2, %v1018_v41  ;;  %v14604_v58 = vpop.f32.mrb[24].mxu1 }
 0x121   : > { %vm1054_vm9 = vcmp.ge.f32.partialorder %v990_v2, 0.0  ;;  %v1118_v4 = vmul.f32 0.2, %v990_v2  ;;  %v1181_v12 = vsel %vm1053_vm5, %v989_v53, %v1117_v0  ;;  %v14583_v30 = vpack.c.bf16 %v17544_v20, %v1183_v6  ;;  %v927_v0 = vpop.f32.mrb[25].mxu1 }
 0x122   : > { %v999_v53 = vadd.f32 %v14427_v32, %v14385_v62  ;;  %v1210_v3 = vsel %vm1082_vm15, %v1018_v41, %v1146_v56  ;;  %v12002_v6 = vpop.f32.mrb[26].mxu1  ;;  %vm4512_vm15 = vcmask 1046528  }
 0x123   : > { %v1182_v14 = vsel %vm1054_vm9, %v990_v2, %v1118_v4  ;;  %v11973_v17 = vpop.f32.mrb[28].mxu0  ;;  %v1021_v4 = vadd.f32 %v14385_v62, %v927_v0  ;;  %v14612_v9 = vpack.c.bf16 %v1210_v3, %v1209_v54  ;;  %v1011_v0 = vadd.f32 %v14523_v63, %v14385_v62 }
 0x124   : > { %v14578_v23 = vpack.c.bf16 %v1182_v14, %v1181_v12  ;;  %v995_v24 = vadd.f32 %v11973_v17, %v14385_v62  ;;  %v815_v25 = vpop.f32.mrb[29].mxu0  ;;  %v930_v12 = vpop.f32.mrb[27].mxu1  ;;  %v1127_v32 = vmul.f32 0.2, %v999_v53  ;;  %vm1063_vm1 = vcmp.ge.f32.partialorder %v999_v53, 0.0 }
 0x125   : > { %v993_v31 = vadd.f32 %v14385_v62, %v815_v25  ;;  %v11974_v33 = vpop.f32.mrb[30].mxu0  ;;  %vm1085_vm0 = vcmp.ge.f32.partialorder %v1021_v4, 0.0  ;;  %v1149_v14 = vmul.f32 0.2, %v1021_v4  ;;  %v1022_v17 = vadd.f32 %v14385_v62, %v930_v12  ;;  %v14635_v28 = vpop.f32.mrb[28].mxu1 }
 0x126   : > { %v1123_v39 = vmul.f32 0.2, %v995_v24  ;;  %v818_v40 = vpop.f32.mrb[31].mxu0  ;;  %12047 = vmatprep.mubr.msk.bf16.mxu1 %vm14391_vm7, %v14578_v23  ;;  %12131 = vmatprep.mubr.msk.bf16.mxu0 %vm14391_vm7, %v14578_v23  ;;  %vm1059_vm11 = vcmp.ge.f32.partialorder %v995_v24, 0.0  ;;  %v1191_v25 = vsel %vm1063_vm1, %v999_v53, %v1127_v32  ;;  %v943_v33 = vpop.f32.mrb[29].mxu1  ;;  %v1007_v53 = vadd.f32 %v14489_v29, %v14385_v62 }
 0x127   : > { %v1121_v45 = vmul.f32 0.2, %v993_v31  ;;  %v994_v47 = vadd.f32 %v14385_v62, %v818_v40  ;;  %12048 = vmatmul.mubr.msk.bf16.gmra.mrb[56].mxu1 %vm14399_vm8, %v14583_v30  ;;  %12132 = vmatmul.mubr.msk.bf16.gmra.mrb[60].mxu0 %vm14399_vm8, %v14583_v30  ;;  %vm1057_vm13 = vcmp.ge.f32.partialorder %v993_v31, 0.0  ;;  %v1213_v22 = vsel %vm1085_vm0, %v1021_v4, %v1149_v14 }
 0x128   : > { %v1187_v51 = vsel %vm1059_vm11, %v995_v24, %v1123_v39  ;;  %vm1086_vm2 = vcmp.ge.f32.partialorder %v1022_v17, 0.0  ;;  %v1150_v24 = vmul.f32 0.2, %v1022_v17  ;;  %v1025_v38 = vadd.f32 %v14385_v62, %v943_v33  ;;  %v12006_v39 = vpop.f32.mrb[30].mxu1 }
 0x129   : > { %vm1058_vm14 = vcmp.ge.f32.partialorder %v994_v47, 0.0  ;;  %v1122_v49 = vmul.f32 0.2, %v994_v47  ;;  %v1185_v60 = vsel %vm1057_vm13, %v993_v31, %v1121_v45  ;;  %v14610_v8 = vpack.c.bf16 %v17544_v20, %v1187_v51  ;;  %v946_v41 = vpop.f32.mrb[31].mxu1 }
 0x12a   : > { %v1214_v27 = vsel %vm1086_vm2, %v1022_v17, %v1150_v24  ;;  %v14641_v40 = vpack.c.bf16 %v17544_v20, %v1191_v25  ;;  %v1131_v45 = vmul.f32 0.2, %v1003_v26  ;;  %vm1089_vm3 = vcmp.ge.f32.partialorder %v1025_v38, 0.0  ;;  %v14046_v25 = vld [vmem:[%s17537_s3 + $0x40] sm:$0xff]  }
 0x12b   : > { %v1186_v61 = vsel %vm1058_vm14, %v994_v47, %v1122_v49  ;;  %v14637_v31 = vpack.c.bf16 %v1214_v27, %v1213_v22  ;;  %v1153_v47 = vmul.f32 0.2, %v1025_v38  ;;  %v1026_v48 = vadd.f32 %v14385_v62, %v946_v41  ;;  %v12105_v3 = vpop.f32.mrb[32].mxu0  ;;  %12327 = vmatprep.subr.bf16.mxu0 %v14046_v25 }
 0x12c   : > { %v14606_v2 = vpack.c.bf16 %v1186_v61, %v1185_v60  ;;  %v1195_v51 = vsel %vm1067_vm4, %v1003_v26, %v1131_v45  ;;  %v1135_v61 = vmul.f32 0.2, %v1007_v53  ;;  %vm1071_vm9 = vcmp.ge.f32.partialorder %v1007_v53, 0.0  ;;  %v14677_v4 = vpop.f32.mrb[33].mxu0  ;;  %v14054_v3 = vld [vmem:[%s17537_s3 + $0x70] sm:$0xff]  }
 0x12d   : > { %v1217_v59 = vsel %vm1089_vm3, %v1025_v38, %v1153_v47  ;;  %vm1090_vm5 = vcmp.ge.f32.partialorder %v1026_v48, 0.0  ;;  %v1154_v49 = vmul.f32 0.2, %v1026_v48  ;;  %v14661_v60 = vpack.c.bf16 %v17544_v20, %v1195_v51  ;;  %v12106_v6 = vpop.f32.mrb[34].mxu0  ;;  %v14041_v51 = vld [vmem:[%s17537_s3 + $0x148] sm:$0xff]  }
 0x12e   : > { %12051 = vmatprep.mubr.msk.bf16.mxu1 %vm14391_vm7, %v14606_v2  ;;  %12135 = vmatprep.mubr.msk.bf16.mxu0 %vm14391_vm7, %v14606_v2  ;;  %v1199_v29 = vsel %vm1071_vm9, %v1007_v53, %v1135_v61  ;;  %v1139_v32 = vmul.f32 0.2, %v1011_v0  ;;  %vm1075_vm10 = vcmp.ge.f32.partialorder %v1011_v0, 0.0  ;;  %v14694_v63 = vpop.f32.mrb[35].mxu0  ;;  %v1015_v17 = vadd.f32 %v14550_v36, %v14385_v62  ;;  %v14050_v53 = vld [vmem:[%s17537_s3 + $0x58] sm:$0xff]   ;;  %v14045_v6 = vld [vmem:[%s17537_s3 + $0x168] sm:$0xff]  }
 0x12f   : > { %12052 = vmatmul.mubr.msk.bf16.gmra.mrb[60].mxu1 %vm14399_vm8, %v14610_v8  ;;  %12136 = vmatmul.mubr.msk.bf16.gmra.mrb[64].mxu0 %vm14399_vm8, %v14610_v8  ;;  %v1218_v54 = vsel %vm1090_vm5, %v1026_v48, %v1154_v49  ;;  %v14680_v12 = vpack.c.bf16 %v17544_v20, %v1199_v29  ;;  %v1019_v26 = vadd.f32 %v14576_v11, %v14385_v62  ;;  %v14049_v49 = vld [vmem:[%s17537_s3 + $0x50] sm:$0xff]   ;;  %v14043_v61 = vld [vmem:[%s17537_s3 + $0x158] sm:$0xff]   ;;  %v14052_v29 = vld [vmem:[%s17537_s3 + $0x68] sm:$0xff]  }
 0x130   : > { %12055 = vmatprep.mubr.msk.bf16.mxu1 %vm14391_vm7, %v14467_v10  ;;  %12139 = vmatprep.mubr.msk.bf16.mxu0 %vm14391_vm7, %v14467_v10  ;;  %v14658_v56 = vpack.c.bf16 %v1218_v54, %v1217_v59  ;;  %v1203_v14 = vsel %vm1075_vm10, %v1011_v0, %v1139_v32  ;;  %v1143_v24 = vmul.f32 0.2, %v1015_v17  ;;  %vm1079_vm11 = vcmp.ge.f32.partialorder %v1015_v17, 0.0  ;;  %v14047_v59 = vld [vmem:[%s17537_s3 + $0x48] sm:$0xff]   ;;  %v14042_v54 = vld [vmem:[%s17537_s3 + $0x150] sm:$0xff]   ;;  %v14044_v0 = vld [vmem:[%s17537_s3 + $0x160] sm:$0xff]  }
 0x131   : > { %v14699_v22 = vpack.c.bf16 %v17544_v20, %v1203_v14  ;;  %v1147_v33 = vmul.f32 0.2, %v1019_v26  ;;  %vm1083_vm12 = vcmp.ge.f32.partialorder %v1019_v26, 0.0  ;;  %v1023_v38 = vadd.f32 %v14604_v58, %v14385_v62  ;;  %v14055_v32 = vld [vmem:[%s17537_s3 + $0x78] sm:$0xff]   ;;  %v14048_v14 = vld [vmem:[%s17537_s3 + $0x170] sm:$0xff]  }
 0x132   : > { %v1207_v36 = vsel %vm1079_vm11, %v1015_v17, %v1143_v24  ;;  %v1027_v45 = vadd.f32 %v14635_v28, %v14385_v62  ;;  %v14053_v17 = vld [vmem:[%s17537_s3 + $0x178] sm:$0xff]   ;;  %v14876_v24 = vld [vmem:[%s17537_s3 + $0x80] sm:$0xff]  }
 0x133   : > { %v14719_v27 = vpack.c.bf16 %v17544_v20, %v1207_v36  ;;  %v1211_v11 = vsel %vm1083_vm12, %v1019_v26, %v1147_v33  ;;  %v1151_v41 = vmul.f32 0.2, %v1023_v38  ;;  %vm1087_vm13 = vcmp.ge.f32.partialorder %v1023_v38, 0.0 }
 0x134   : > { %v14736_v39 = vpack.c.bf16 %v17544_v20, %v1211_v11  ;;  %v1155_v48 = vmul.f32 0.2, %v1027_v45  ;;  %vm1091_vm14 = vcmp.ge.f32.partialorder %v1027_v45, 0.0 }
 0x135   : > { %v1215_v58 = vsel %vm1087_vm13, %v1023_v38, %v1151_v41 }
 0x136   : > { %v14753_v47 = vpack.c.bf16 %v17544_v20, %v1215_v58  ;;  %v1219_v62 = vsel %vm1091_vm14, %v1027_v45, %v1155_v48 }
 0x137   : > { %12056 = vmatmul.mubr.msk.bf16.gmra.mrb[64].mxu1 %vm14399_vm8, %v14641_v40  ;;  %12140 = vmatmul.mubr.msk.bf16.gmra.mrb[68].mxu0 %vm14399_vm8, %v14641_v40  ;;  %v14768_v28 = vpack.c.bf16 %v17544_v20, %v1219_v62  ;;  %v14972_v62 = vld [vmem:[%s17537_s3 + $0x1c0] sm:$0xff]  }
 0x138   : > { %12059 = vmatprep.mubr.msk.bf16.mxu1 %vm14391_vm7, %v14499_v46  ;;  %12143 = vmatprep.mubr.msk.bf16.mxu0 %vm14391_vm7, %v14499_v46 }
 0x13f   : > { %12060 = vmatmul.mubr.msk.bf16.gmra.mrb[68].mxu1 %vm14399_vm8, %v14661_v60  ;;  %12144 = vmatmul.mubr.msk.bf16.gmra.mrb[72].mxu0 %vm14399_vm8, %v14661_v60 }
 0x140   : > { %12063 = vmatprep.mubr.msk.bf16.mxu1 %vm14391_vm7, %v14533_v18  ;;  %12147 = vmatprep.mubr.msk.bf16.mxu0 %vm14391_vm7, %v14533_v18 }
 0x147   : > { %12064 = vmatmul.mubr.msk.bf16.gmra.mrb[72].mxu1 %vm14399_vm8, %v14680_v12  ;;  %12148 = vmatmul.mubr.msk.bf16.gmra.mrb[76].mxu0 %vm14399_vm8, %v14680_v12 }
 0x148   : > { %12067 = vmatprep.mubr.msk.bf16.mxu1 %vm14391_vm7, %v14560_v55  ;;  %12151 = vmatprep.mubr.msk.bf16.mxu0 %vm14391_vm7, %v14560_v55 }
 0x14f   : > { %12068 = vmatmul.mubr.msk.bf16.gmra.mrb[76].mxu1 %vm14399_vm8, %v14699_v22  ;;  %12152 = vmatmul.mubr.msk.bf16.gmra.mrb[80].mxu0 %vm14399_vm8, %v14699_v22 }
 0x150   : > { %12071 = vmatprep.mubr.msk.bf16.mxu1 %vm14391_vm7, %v14586_v34  ;;  %12155 = vmatprep.mubr.msk.bf16.mxu0 %vm14391_vm7, %v14586_v34 }
 0x157   : > { %12072 = vmatmul.mubr.msk.bf16.gmra.mrb[80].mxu1 %vm14399_vm8, %v14719_v27  ;;  %12156 = vmatmul.mubr.msk.bf16.gmra.mrb[84].mxu0 %vm14399_vm8, %v14719_v27 }
 0x158   : > { %12075 = vmatprep.mubr.msk.bf16.mxu1 %vm14391_vm7, %v14612_v9  ;;  %12159 = vmatprep.mubr.msk.bf16.mxu0 %vm14391_vm7, %v14612_v9 }
 0x15f   : > { %12076 = vmatmul.mubr.msk.bf16.gmra.mrb[84].mxu1 %vm14399_vm8, %v14736_v39  ;;  %12160 = vmatmul.mubr.msk.bf16.gmra.mrb[88].mxu0 %vm14399_vm8, %v14736_v39 }
 0x160   : > { %12079 = vmatprep.mubr.msk.bf16.mxu1 %vm14391_vm7, %v14637_v31  ;;  %12163 = vmatprep.mubr.msk.bf16.mxu0 %vm14391_vm7, %v14637_v31 }
 0x167   : > { %12080 = vmatmul.mubr.msk.bf16.gmra.mrb[88].mxu1 %vm14399_vm8, %v14753_v47  ;;  %12164 = vmatmul.mubr.msk.bf16.gmra.mrb[92].mxu0 %vm14399_vm8, %v14753_v47 }
 0x168   : > { %12263 = vmatprep.mubr.msk.bf16.mxu0 %vm14391_vm7, %v14395_v16  ;;  %12083 = vmatprep.mubr.msk.bf16.mxu1 %vm14391_vm7, %v14658_v56 }
 0x16f   : > { %12084 = vmatmul.mubr.msk.bf16.gmra.mrb[92].mxu1 %vm14399_vm8, %v14768_v28  ;;  %12264 = vmatmul.mubr.msk.bf16.vlgmr.msra.gmra.mrb[96].mxu0 %vm14399_vm8, %v14404_v21 }
 0x170   : > { %12183 = vmatprep.mubr.msk.bf16.mxu1 %vm14391_vm7, %v14429_v37  ;;  %12267 = vmatprep.mubr.msk.bf16.mxu0 %vm14391_vm7, %v14429_v37 }
 0x171   : > { %12328 = vmatpush3.bf16.msra.mxu0 %v14046_v25 }
 0x172   : > { %12329 = vmatprep.subr.bf16.mxu0 %v14047_v59 }
 0x175   : > { %12330 = vmatpush3.bf16.msra.mxu0 %v14047_v59 }
 0x176   : > { %12331 = vmatprep.subr.bf16.mxu0 %v14049_v49 }
 0x177   : > { %12184 = vmatmul.mubr.msk.bf16.vlgmr.msra.gmra.mrb[96].mxu1 %vm14399_vm8, %v14434_v42  ;;  %12268 = vmatmul.mubr.msk.bf16.gmra.mrb[100].mxu0 %vm14399_vm8, %v14434_v42 }
 0x178   : > { %12488 = vmatpush3.bf16.msra.mxu1 %v14521_v57  ;;  %12187 = vmatprep.mubr.msk.bf16.mxu1 %vm14391_vm7, %v14459_v1  ;;  %v14051_v57 = vld [vmem:[%s17537_s3 + $0x60] sm:$0xff]  }
 0x179   : > { %12271 = vmatprep.mubr.msk.bf16.mxu0 %vm14391_vm7, %v14459_v1  ;;  %12489 = vmatprep.subr.bf16.mxu1 %v14041_v51 }
 0x17a   : > { %12332 = vmatpush3.bf16.msra.mxu0 %v14049_v49 }
 0x17b   : > { %12333 = vmatprep.subr.bf16.mxu0 %v14050_v53 }
 0x17c   : > { %12490 = vmatpush3.bf16.msra.mxu1 %v14041_v51 }
 0x17d   : > { %12491 = vmatprep.subr.bf16.mxu1 %v14042_v54 }
 0x17e   : > { %12334 = vmatpush3.bf16.msra.mxu0 %v14050_v53 }
 0x17f   : > { %12188 = vmatmul.mubr.msk.bf16.gmra.mrb[100].mxu1 %vm14399_vm8, %v14464_v7  ;;  %12272 = vmatmul.mubr.msk.bf16.gmra.mrb[104].mxu0 %vm14399_vm8, %v14464_v7 }
 0x180   : > { %12191 = vmatprep.mubr.msk.bf16.mxu1 %vm14391_vm7, %v14491_v35  ;;  %12275 = vmatprep.mubr.msk.bf16.mxu0 %vm14391_vm7, %v14491_v35 }
 0x181   : > { %12492 = vmatpush3.bf16.msra.mxu1 %v14042_v54  ;;  %12335 = vmatprep.subr.bf16.mxu0 %v14051_v57 }
 0x182   : > { %12493 = vmatprep.subr.bf16.mxu1 %v14043_v61  ;;  %12336 = vmatpush3.bf16.msra.mxu0 %v14051_v57 }
 0x183   : > { %12337 = vmatprep.subr.bf16.mxu0 %v14052_v29 }
 0x185   : > { %12494 = vmatpush3.bf16.msra.mxu1 %v14043_v61 }
 0x186   : > { %12495 = vmatprep.subr.bf16.mxu1 %v14044_v0  ;;  %12338 = vmatpush3.bf16.msra.mxu0 %v14052_v29 }
 0x187   : > { %12192 = vmatmul.mubr.msk.bf16.gmra.mrb[104].mxu1 %vm14399_vm8, %v14496_v43  ;;  %12276 = vmatmul.mubr.msk.bf16.gmra.mrb[108].mxu0 %vm14399_vm8, %v14496_v43 }
 0x188   : > { %12195 = vmatprep.mubr.msk.bf16.mxu1 %vm14391_vm7, %v14525_v5  ;;  %12279 = vmatprep.mubr.msk.bf16.mxu0 %vm14391_vm7, %v14525_v5 }
 0x189   : > { %12496 = vmatpush3.bf16.msra.mxu1 %v14044_v0  ;;  %12339 = vmatprep.subr.bf16.mxu0 %v14054_v3 }
 0x18a   : > { %12497 = vmatprep.subr.bf16.mxu1 %v14045_v6  ;;  %12340 = vmatpush3.bf16.msra.mxu0 %v14054_v3 }
 0x18b   : > { %12341 = vmatprep.subr.bf16.mxu0 %v14055_v32 }
 0x18d   : > { %12498 = vmatpush3.bf16.msra.mxu1 %v14045_v6 }
 0x18e   : > { %12499 = vmatprep.subr.bf16.mxu1 %v14048_v14  ;;  %12342 = vmatpush3.bf16.msra.mxu0 %v14055_v32 }
 0x18f   : > { %12196 = vmatmul.mubr.msk.bf16.gmra.mrb[108].mxu1 %vm14399_vm8, %v14530_v13  ;;  %12280 = vmatmul.mubr.msk.bf16.gmra.mrb[112].mxu0 %vm14399_vm8, %v14530_v13 }
 0x190   : > { %12199 = vmatprep.mubr.msk.bf16.mxu1 %vm14391_vm7, %v14552_v44  ;;  %12283 = vmatprep.mubr.msk.bf16.mxu0 %vm14391_vm7, %v14552_v44 }
 0x191   : > { %12500 = vmatpush3.bf16.msra.mxu1 %v14048_v14  ;;  %12407 = vmatprep.subr.bf16.mxu0 %v14972_v62 }
 0x192   : > { %12501 = vmatprep.subr.bf16.mxu1 %v14053_v17 }
 0x195   : > { %12502 = vmatpush3.bf16.msra.mxu1 %v14053_v17 }
 0x196   : > { %12567 = vmatprep.subr.bf16.mxu1 %v14876_v24 }
 0x197   : > { %12200 = vmatmul.mubr.msk.bf16.gmra.mrb[112].mxu1 %vm14399_vm8, %v14557_v52  ;;  %12284 = vmatmul.mubr.msk.bf16.gmra.mrb[116].mxu0 %vm14399_vm8, %v14557_v52 }
 0x198   : > { %12203 = vmatprep.mubr.msk.bf16.mxu1 %vm14391_vm7, %v14578_v23  ;;  %12287 = vmatprep.mubr.msk.bf16.mxu0 %vm14391_vm7, %v14578_v23 }
 0x19f   : > { %12204 = vmatmul.mubr.msk.bf16.gmra.mrb[116].mxu1 %vm14399_vm8, %v14583_v30  ;;  %12288 = vmatmul.mubr.msk.bf16.gmra.mrb[120].mxu0 %vm14399_vm8, %v14583_v30 }
 0x1a0   : > { %12207 = vmatprep.mubr.msk.bf16.mxu1 %vm14391_vm7, %v14606_v2  ;;  %12291 = vmatprep.mubr.msk.bf16.mxu0 %vm14391_vm7, %v14606_v2 }
 0x1a7   : > { %12208 = vmatmul.mubr.msk.bf16.gmra.mrb[120].mxu1 %vm14399_vm8, %v14610_v8  ;;  %12292 = vmatmul.mubr.msk.bf16.gmra.mrb[124].mxu0 %vm14399_vm8, %v14610_v8 }
 0x1a8   : > { %12211 = vmatprep.mubr.msk.bf16.mxu1 %vm14391_vm7, %v14467_v10  ;;  %12295 = vmatprep.mubr.msk.bf16.mxu0 %vm14391_vm7, %v14467_v10 }
 0x1af   : > { %12212 = vmatmul.mubr.msk.bf16.gmra.mrb[124].mxu1 %vm14399_vm8, %v14641_v40  ;;  %12296 = vmatmul.mubr.msk.bf16.gmra.mrb[128].mxu0 %vm14399_vm8, %v14641_v40 }
 0x1b0   : > { %12215 = vmatprep.mubr.msk.bf16.mxu1 %vm14391_vm7, %v14499_v46  ;;  %12299 = vmatprep.mubr.msk.bf16.mxu0 %vm14391_vm7, %v14499_v46 }
 0x1b7   : > { %12216 = vmatmul.mubr.msk.bf16.gmra.mrb[128].mxu1 %vm14399_vm8, %v14661_v60  ;;  %12300 = vmatmul.mubr.msk.bf16.gmra.mrb[132].mxu0 %vm14399_vm8, %v14661_v60 }
 0x1b8   : > { %12219 = vmatprep.mubr.msk.bf16.mxu1 %vm14391_vm7, %v14533_v18  ;;  %12303 = vmatprep.mubr.msk.bf16.mxu0 %vm14391_vm7, %v14533_v18 }
 0x1bf   : > { %12220 = vmatmul.mubr.msk.bf16.gmra.mrb[132].mxu1 %vm14399_vm8, %v14680_v12  ;;  %12304 = vmatmul.mubr.msk.bf16.gmra.mrb[136].mxu0 %vm14399_vm8, %v14680_v12 }
 0x1c0   : > { %12223 = vmatprep.mubr.msk.bf16.mxu1 %vm14391_vm7, %v14560_v55  ;;  %12307 = vmatprep.mubr.msk.bf16.mxu0 %vm14391_vm7, %v14560_v55 }
 0x1c7   : > { %12224 = vmatmul.mubr.msk.bf16.gmra.mrb[136].mxu1 %vm14399_vm8, %v14699_v22  ;;  %12308 = vmatmul.mubr.msk.bf16.gmra.mrb[140].mxu0 %vm14399_vm8, %v14699_v22 }
 0x1c8   : > { %12227 = vmatprep.mubr.msk.bf16.mxu1 %vm14391_vm7, %v14586_v34  ;;  %12311 = vmatprep.mubr.msk.bf16.mxu0 %vm14391_vm7, %v14586_v34 }
 0x1ca   : > { %v12025_v25 = vpop.f32.mrb[32].mxu1  ;;  %v12109_v36 = vpop.f32.mrb[36].mxu0 }
 0x1cb   : > { %v1458_v26 = vpop.f32.mrb[33].mxu1  ;;  %v1777_v33 = vpop.f32.mrb[37].mxu0 }
 0x1cc   : > { %v12026_v11 = vpop.f32.mrb[34].mxu1  ;;  %v12110_v38 = vpop.f32.mrb[38].mxu0  ;;  %v14964_v41 = vadd.f32 %v14677_v4, %v1458_v26 }
 0x1cd   : > { %v1461_v58 = vpop.f32.mrb[35].mxu1  ;;  %v1780_v45 = vpop.f32.mrb[39].mxu0 }
 0x1ce   : > { %v14967_v48 = vadd.f32 %v14694_v63, %v1461_v58 }
 0x1cf   : > { %12228 = vmatmul.mubr.msk.bf16.gmra.mrb[140].mxu1 %vm14399_vm8, %v14719_v27  ;;  %12312 = vmatmul.mubr.msk.bf16.gmra.mrb[144].mxu0 %vm14399_vm8, %v14719_v27 }
 0x1d0   : > { %12231 = vmatprep.mubr.msk.bf16.mxu1 %vm14391_vm7, %v14612_v9  ;;  %12315 = vmatprep.mubr.msk.bf16.mxu0 %vm14391_vm7, %v14612_v9 }
 0x1d2   : > { %v12029_v4 = vpop.f32.mrb[36].mxu1  ;;  %v12113_v63 = vpop.f32.mrb[40].mxu0 }
 0x1d3   : > { %v1472_v59 = vpop.f32.mrb[37].mxu1  ;;  %v1791_v49 = vpop.f32.mrb[41].mxu0 }
 0x1d4   : > { %v12030_v51 = vpop.f32.mrb[38].mxu1  ;;  %v12114_v53 = vpop.f32.mrb[42].mxu0  ;;  %v14987_v54 = vadd.f32 %v1777_v33, %v1472_v59 }
 0x1d5   : > { %v1475_v57 = vpop.f32.mrb[39].mxu1  ;;  %v1794_v61 = vpop.f32.mrb[43].mxu0 }
 0x1d6   : > { %v14989_v29 = vadd.f32 %v1780_v45, %v1475_v57 }
 0x1d7   : > { %12232 = vmatmul.mubr.msk.bf16.gmra.mrb[144].mxu1 %vm14399_vm8, %v14736_v39  ;;  %12316 = vmatmul.mubr.msk.bf16.gmra.mrb[148].mxu0 %vm14399_vm8, %v14736_v39 }
 0x1d8   : > { %12235 = vmatprep.mubr.msk.bf16.mxu1 %vm14391_vm7, %v14637_v31  ;;  %12319 = vmatprep.mubr.msk.bf16.mxu0 %vm14391_vm7, %v14637_v31 }
 0x1da   : > { %v12033_v0 = vpop.f32.mrb[40].mxu1  ;;  %v12117_v3 = vpop.f32.mrb[44].mxu0 }
 0x1db   : > { %v1486_v6 = vpop.f32.mrb[41].mxu1  ;;  %v1805_v32 = vpop.f32.mrb[45].mxu0 }
 0x1dc   : > { %v12034_v14 = vpop.f32.mrb[42].mxu1  ;;  %v12118_v17 = vpop.f32.mrb[46].mxu0  ;;  %v15003_v25 = vadd.f32 %v1791_v49, %v1486_v6 }
 0x1dd   : > { %v1489_v36 = vpop.f32.mrb[43].mxu1  ;;  %v1808_v26 = vpop.f32.mrb[47].mxu0 }
 0x1de   : > { %v15005_v33 = vadd.f32 %v1794_v61, %v1489_v36 }
 0x1df   : > { %12236 = vmatmul.mubr.msk.bf16.gmra.mrb[148].mxu1 %vm14399_vm8, %v14753_v47  ;;  %12320 = vmatmul.mubr.msk.bf16.gmra.mrb[152].mxu0 %vm14399_vm8, %v14753_v47 }
 0x1e0   : > { %12239 = vmatprep.mubr.msk.bf16.mxu1 %vm14391_vm7, %v14658_v56  ;;  %12323 = vmatprep.mubr.msk.bf16.mxu0 %vm14391_vm7, %v14658_v56 }
 0x1e2   : > { %v12037_v11 = vpop.f32.mrb[44].mxu1  ;;  %v12121_v38 = vpop.f32.mrb[48].mxu0 }
 0x1e3   : > { %v1500_v58 = vpop.f32.mrb[45].mxu1  ;;  %v1819_v45 = vpop.f32.mrb[49].mxu0 }
 0x1e4   : > { %v12038_v4 = vpop.f32.mrb[46].mxu1  ;;  %v12122_v63 = vpop.f32.mrb[50].mxu0  ;;  %v15019_v59 = vadd.f32 %v1805_v32, %v1500_v58 }
 0x1e5   : > { %v1503_v49 = vpop.f32.mrb[47].mxu1  ;;  %v1822_v51 = vpop.f32.mrb[51].mxu0 }
 0x1e6   : > { %v15021_v53 = vadd.f32 %v1808_v26, %v1503_v49  ;;  %v14063_v26 = vld [vmem:[%s17537_s3 + $0x1c8] sm:$0xff]  }
 0x1e7   : > { %12240 = vmatmul.mubr.msk.bf16.gmra.mrb[152].mxu1 %vm14399_vm8, %v14768_v28  ;;  %12324 = vmatmul.mubr.msk.bf16.gmra.mrb[156].mxu0 %vm14399_vm8, %v14768_v28 }
 0x1e8   : > { %12243 = vmatprep.mubr.bf16.mxu1 %v17546_v50  ;;  %12343 = vmatprep.mubr.bf16.mxu0 %v17546_v50 }
 0x1ea   : > { %v12041_v57 = vpop.f32.mrb[48].mxu1  ;;  %v12125_v61 = vpop.f32.mrb[52].mxu0 }
 0x1eb   : > { %v1514_v0 = vpop.f32.mrb[49].mxu1  ;;  %v1833_v3 = vpop.f32.mrb[53].mxu0 }
 0x1ec   : > { %v12042_v6 = vpop.f32.mrb[50].mxu1  ;;  %v12126_v32 = vpop.f32.mrb[54].mxu0  ;;  %v15031_v14 = vadd.f32 %v1819_v45, %v1514_v0  ;;  %v14065_v45 = vld [vmem:[%s17537_s3 + $0x1d0] sm:$0xff]  }
 0x1ed   : > { %v1517_v17 = vpop.f32.mrb[51].mxu1  ;;  %v1836_v36 = vpop.f32.mrb[55].mxu0  ;;  %v14057_v6 = vld [vmem:[%s17537_s3 + $0x88] sm:$0xff]   ;;  %v14058_v32 = vld [vmem:[%s17537_s3 + $0x90] sm:$0xff]  }
 0x1ee   : > { %v15036_v11 = vadd.f32 %v1822_v51, %v1517_v17 }
 0x1ef   : > { %12244 = vmatmul.mubr.bf16.gmra.mrb[156].mxu1 %v17546_v50  ;;  %12344 = vmatmul.mubr.bf16.vlgmr.msra.gmra.mrb[96].mxu0 %v17546_v50 }
 0x1f0   : > { %12347 = vmatprep.mubr.msk.bf16.mxu0 %vm14391_vm7, %v14395_v16  ;;  %12503 = vmatprep.mubr.msk.bf16.mxu1 %vm14391_vm7, %v14395_v16 }
 0x1f1   : > { %12408 = vmatpush3.bf16.msra.mxu0 %v14972_v62 }
 0x1f2   : > { %v12045_v38 = vpop.f32.mrb[52].mxu1  ;;  %v12129_v58 = vpop.f32.mrb[56].mxu0  ;;  %12409 = vmatprep.subr.bf16.mxu0 %v14063_v26 }
 0x1f3   : > { %v1528_v4 = vpop.f32.mrb[53].mxu1  ;;  %v1847_v63 = vpop.f32.mrb[57].mxu0 }
 0x1f4   : > { %v12046_v49 = vpop.f32.mrb[54].mxu1  ;;  %v12130_v51 = vpop.f32.mrb[58].mxu0  ;;  %v15050_v57 = vadd.f32 %v1833_v3, %v1528_v4  ;;  %v14066_v3 = vld [vmem:[%s17537_s3 + $0x1d8] sm:$0xff]  }
 0x1f5   : > { %v1531_v61 = vpop.f32.mrb[55].mxu1  ;;  %v1850_v0 = vpop.f32.mrb[59].mxu0  ;;  %12410 = vmatpush3.bf16.msra.mxu0 %v14063_v26 }
 0x1f6   : > { %12411 = vmatprep.subr.bf16.mxu0 %v14065_v45  ;;  %v15055_v62 = vadd.f32 %v1836_v36, %v1531_v61  ;;  %v14067_v61 = vld [vmem:[%s17537_s3 + $0x1e0] sm:$0xff]  }
 0x1f7   : > { %12348 = vmatmul.mubr.msk.bf16.gmra.mrb[100].mxu0 %vm14399_vm8, %v14404_v21  ;;  %12504 = vmatmul.mubr.msk.bf16.vlgmr.msra.gmra.mrb[160].mxu1 %vm14399_vm8, %v14404_v21 }
 0x1f8   : > { %12568 = vmatpush3.bf16.msra.mxu1 %v14876_v24  ;;  %12351 = vmatprep.mubr.msk.bf16.mxu0 %vm14391_vm7, %v14429_v37 }
 0x1f9   : > { %12507 = vmatprep.mubr.msk.bf16.mxu1 %vm14391_vm7, %v14429_v37  ;;  %12569 = vmatprep.subr.bf16.mxu1 %v14057_v6 }
 0x1fa   : > { %v12049_v17 = vpop.f32.mrb[56].mxu1  ;;  %v12133_v36 = vpop.f32.mrb[60].mxu0  ;;  %12412 = vmatpush3.bf16.msra.mxu0 %v14065_v45 }
 0x1fb   : > { %v1542_v26 = vpop.f32.mrb[57].mxu1  ;;  %v1861_v38 = vpop.f32.mrb[61].mxu0  ;;  %12413 = vmatprep.subr.bf16.mxu0 %v14066_v3  ;;  %v14059_v17 = vld [vmem:[%s17537_s3 + $0x98] sm:$0xff]  }
 0x1fc   : > { %v12050_v24 = vpop.f32.mrb[58].mxu1  ;;  %v12134_v58 = vpop.f32.mrb[62].mxu0  ;;  %12570 = vmatpush3.bf16.msra.mxu1 %v14057_v6  ;;  %v15076_v4 = vadd.f32 %v1847_v63, %v1542_v26  ;;  %v14068_v63 = vld [vmem:[%s17537_s3 + $0x1e8] sm:$0xff]  }
 0x1fd   : > { %v1545_v49 = vpop.f32.mrb[59].mxu1  ;;  %v1864_v51 = vpop.f32.mrb[63].mxu0  ;;  %12571 = vmatprep.subr.bf16.mxu1 %v14058_v32 }
 0x1fe   : > { %12414 = vmatpush3.bf16.msra.mxu0 %v14066_v3  ;;  %v15084_v45 = vadd.f32 %v1850_v0, %v1545_v49  ;;  %v14060_v3 = vld [vmem:[%s17537_s3 + $0xa0] sm:$0xff]  }
 0x1ff   : > { %12352 = vmatmul.mubr.msk.bf16.gmra.mrb[104].mxu0 %vm14399_vm8, %v14434_v42  ;;  %12508 = vmatmul.mubr.msk.bf16.gmra.mrb[164].mxu1 %vm14399_vm8, %v14434_v42 }
 0x200   : > { %12355 = vmatprep.mubr.msk.bf16.mxu0 %vm14391_vm7, %v14459_v1  ;;  %12511 = vmatprep.mubr.msk.bf16.mxu1 %vm14391_vm7, %v14459_v1 }
 0x201   : > { %12572 = vmatpush3.bf16.msra.mxu1 %v14058_v32  ;;  %12415 = vmatprep.subr.bf16.mxu0 %v14067_v61  ;;  %v14070_v32 = vld [vmem:[%s17537_s3 + $0x1f0] sm:$0xff]  }
 0x202   : > { %v12053_v0 = vpop.f32.mrb[60].mxu1  ;;  %v12137_v6 = vpop.f32.mrb[64].mxu0  ;;  %12573 = vmatprep.subr.bf16.mxu1 %v14059_v17  ;;  %12416 = vmatpush3.bf16.msra.mxu0 %v14067_v61 }
 0x203   : > { %v1556_v36 = vpop.f32.mrb[61].mxu1  ;;  %v1875_v26 = vpop.f32.mrb[65].mxu0  ;;  %12417 = vmatprep.subr.bf16.mxu0 %v14068_v63  ;;  %v14061_v0 = vld [vmem:[%s17537_s3 + $0xa8] sm:$0xff]  }
 0x204   : > { %v12054_v24 = vpop.f32.mrb[62].mxu1  ;;  %v12138_v58 = vpop.f32.mrb[66].mxu0  ;;  %v15104_v49 = vadd.f32 %v1861_v38, %v1556_v36  ;;  %v14071_v38 = vld [vmem:[%s17537_s3 + $0x1f8] sm:$0xff]  }
 0x205   : > { %v1559_v20 = vpop.f32.mrb[63].mxu1  ;;  %v1878_v50 = vpop.f32.mrb[67].mxu0  ;;  %12574 = vmatpush3.bf16.msra.mxu1 %v14059_v17  ;;  %v14064_v17 = vld [vmem:[%s17537_s3 + $0xb0] sm:$0xff]  }
 0x206   : > { %17553 = vst [vmem:[#allocation3_spill] sm:$0xff] %v15104_v49  ;;  %12575 = vmatprep.subr.bf16.mxu1 %v14060_v3  ;;  %12418 = vmatpush3.bf16.msra.mxu0 %v14068_v63  ;;  %v15112_v61 = vadd.f32 %v1864_v51, %v1559_v20 }
 0x207   : > { %12356 = vmatmul.mubr.msk.bf16.gmra.mrb[108].mxu0 %vm14399_vm8, %v14464_v7  ;;  %12512 = vmatmul.mubr.msk.bf16.gmra.mrb[168].mxu1 %vm14399_vm8, %v14464_v7 }
 0x208   : > { %17554 = vst [vmem:[#allocation4_spill] sm:$0xff] %v15112_v61  ;;  %12359 = vmatprep.mubr.msk.bf16.mxu0 %vm14391_vm7, %v14491_v35  ;;  %12515 = vmatprep.mubr.msk.bf16.mxu1 %vm14391_vm7, %v14491_v35 }
 0x209   : > { %12576 = vmatpush3.bf16.msra.mxu1 %v14060_v3  ;;  %12419 = vmatprep.subr.bf16.mxu0 %v14070_v32  ;;  %v14069_v3 = vld [vmem:[%s17537_s3 + $0xb8] sm:$0xff]  }
 0x20a   : > { %v12057_v20 = vpop.f32.mrb[64].mxu1  ;;  %v12141_v51 = vpop.f32.mrb[68].mxu0  ;;  %12577 = vmatprep.subr.bf16.mxu1 %v14061_v0  ;;  %12420 = vmatpush3.bf16.msra.mxu0 %v14070_v32  ;;  %v15154_v32 = vld [vmem:[%s17537_s3 + $0x200] sm:$0xff]  }
 0x20b   : > { %v1570_v63 = vpop.f32.mrb[65].mxu1  ;;  %v1889_v6 = vpop.f32.mrb[69].mxu0  ;;  %12421 = vmatprep.subr.bf16.mxu0 %v14071_v38 }
 0x20c   : > { %v12058_v36 = vpop.f32.mrb[66].mxu1  ;;  %v12142_v24 = vpop.f32.mrb[70].mxu0  ;;  %v15132_v58 = vadd.f32 %v1875_v26, %v1570_v63 }
 0x20d   : > { %v1573_v61 = vpop.f32.mrb[67].mxu1  ;;  %v1892_v49 = vpop.f32.mrb[71].mxu0  ;;  %12578 = vmatpush3.bf16.msra.mxu1 %v14061_v0 }
 0x20e   : > { %12579 = vmatprep.subr.bf16.mxu1 %v14064_v17  ;;  %12422 = vmatpush3.bf16.msra.mxu0 %v14071_v38  ;;  %v15137_v20 = vadd.f32 %v1878_v50, %v1573_v61 }
 0x20f   : > { %12360 = vmatmul.mubr.msk.bf16.gmra.mrb[112].mxu0 %vm14399_vm8, %v14496_v43  ;;  %12516 = vmatmul.mubr.msk.bf16.gmra.mrb[172].mxu1 %vm14399_vm8, %v14496_v43 }
 0x210   : > { %12363 = vmatprep.mubr.msk.bf16.mxu0 %vm14391_vm7, %v14525_v5  ;;  %12519 = vmatprep.mubr.msk.bf16.mxu1 %vm14391_vm7, %v14525_v5 }
 0x211   : > { %12580 = vmatpush3.bf16.msra.mxu1 %v14064_v17 }
 0x212   : > { %v12061_v26 = vpop.f32.mrb[68].mxu1  ;;  %v12145_v50 = vpop.f32.mrb[72].mxu0  ;;  %12581 = vmatprep.subr.bf16.mxu1 %v14069_v3 }
 0x213   : > { %v1584_v0 = vpop.f32.mrb[69].mxu1  ;;  %v1903_v61 = vpop.f32.mrb[73].mxu0 }
 0x214   : > { %v12062_v38 = vpop.f32.mrb[70].mxu1  ;;  %v12146_v51 = vpop.f32.mrb[74].mxu0  ;;  %v15156_v63 = vadd.f32 %v1889_v6, %v1584_v0 }
 0x215   : > { %v1587_v36 = vpop.f32.mrb[71].mxu1  ;;  %v1906_v24 = vpop.f32.mrb[75].mxu0  ;;  %12582 = vmatpush3.bf16.msra.mxu1 %v14069_v3 }
 0x216   : > { %12647 = vmatprep.subr.bf16.mxu1 %v15154_v32  ;;  %v15159_v17 = vadd.f32 %v1892_v49, %v1587_v36 }
 0x217   : > { %12364 = vmatmul.mubr.msk.bf16.gmra.mrb[116].mxu0 %vm14399_vm8, %v14530_v13  ;;  %12520 = vmatmul.mubr.msk.bf16.gmra.mrb[176].mxu1 %vm14399_vm8, %v14530_v13 }
 0x218   : > { %17555 = vst [vmem:[#allocation5_spill] sm:$0xff] %v15159_v17  ;;  %12367 = vmatprep.mubr.msk.bf16.mxu0 %vm14391_vm7, %v14552_v44  ;;  %12523 = vmatprep.mubr.msk.bf16.mxu1 %vm14391_vm7, %v14552_v44 }
 0x21a   : > { %v12065_v6 = vpop.f32.mrb[72].mxu1  ;;  %v12149_v3 = vpop.f32.mrb[76].mxu0 }
 0x21b   : > { %v1598_v49 = vpop.f32.mrb[73].mxu1  ;;  %v1917_v26 = vpop.f32.mrb[77].mxu0 }
 0x21c   : > { %v12066_v50 = vpop.f32.mrb[74].mxu1  ;;  %v12150_v0 = vpop.f32.mrb[78].mxu0  ;;  %v15173_v38 = vadd.f32 %v1903_v61, %v1598_v49 }
 0x21d   : > { %v1601_v51 = vpop.f32.mrb[75].mxu1  ;;  %v1920_v36 = vpop.f32.mrb[79].mxu0 }
 0x21e   : > { %17556 = vst [vmem:[#allocation6_spill] sm:$0xff] %v15173_v38  ;;  %v15175_v17 = vadd.f32 %v1906_v24, %v1601_v51 }
 0x21f   : > { %12368 = vmatmul.mubr.msk.bf16.gmra.mrb[120].mxu0 %vm14399_vm8, %v14557_v52  ;;  %12524 = vmatmul.mubr.msk.bf16.gmra.mrb[180].mxu1 %vm14399_vm8, %v14557_v52 }
 0x220   : > { %17557 = vst [vmem:[#allocation7_spill] sm:$0xff] %v15175_v17  ;;  %12371 = vmatprep.mubr.msk.bf16.mxu0 %vm14391_vm7, %v14578_v23  ;;  %12527 = vmatprep.mubr.msk.bf16.mxu1 %vm14391_vm7, %v14578_v23 }
 0x222   : > { %v12069_v61 = vpop.f32.mrb[76].mxu1  ;;  %v12153_v6 = vpop.f32.mrb[80].mxu0 }
 0x223   : > { %v1612_v24 = vpop.f32.mrb[77].mxu1  ;;  %v1931_v3 = vpop.f32.mrb[81].mxu0 }
 0x224   : > { %v12070_v49 = vpop.f32.mrb[78].mxu1  ;;  %v12154_v50 = vpop.f32.mrb[82].mxu0  ;;  %v15189_v0 = vadd.f32 %v1917_v26, %v1612_v24 }
 0x225   : > { %v1615_v51 = vpop.f32.mrb[79].mxu1  ;;  %v1934_v17 = vpop.f32.mrb[83].mxu0 }
 0x226   : > { %17558 = vst [vmem:[#allocation8_spill] sm:$0xff] %v15189_v0  ;;  %v15191_v38 = vadd.f32 %v1920_v36, %v1615_v51 }
 0x227   : > { %12372 = vmatmul.mubr.msk.bf16.gmra.mrb[124].mxu0 %vm14399_vm8, %v14583_v30  ;;  %12528 = vmatmul.mubr.msk.bf16.gmra.mrb[184].mxu1 %vm14399_vm8, %v14583_v30 }
 0x228   : > { %17559 = vst [vmem:[#allocation9_spill] sm:$0xff] %v15191_v38  ;;  %12375 = vmatprep.mubr.msk.bf16.mxu0 %vm14391_vm7, %v14606_v2  ;;  %12531 = vmatprep.mubr.msk.bf16.mxu1 %vm14391_vm7, %v14606_v2 }
 0x22a   : > { %v12073_v26 = vpop.f32.mrb[80].mxu1  ;;  %v12157_v61 = vpop.f32.mrb[84].mxu0 }
 0x22b   : > { %v1626_v36 = vpop.f32.mrb[81].mxu1  ;;  %v1945_v6 = vpop.f32.mrb[85].mxu0 }
 0x22c   : > { %v12074_v24 = vpop.f32.mrb[82].mxu1  ;;  %v12158_v49 = vpop.f32.mrb[86].mxu0  ;;  %v15205_v50 = vadd.f32 %v1931_v3, %v1626_v36 }
 0x22d   : > { %v1629_v51 = vpop.f32.mrb[83].mxu1  ;;  %v1948_v38 = vpop.f32.mrb[87].mxu0 }
 0x22e   : > { %17560 = vst [vmem:[#allocation10_spill] sm:$0xff] %v15205_v50  ;;  %v15207_v0 = vadd.f32 %v1934_v17, %v1629_v51 }
 0x22f   : > { %12376 = vmatmul.mubr.msk.bf16.gmra.mrb[128].mxu0 %vm14399_vm8, %v14610_v8  ;;  %12532 = vmatmul.mubr.msk.bf16.gmra.mrb[188].mxu1 %vm14399_vm8, %v14610_v8 }
 0x230   : > { %17561 = vst [vmem:[#allocation11_spill] sm:$0xff] %v15207_v0  ;;  %12379 = vmatprep.mubr.msk.bf16.mxu0 %vm14391_vm7, %v14467_v10  ;;  %12535 = vmatprep.mubr.msk.bf16.mxu1 %vm14391_vm7, %v14467_v10 }
 0x232   : > { %v12077_v3 = vpop.f32.mrb[84].mxu1  ;;  %v12161_v26 = vpop.f32.mrb[88].mxu0 }
 0x233   : > { %v1640_v17 = vpop.f32.mrb[85].mxu1  ;;  %v1959_v61 = vpop.f32.mrb[89].mxu0 }
 0x234   : > { %v12078_v36 = vpop.f32.mrb[86].mxu1  ;;  %v12162_v24 = vpop.f32.mrb[90].mxu0  ;;  %v15221_v49 = vadd.f32 %v1945_v6, %v1640_v17 }
 0x235   : > { %v1643_v51 = vpop.f32.mrb[87].mxu1  ;;  %v1962_v0 = vpop.f32.mrb[91].mxu0 }
 0x236   : > { %17562 = vst [vmem:[#allocation12_spill] sm:$0xff] %v15221_v49  ;;  %v15223_v50 = vadd.f32 %v1948_v38, %v1643_v51 }
 0x237   : > { %12380 = vmatmul.mubr.msk.bf16.gmra.mrb[132].mxu0 %vm14399_vm8, %v14641_v40  ;;  %12536 = vmatmul.mubr.msk.bf16.gmra.mrb[192].mxu1 %vm14399_vm8, %v14641_v40 }
 0x238   : > { %17563 = vst [vmem:[#allocation13_spill] sm:$0xff] %v15223_v50  ;;  %12383 = vmatprep.mubr.msk.bf16.mxu0 %vm14391_vm7, %v14499_v46  ;;  %12539 = vmatprep.mubr.msk.bf16.mxu1 %vm14391_vm7, %v14499_v46 }
 0x23a   : > { %v12081_v6 = vpop.f32.mrb[88].mxu1  ;;  %v12165_v3 = vpop.f32.mrb[92].mxu0 }
 0x23b   : > { %v1654_v38 = vpop.f32.mrb[89].mxu1  ;;  %v1973_v26 = vpop.f32.mrb[93].mxu0 }
 0x23c   : > { %v12082_v17 = vpop.f32.mrb[90].mxu1  ;;  %v12166_v36 = vpop.f32.mrb[94].mxu0  ;;  %v15237_v24 = vadd.f32 %v1959_v61, %v1654_v38 }
 0x23d   : > { %v1657_v51 = vpop.f32.mrb[91].mxu1  ;;  %v1976_v50 = vpop.f32.mrb[95].mxu0 }
 0x23e   : > { %v15239_v49 = vadd.f32 %v1962_v0, %v1657_v51 }
 0x23f   : > { %12384 = vmatmul.mubr.msk.bf16.gmra.mrb[136].mxu0 %vm14399_vm8, %v14661_v60  ;;  %12540 = vmatmul.mubr.msk.bf16.gmra.mrb[196].mxu1 %vm14399_vm8, %v14661_v60 }
 0x240   : > { %12387 = vmatprep.mubr.msk.bf16.mxu0 %vm14391_vm7, %v14533_v18  ;;  %12543 = vmatprep.mubr.msk.bf16.mxu1 %vm14391_vm7, %v14533_v18 }
 0x242   : > { %v12085_v61 = vpop.f32.mrb[92].mxu1 }
 0x243   : > { %v1668_v6 = vpop.f32.mrb[93].mxu1 }
 0x244   : > { %v12086_v0 = vpop.f32.mrb[94].mxu1  ;;  %v15253_v3 = vadd.f32 %v1973_v26, %v1668_v6 }
 0x245   : > { %v1671_v38 = vpop.f32.mrb[95].mxu1 }
 0x246   : > { %v15255_v17 = vadd.f32 %v1976_v50, %v1671_v38 }
 0x247   : > { %12388 = vmatmul.mubr.msk.bf16.gmra.mrb[140].mxu0 %vm14399_vm8, %v14680_v12  ;;  %12544 = vmatmul.mubr.msk.bf16.gmra.mrb[200].mxu1 %vm14399_vm8, %v14680_v12 }
 0x248   : > { %12391 = vmatprep.mubr.msk.bf16.mxu0 %vm14391_vm7, %v14560_v55  ;;  %12547 = vmatprep.mubr.msk.bf16.mxu1 %vm14391_vm7, %v14560_v55 }
 0x24a   : > { %v12185_v26 = vpop.f32.mrb[96].mxu1 }
 0x24b   : > { %v2085_v36 = vpop.f32.mrb[97].mxu1 }
 0x24c   : > { %v15270_v50 = vadd.f32 %v2085_v36, %v14964_v41  ;;  %v12186_v51 = vpop.f32.mrb[98].mxu1 }
 0x24d   : > { %v2088_v61 = vpop.f32.mrb[99].mxu1 }
 0x24e   : > { %v15273_v6 = vadd.f32 %v2088_v61, %v14967_v48 }
 0x24f   : > { %12392 = vmatmul.mubr.msk.bf16.gmra.mrb[144].mxu0 %vm14399_vm8, %v14699_v22  ;;  %12548 = vmatmul.mubr.msk.bf16.gmra.mrb[204].mxu1 %vm14399_vm8, %v14699_v22 }
 0x250   : > { %12395 = vmatprep.mubr.msk.bf16.mxu0 %vm14391_vm7, %v14586_v34  ;;  %12551 = vmatprep.mubr.msk.bf16.mxu1 %vm14391_vm7, %v14586_v34 }
 0x252   : > { %v12189_v41 = vpop.f32.mrb[100].mxu1 }
 0x253   : > { %v2099_v0 = vpop.f32.mrb[101].mxu1 }
 0x254   : > { %v15288_v48 = vadd.f32 %v2099_v0, %v14987_v54  ;;  %v12190_v38 = vpop.f32.mrb[102].mxu1 }
 0x255   : > { %v2102_v26 = vpop.f32.mrb[103].mxu1 }
 0x256   : > { %v15291_v36 = vadd.f32 %v2102_v26, %v14989_v29 }
 0x257   : > { %12396 = vmatmul.mubr.msk.bf16.gmra.mrb[148].mxu0 %vm14399_vm8, %v14719_v27  ;;  %12552 = vmatmul.mubr.msk.bf16.gmra.mrb[208].mxu1 %vm14399_vm8, %v14719_v27 }
 0x258   : > { %12399 = vmatprep.mubr.msk.bf16.mxu0 %vm14391_vm7, %v14612_v9  ;;  %12555 = vmatprep.mubr.msk.bf16.mxu1 %vm14391_vm7, %v14612_v9 }
 0x25a   : > { %v12193_v54 = vpop.f32.mrb[104].mxu1 }
 0x25b   : > { %v2113_v51 = vpop.f32.mrb[105].mxu1 }
 0x25c   : > { %v15306_v29 = vadd.f32 %v2113_v51, %v15003_v25  ;;  %v12194_v61 = vpop.f32.mrb[106].mxu1 }
 0x25d   : > { %v2116_v41 = vpop.f32.mrb[107].mxu1 }
 0x25e   : > { %v15309_v0 = vadd.f32 %v2116_v41, %v15005_v33 }
 0x25f   : > { %12400 = vmatmul.mubr.msk.bf16.gmra.mrb[152].mxu0 %vm14399_vm8, %v14736_v39  ;;  %12556 = vmatmul.mubr.msk.bf16.gmra.mrb[212].mxu1 %vm14399_vm8, %v14736_v39 }
 0x260   : > { %12403 = vmatprep.mubr.msk.bf16.mxu0 %vm14391_vm7, %v14637_v31  ;;  %12559 = vmatprep.mubr.msk.bf16.mxu1 %vm14391_vm7, %v14637_v31 }
 0x262   : > { %v12197_v25 = vpop.f32.mrb[108].mxu1 }
 0x263   : > { %v2127_v38 = vpop.f32.mrb[109].mxu1 }
 0x264   : > { %v15324_v33 = vadd.f32 %v2127_v38, %v15019_v59  ;;  %v12198_v26 = vpop.f32.mrb[110].mxu1 }
 0x265   : > { %v2130_v54 = vpop.f32.mrb[111].mxu1  ;;  %v17564_v26 = vmov 0.0|0.0  }
 0x266   : > { %v15327_v51 = vadd.f32 %v2130_v54, %v15021_v53 }
 0x267   : > { %12404 = vmatmul.mubr.msk.bf16.gmra.mrb[156].mxu0 %vm14399_vm8, %v14753_v47  ;;  %12560 = vmatmul.mubr.msk.bf16.gmra.mrb[216].mxu1 %vm14399_vm8, %v14753_v47 }
 0x268   : > { %12423 = vmatprep.mubr.msk.bf16.mxu0 %vm14391_vm7, %v14429_v37  ;;  %12563 = vmatprep.mubr.msk.bf16.mxu1 %vm14391_vm7, %v14658_v56 }
 0x26a   : > { %v12201_v59 = vpop.f32.mrb[112].mxu1 }
 0x26b   : > { %v2141_v61 = vpop.f32.mrb[113].mxu1 }
 0x26c   : > { %v15342_v53 = vadd.f32 %v2141_v61, %v15031_v14  ;;  %v12202_v41 = vpop.f32.mrb[114].mxu1 }
 0x26d   : > { %v2144_v25 = vpop.f32.mrb[115].mxu1  ;;  %v14073_v41 = vld [vmem:[%s17537_s3 + $0x208] sm:$0xff]  }
 0x26e   : > { %v15345_v38 = vadd.f32 %v2144_v25, %v15036_v11 }
 0x26f   : > { %12424 = vmatmul.mubr.msk.bf16.vlgmr.msra.gmra.mrb[96].mxu0 %vm14399_vm8, %v14434_v42  ;;  %12564 = vmatmul.mubr.msk.bf16.gmra.mrb[220].mxu1 %vm14399_vm8, %v14768_v28 }
 0x270   : > { %12427 = vmatprep.mubr.msk.bf16.mxu0 %vm14391_vm7, %v14459_v1  ;;  %12583 = vmatprep.mubr.bf16.mxu1 %v17564_v26 }
 0x272   : > { %v12205_v14 = vpop.f32.mrb[116].mxu1 }
 0x273   : > { %v2155_v54 = vpop.f32.mrb[117].mxu1 }
 0x274   : > { %v15358_v59 = vadd.f32 %v2155_v54, %v15050_v57  ;;  %v12206_v11 = vpop.f32.mrb[118].mxu1  ;;  %v14074_v57 = vld [vmem:[%s17537_s3 + $0x210] sm:$0xff]  }
 0x275   : > { %v2158_v61 = vpop.f32.mrb[119].mxu1 }
 0x276   : > { %v15364_v25 = vadd.f32 %v2158_v61, %v15055_v62 }
 0x277   : > { %12428 = vmatmul.mubr.msk.bf16.gmra.mrb[100].mxu0 %vm14399_vm8, %v14464_v7  ;;  %12584 = vmatmul.mubr.bf16.vlgmr.msra.gmra.mrb[160].mxu1 %v17564_v26 }
 0x278   : > { %12648 = vmatpush3.bf16.msra.mxu1 %v15154_v32  ;;  %12431 = vmatprep.mubr.msk.bf16.mxu0 %vm14391_vm7, %v14491_v35 }
 0x279   : > { %12587 = vmatprep.mubr.msk.bf16.mxu1 %vm14391_vm7, %v14395_v16  ;;  %12649 = vmatprep.subr.bf16.mxu1 %v14073_v41  ;;  %v14075_v16 = vld [vmem:[%s17537_s3 + $0x218] sm:$0xff]  }
 0x27a   : > { %v12209_v62 = vpop.f32.mrb[120].mxu1 }
 0x27b   : > { %v2169_v14 = vpop.f32.mrb[121].mxu1  ;;  %v17566_v62 = vld [vmem:[#allocation3_spill] sm:$0xff] }
 0x27c   : > { %v15381_v54 = vadd.f32 %v2169_v14, %v15076_v4  ;;  %v12210_v11 = vpop.f32.mrb[122].mxu1  ;;  %12650 = vmatpush3.bf16.msra.mxu1 %v14073_v41 }
 0x27d   : > { %v2172_v32 = vpop.f32.mrb[123].mxu1  ;;  %12651 = vmatprep.subr.bf16.mxu1 %v14074_v57 }
 0x27e   : > { %v15384_v61 = vadd.f32 %v2172_v32, %v15084_v45  ;;  %v14076_v45 = vld [vmem:[%s17537_s3 + $0x220] sm:$0xff]   ;;  %v17567_v32 = vld [vmem:[#allocation4_spill] sm:$0xff] }
 0x27f   : > { %12432 = vmatmul.mubr.msk.bf16.gmra.mrb[104].mxu0 %vm14399_vm8, %v14496_v43  ;;  %12588 = vmatmul.mubr.msk.bf16.gmra.mrb[164].mxu1 %vm14399_vm8, %v14404_v21 }
 0x280   : > { %17565 = vst [vmem:[#allocation14_spill] sm:$0xff] %v15384_v61  ;;  %12435 = vmatprep.mubr.msk.bf16.mxu0 %vm14391_vm7, %v14525_v5  ;;  %12591 = vmatprep.mubr.msk.bf16.mxu1 %vm14391_vm7, %v14429_v37 }
 0x281   : > { %12652 = vmatpush3.bf16.msra.mxu1 %v14074_v57  ;;  %v14077_v57 = vld [vmem:[%s17537_s3 + $0x228] sm:$0xff]  }
 0x282   : > { %v12213_v4 = vpop.f32.mrb[124].mxu1  ;;  %12653 = vmatprep.subr.bf16.mxu1 %v14075_v16 }
 0x283   : > { %v2183_v41 = vpop.f32.mrb[125].mxu1  ;;  %v14078_v4 = vld [vmem:[%s17537_s3 + $0x230] sm:$0xff]  }
 0x284   : > { %v15405_v14 = vadd.f32 %v2183_v41, %v17566_v62  ;;  %v12214_v21 = vpop.f32.mrb[126].mxu1 }
 0x285   : > { %v2186_v11 = vpop.f32.mrb[127].mxu1  ;;  %12654 = vmatpush3.bf16.msra.mxu1 %v14075_v16 }
 0x286   : > { %v15408_v61 = vadd.f32 %v2186_v11, %v17567_v32  ;;  %12655 = vmatprep.subr.bf16.mxu1 %v14076_v45 }
 0x287   : > { %12436 = vmatmul.mubr.msk.bf16.gmra.mrb[108].mxu0 %vm14399_vm8, %v14530_v13  ;;  %12592 = vmatmul.mubr.msk.bf16.gmra.mrb[168].mxu1 %vm14399_vm8, %v14434_v42 }
 0x288   : > { %12439 = vmatprep.mubr.msk.bf16.mxu0 %vm14391_vm7, %v14552_v44  ;;  %12595 = vmatprep.mubr.msk.bf16.mxu1 %vm14391_vm7, %v14459_v1 }
 0x289   : > { %12656 = vmatpush3.bf16.msra.mxu1 %v14076_v45  ;;  %v14079_v45 = vld [vmem:[%s17537_s3 + $0x238] sm:$0xff]  }
 0x28a   : > { %v12217_v16 = vpop.f32.mrb[128].mxu1  ;;  %12657 = vmatprep.subr.bf16.mxu1 %v14077_v57 }
 0x28b   : > { %v2197_v41 = vpop.f32.mrb[129].mxu1 }
 0x28c   : > { %v15429_v62 = vadd.f32 %v2197_v41, %v15132_v58  ;;  %v12218_v21 = vpop.f32.mrb[130].mxu1 }
 0x28d   : > { %v2200_v11 = vpop.f32.mrb[131].mxu1  ;;  %12658 = vmatpush3.bf16.msra.mxu1 %v14077_v57  ;;  %v17568_v21 = vld [vmem:[#allocation5_spill] sm:$0xff] }
 0x28e   : > { %v15432_v32 = vadd.f32 %v2200_v11, %v15137_v20  ;;  %12659 = vmatprep.subr.bf16.mxu1 %v14078_v4 }
 0x28f   : > { %12440 = vmatmul.mubr.msk.bf16.gmra.mrb[112].mxu0 %vm14399_vm8, %v14557_v52  ;;  %12596 = vmatmul.mubr.msk.bf16.gmra.mrb[172].mxu1 %vm14399_vm8, %v14464_v7 }
 0x290   : > { %12443 = vmatprep.mubr.msk.bf16.mxu0 %vm14391_vm7, %v14578_v23  ;;  %12599 = vmatprep.mubr.msk.bf16.mxu1 %vm14391_vm7, %v14491_v35 }
 0x291   : > { %12660 = vmatpush3.bf16.msra.mxu1 %v14078_v4 }
 0x292   : > { %v12221_v58 = vpop.f32.mrb[132].mxu1  ;;  %12661 = vmatprep.subr.bf16.mxu1 %v14079_v45 }
 0x293   : > { %v2211_v20 = vpop.f32.mrb[133].mxu1 }
 0x294   : > { %v15450_v57 = vadd.f32 %v2211_v20, %v15156_v63  ;;  %v12222_v16 = vpop.f32.mrb[134].mxu1 }
 0x295   : > { %v2214_v41 = vpop.f32.mrb[135].mxu1  ;;  %12662 = vmatpush3.bf16.msra.mxu1 %v14079_v45  ;;  %v17569_v45 = vld [vmem:[#allocation6_spill] sm:$0xff] }
 0x296   : > { %v15453_v11 = vadd.f32 %v2214_v41, %v17568_v21  ;;  %v17571_v41 = vld [vmem:[#allocation7_spill] sm:$0xff] }
 0x297   : > { %12444 = vmatmul.mubr.msk.bf16.gmra.mrb[116].mxu0 %vm14399_vm8, %v14583_v30  ;;  %12600 = vmatmul.mubr.msk.bf16.gmra.mrb[176].mxu1 %vm14399_vm8, %v14496_v43 }
 0x298   : > { %12447 = vmatprep.mubr.msk.bf16.mxu0 %vm14391_vm7, %v14606_v2  ;;  %12603 = vmatprep.mubr.msk.bf16.mxu1 %vm14391_vm7, %v14525_v5 }
 0x29a   : > { %v12225_v63 = vpop.f32.mrb[136].mxu1 }
 0x29b   : > { %v2225_v4 = vpop.f32.mrb[137].mxu1 }
 0x29c   : > { %v15468_v58 = vadd.f32 %v2225_v4, %v17569_v45  ;;  %v12226_v20 = vpop.f32.mrb[138].mxu1  ;;  %v17573_v45 = vld [vmem:[#allocation8_spill] sm:$0xff] }
 0x29d   : > { %v2228_v16 = vpop.f32.mrb[139].mxu1 }
 0x29e   : > { %17570 = vst [vmem:[#allocation3_spill] sm:$0xff] %v15468_v58  ;;  %v15471_v21 = vadd.f32 %v2228_v16, %v17571_v41 }
 0x29f   : > { %12448 = vmatmul.mubr.msk.bf16.gmra.mrb[120].mxu0 %vm14399_vm8, %v14610_v8  ;;  %12604 = vmatmul.mubr.msk.bf16.gmra.mrb[180].mxu1 %vm14399_vm8, %v14530_v13 }
 0x2a0   : > { %17572 = vst [vmem:[#allocation4_spill] sm:$0xff] %v15471_v21  ;;  %12451 = vmatprep.mubr.msk.bf16.mxu0 %vm14391_vm7, %v14467_v10  ;;  %12607 = vmatprep.mubr.msk.bf16.mxu1 %vm14391_vm7, %v14552_v44  ;;  %v17575_v21 = vld [vmem:[#allocation9_spill] sm:$0xff] }
 0x2a2   : > { %v12229_v63 = vpop.f32.mrb[140].mxu1 }
 0x2a3   : > { %v2239_v4 = vpop.f32.mrb[141].mxu1 }
 0x2a4   : > { %v15486_v20 = vadd.f32 %v2239_v4, %v17573_v45  ;;  %v12230_v16 = vpop.f32.mrb[142].mxu1 }
 0x2a5   : > { %v2242_v41 = vpop.f32.mrb[143].mxu1 }
 0x2a6   : > { %17574 = vst [vmem:[#allocation5_spill] sm:$0xff] %v15486_v20  ;;  %v15489_v58 = vadd.f32 %v2242_v41, %v17575_v21  ;;  %v17577_v21 = vld [vmem:[#allocation10_spill] sm:$0xff] }
 0x2a7   : > { %12452 = vmatmul.mubr.msk.bf16.gmra.mrb[124].mxu0 %vm14399_vm8, %v14641_v40  ;;  %12608 = vmatmul.mubr.msk.bf16.gmra.mrb[184].mxu1 %vm14399_vm8, %v14557_v52 }
 0x2a8   : > { %17576 = vst [vmem:[#allocation6_spill] sm:$0xff] %v15489_v58  ;;  %12455 = vmatprep.mubr.msk.bf16.mxu0 %vm14391_vm7, %v14499_v46  ;;  %12611 = vmatprep.mubr.msk.bf16.mxu1 %vm14391_vm7, %v14578_v23  ;;  %v17579_v58 = vld [vmem:[#allocation11_spill] sm:$0xff] }
 0x2aa   : > { %v12233_v63 = vpop.f32.mrb[144].mxu1 }
 0x2ab   : > { %v2253_v4 = vpop.f32.mrb[145].mxu1 }
 0x2ac   : > { %v15504_v45 = vadd.f32 %v2253_v4, %v17577_v21  ;;  %v12234_v16 = vpop.f32.mrb[146].mxu1 }
 0x2ad   : > { %v2256_v41 = vpop.f32.mrb[147].mxu1 }
 0x2ae   : > { %17578 = vst [vmem:[#allocation7_spill] sm:$0xff] %v15504_v45  ;;  %v15507_v20 = vadd.f32 %v2256_v41, %v17579_v58  ;;  %v17581_v58 = vld [vmem:[#allocation12_spill] sm:$0xff] }
 0x2af   : > { %12456 = vmatmul.mubr.msk.bf16.gmra.mrb[128].mxu0 %vm14399_vm8, %v14661_v60  ;;  %12612 = vmatmul.mubr.msk.bf16.gmra.mrb[188].mxu1 %vm14399_vm8, %v14583_v30 }
 0x2b0   : > { %17580 = vst [vmem:[#allocation8_spill] sm:$0xff] %v15507_v20  ;;  %12459 = vmatprep.mubr.msk.bf16.mxu0 %vm14391_vm7, %v14533_v18  ;;  %12615 = vmatprep.mubr.msk.bf16.mxu1 %vm14391_vm7, %v14606_v2  ;;  %v17582_v20 = vld [vmem:[#allocation13_spill] sm:$0xff] }
 0x2b2   : > { %v12237_v63 = vpop.f32.mrb[148].mxu1 }
 0x2b3   : > { %v2267_v4 = vpop.f32.mrb[149].mxu1 }
 0x2b4   : > { %v15522_v21 = vadd.f32 %v2267_v4, %v17581_v58  ;;  %v12238_v16 = vpop.f32.mrb[150].mxu1 }
 0x2b5   : > { %v2270_v41 = vpop.f32.mrb[151].mxu1 }
 0x2b6   : > { %v15525_v45 = vadd.f32 %v2270_v41, %v17582_v20 }
 0x2b7   : > { %12460 = vmatmul.mubr.msk.bf16.gmra.mrb[132].mxu0 %vm14399_vm8, %v14680_v12  ;;  %12616 = vmatmul.mubr.msk.bf16.gmra.mrb[192].mxu1 %vm14399_vm8, %v14610_v8 }
 0x2b8   : > { %12463 = vmatprep.mubr.msk.bf16.mxu0 %vm14391_vm7, %v14560_v55  ;;  %12619 = vmatprep.mubr.msk.bf16.mxu1 %vm14391_vm7, %v14467_v10 }
 0x2ba   : > { %v12241_v63 = vpop.f32.mrb[152].mxu1 }
 0x2bb   : > { %v2281_v4 = vpop.f32.mrb[153].mxu1 }
 0x2bc   : > { %v15540_v20 = vadd.f32 %v2281_v4, %v15237_v24  ;;  %v12242_v58 = vpop.f32.mrb[154].mxu1 }
 0x2bd   : > { %v2284_v16 = vpop.f32.mrb[155].mxu1 }
 0x2be   : > { %v15543_v41 = vadd.f32 %v2284_v16, %v15239_v49 }
 0x2bf   : > { %12464 = vmatmul.mubr.msk.bf16.gmra.mrb[136].mxu0 %vm14399_vm8, %v14699_v22  ;;  %12620 = vmatmul.mubr.msk.bf16.gmra.mrb[196].mxu1 %vm14399_vm8, %v14641_v40 }
 0x2c0   : > { %12467 = vmatprep.mubr.msk.bf16.mxu0 %vm14391_vm7, %v14586_v34  ;;  %12623 = vmatprep.mubr.msk.bf16.mxu1 %vm14391_vm7, %v14499_v46 }
 0x2c2   : > { %v12245_v24 = vpop.f32.mrb[156].mxu1 }
 0x2c3   : > { %v2295_v63 = vpop.f32.mrb[157].mxu1  ;;  %v14092_v24 = vld [vmem:[%s17539_s5 + $0x28] sm:$0xff]  }
 0x2c4   : > { %v15558_v49 = vadd.f32 %v2295_v63, %v15253_v3  ;;  %v12246_v4 = vpop.f32.mrb[158].mxu1  ;;  %v14080_v3 = vld [vmem:[%s17539_s5 + $0xc0] sm:$0xff]  }
 0x2c5   : > { %v2298_v58 = vpop.f32.mrb[159].mxu1  ;;  %12727 = vmatprep.subr.bf16.mxu0 %v14080_v3 }
 0x2c6   : > { %v15561_v16 = vadd.f32 %v2298_v58, %v15255_v17  ;;  %12728 = vmatpush3.bf16.msra.mxu0 %v14080_v3  ;;  %v14081_v17 = vld [vmem:[%s17539_s5 + $0xc8] sm:$0xff]  }
 0x2c7   : > { %12468 = vmatmul.mubr.msk.bf16.gmra.mrb[140].mxu0 %vm14399_vm8, %v14719_v27  ;;  %12624 = vmatmul.mubr.msk.bf16.gmra.mrb[200].mxu1 %vm14399_vm8, %v14661_v60 }
 0x2c8   : > { %12471 = vmatprep.mubr.msk.bf16.mxu0 %vm14391_vm7, %v14612_v9  ;;  %12627 = vmatprep.mubr.msk.bf16.mxu1 %vm14391_vm7, %v14533_v18 }
 0x2c9   : > { %12729 = vmatprep.subr.bf16.mxu0 %v14081_v17 }
 0x2ca   : > { %12730 = vmatpush3.bf16.msra.mxu0 %v14081_v17 }
 0x2cf   : > { %12472 = vmatmul.mubr.msk.bf16.gmra.mrb[144].mxu0 %vm14399_vm8, %v14736_v39  ;;  %12628 = vmatmul.mubr.msk.bf16.gmra.mrb[204].mxu1 %vm14399_vm8, %v14680_v12 }
 0x2d0   : > { %12475 = vmatprep.mubr.msk.bf16.mxu0 %vm14391_vm7, %v14637_v31  ;;  %12631 = vmatprep.mubr.msk.bf16.mxu1 %vm14391_vm7, %v14560_v55 }
 0x2d7   : > { %12476 = vmatmul.mubr.msk.bf16.gmra.mrb[148].mxu0 %vm14399_vm8, %v14753_v47  ;;  %12632 = vmatmul.mubr.msk.bf16.gmra.mrb[208].mxu1 %vm14399_vm8, %v14699_v22 }
 0x2d8   : > { %12479 = vmatprep.mubr.msk.bf16.mxu0 %vm14391_vm7, %v14658_v56  ;;  %12635 = vmatprep.mubr.msk.bf16.mxu1 %vm14391_vm7, %v14586_v34 }
 0x2df   : > { %12480 = vmatmul.mubr.msk.bf16.gmra.mrb[152].mxu0 %vm14399_vm8, %v14768_v28  ;;  %12636 = vmatmul.mubr.msk.bf16.gmra.mrb[212].mxu1 %vm14399_vm8, %v14719_v27 }
 0x2e0   : > { %12639 = vmatprep.mubr.msk.bf16.mxu1 %vm14391_vm7, %v14612_v9  ;;  %12483 = vmatprep.mubr.bf16.mxu0 %v17564_v26 }
 0x2e7   : > { %12484 = vmatmul.mubr.bf16.gmra.mrb[156].mxu0 %v17564_v26  ;;  %12640 = vmatmul.mubr.msk.bf16.gmra.mrb[216].mxu1 %vm14399_vm8, %v14736_v39 }
 0x2e8   : > { %12643 = vmatprep.mubr.msk.bf16.mxu1 %vm14391_vm7, %v14637_v31 }
 0x2ef   : > { %12644 = vmatmul.mubr.msk.bf16.gmra.mrb[220].mxu1 %vm14399_vm8, %v14753_v47 }
 0x2f0   : > { %12663 = vmatprep.mubr.msk.bf16.mxu1 %vm14391_vm7, %v14429_v37  ;;  %v14082_v37 = vld [vmem:[%s17539_s5 + $0xd0] sm:$0xff]  }
 0x2f1   : > { %12731 = vmatprep.subr.bf16.mxu0 %v14082_v37 }
 0x2f2   : > { %12732 = vmatpush3.bf16.msra.mxu0 %v14082_v37 }
 0x2f7   : > { %12664 = vmatmul.mubr.msk.bf16.vlgmr.msra.gmra.mrb[160].mxu1 %vm14399_vm8, %v14434_v42  ;;  %v14083_v42 = vld [vmem:[%s17539_s5 + $0xd8] sm:$0xff]  }
 0x2f8   : > { %12667 = vmatprep.mubr.msk.bf16.mxu1 %vm14391_vm7, %v14459_v1  ;;  %12733 = vmatprep.subr.bf16.mxu0 %v14083_v42  ;;  %v14084_v1 = vld [vmem:[%s17539_s5 + $0xe0] sm:$0xff]  }
 0x2f9   : > { %12734 = vmatpush3.bf16.msra.mxu0 %v14083_v42 }
 0x2fa   : > { %12735 = vmatprep.subr.bf16.mxu0 %v14084_v1 }
 0x2fd   : > { %12736 = vmatpush3.bf16.msra.mxu0 %v14084_v1 }
 0x2ff   : > { %12668 = vmatmul.mubr.msk.bf16.gmra.mrb[164].mxu1 %vm14399_vm8, %v14464_v7  ;;  %v14085_v7 = vld [vmem:[%s17539_s5 + $0xe8] sm:$0xff]  }
 0x300   : > { %12671 = vmatprep.mubr.msk.bf16.mxu1 %vm14391_vm7, %v14491_v35  ;;  %12737 = vmatprep.subr.bf16.mxu0 %v14085_v7  ;;  %v14086_v35 = vld [vmem:[%s17539_s5] sm:$0xff]  }
 0x301   : > { %12738 = vmatpush3.bf16.msra.mxu0 %v14085_v7  ;;  %12807 = vmatprep.subr.bf16.mxu1 %v14086_v35 }
 0x302   : > { %12808 = vmatpush3.bf16.msra.mxu1 %v14086_v35 }
 0x307   : > { %12672 = vmatmul.mubr.msk.bf16.gmra.mrb[168].mxu1 %vm14399_vm8, %v14496_v43  ;;  %v14089_v43 = vld [vmem:[%s17539_s5 + $0x10] sm:$0xff]  }
 0x308   : > { %12675 = vmatprep.mubr.msk.bf16.mxu1 %vm14391_vm7, %v14525_v5  ;;  %v14090_v5 = vld [vmem:[%s17539_s5 + $0x18] sm:$0xff]  }
 0x30f   : > { %12676 = vmatmul.mubr.msk.bf16.gmra.mrb[172].mxu1 %vm14399_vm8, %v14530_v13  ;;  %v14091_v13 = vld [vmem:[%s17539_s5 + $0x20] sm:$0xff]  }
 0x310   : > { %12679 = vmatprep.mubr.msk.bf16.mxu1 %vm14391_vm7, %v14552_v44 }
 0x317   : > { %12680 = vmatmul.mubr.msk.bf16.gmra.mrb[176].mxu1 %vm14399_vm8, %v14557_v52 }
 0x318   : > { %12683 = vmatprep.mubr.msk.bf16.mxu1 %vm14391_vm7, %v14578_v23 }
 0x31f   : > { %12684 = vmatmul.mubr.msk.bf16.gmra.mrb[180].mxu1 %vm14399_vm8, %v14583_v30 }
 0x320   : > { %12687 = vmatprep.mubr.msk.bf16.mxu1 %vm14391_vm7, %v14606_v2 }
 0x327   : > { %12688 = vmatmul.mubr.msk.bf16.gmra.mrb[184].mxu1 %vm14399_vm8, %v14610_v8 }
 0x328   : > { %12691 = vmatprep.mubr.msk.bf16.mxu1 %vm14391_vm7, %v14467_v10  ;;  %v14087_v10 = vld [vmem:[%s17539_s5 + $0x8] sm:$0xff]  }
 0x329   : > { %12809 = vmatprep.subr.bf16.mxu1 %v14087_v10 }
 0x32a   : > { %12810 = vmatpush3.bf16.msra.mxu1 %v14087_v10 }
 0x32b   : > { %12811 = vmatprep.subr.bf16.mxu1 %v14089_v43 }
 0x32e   : > { %12812 = vmatpush3.bf16.msra.mxu1 %v14089_v43 }
 0x32f   : > { %12692 = vmatmul.mubr.msk.bf16.gmra.mrb[188].mxu1 %vm14399_vm8, %v14641_v40  ;;  %12813 = vmatprep.subr.bf16.mxu1 %v14090_v5 }
 0x330   : > { %12695 = vmatprep.mubr.msk.bf16.mxu1 %vm14391_vm7, %v14499_v46  ;;  %v14088_v46 = vld [vmem:[%s17539_s5 + $0xf0] sm:$0xff]  }
 0x331   : > { %12739 = vmatprep.subr.bf16.mxu0 %v14088_v46 }
 0x332   : > { %12740 = vmatpush3.bf16.msra.mxu0 %v14088_v46  ;;  %12814 = vmatpush3.bf16.msra.mxu1 %v14090_v5 }
 0x333   : > { %12815 = vmatprep.subr.bf16.mxu1 %v14091_v13 }
 0x336   : > { %12816 = vmatpush3.bf16.msra.mxu1 %v14091_v13 }
 0x337   : > { %12696 = vmatmul.mubr.msk.bf16.gmra.mrb[192].mxu1 %vm14399_vm8, %v14661_v60  ;;  %12817 = vmatprep.subr.bf16.mxu1 %v14092_v24 }
 0x338   : > { %12699 = vmatprep.mubr.msk.bf16.mxu1 %vm14391_vm7, %v14533_v18 }
 0x33a   : > { %12818 = vmatpush3.bf16.msra.mxu1 %v14092_v24 }
 0x33f   : > { %12700 = vmatmul.mubr.msk.bf16.gmra.mrb[196].mxu1 %vm14399_vm8, %v14680_v12 }
 0x340   : > { %12703 = vmatprep.mubr.msk.bf16.mxu1 %vm14391_vm7, %v14560_v55 }
 0x342   : > { %v12425_v18 = vpop.f32.mrb[96].mxu0 }
 0x343   : > { %v3115_v44 = vpop.f32.mrb[97].mxu0  ;;  %v4516_v23 = vrot.slane %v12425_v18, 1 }
 0x344   : > { %v12426_v52 = vpop.f32.mrb[98].mxu0  ;;  %v4513_v30 = vrot.slane %v3115_v44, 1  ;;  %v14093_v44 = vld [vmem:[%s17539_s5 + $0xf8] sm:$0xff]  }
 0x345   : > { %v3118_v55 = vpop.f32.mrb[99].mxu0  ;;  %12741 = vmatprep.subr.bf16.mxu0 %v14093_v44 }
 0x346   : > { %v4514_v2 = vrot.slane %v3118_v55, 1  ;;  %12742 = vmatpush3.bf16.msra.mxu0 %v14093_v44 }
 0x347   : > { %12704 = vmatmul.mubr.msk.bf16.gmra.mrb[200].mxu1 %vm14399_vm8, %v14699_v22  ;;  %12887 = vmatprep.subr.bf16.mxu0 %v15801_v19 }
 0x348   : > { %v4515_v8 = vsel %vm4512_vm15, %v4513_v30, %v4514_v2  ;;  %v4517_v40 = vsel %vm4512_vm15, %v4514_v2, %v4516_v23  ;;  %12707 = vmatprep.mubr.msk.bf16.mxu1 %vm14391_vm7, %v14586_v34  ;;  %v14094_v34 = vld [vmem:[%s17539_s5 + $0x30] sm:$0xff]  }
 0x349   : > { %v15727_v60 = vadd.f32 %v4515_v8, %v15270_v50  ;;  %v15730_v12 = vadd.f32 %v4517_v40, %v15273_v6  ;;  %12819 = vmatprep.subr.bf16.mxu1 %v14094_v34 }
 0x34a   : > { %v12429_v22 = vpop.f32.mrb[100].mxu0  ;;  %12820 = vmatpush3.bf16.msra.mxu1 %v14094_v34 }
 0x34b   : > { %v3130_v63 = vpop.f32.mrb[101].mxu0  ;;  %v4521_v3 = vrot.slane %v12429_v22, 1 }
 0x34c   : > { %v12430_v4 = vpop.f32.mrb[102].mxu0  ;;  %v4518_v50 = vrot.slane %v3130_v63, 1 }
 0x34d   : > { %v3133_v58 = vpop.f32.mrb[103].mxu0 }
 0x34e   : > { %v4519_v17 = vrot.slane %v3133_v58, 1 }
 0x34f   : > { %12708 = vmatmul.mubr.msk.bf16.gmra.mrb[204].mxu1 %vm14399_vm8, %v14719_v27  ;;  %v14095_v27 = vld [vmem:[%s17539_s5 + $0x38] sm:$0xff]  }
 0x350   : > { %v4520_v6 = vsel %vm4512_vm15, %v4518_v50, %v4519_v17  ;;  %v4522_v37 = vsel %vm4512_vm15, %v4519_v17, %v4521_v3  ;;  %12711 = vmatprep.mubr.msk.bf16.mxu1 %vm14391_vm7, %v14612_v9  ;;  %12821 = vmatprep.subr.bf16.mxu1 %v14095_v27 }
 0x351   : > { %v15747_v42 = vadd.f32 %v4520_v6, %v15288_v48  ;;  %v15750_v1 = vadd.f32 %v4522_v37, %v15291_v36  ;;  %12822 = vmatpush3.bf16.msra.mxu1 %v14095_v27 }
 0x352   : > { %v12433_v7 = vpop.f32.mrb[104].mxu0 }
 0x353   : > { %v3145_v35 = vpop.f32.mrb[105].mxu0  ;;  %v4526_v46 = vrot.slane %v12433_v7, 1 }
 0x354   : > { %v12434_v10 = vpop.f32.mrb[106].mxu0  ;;  %v4523_v5 = vrot.slane %v3145_v35, 1 }
 0x355   : > { %v3148_v43 = vpop.f32.mrb[107].mxu0 }
 0x356   : > { %v4524_v9 = vrot.slane %v3148_v43, 1 }
 0x357   : > { %12712 = vmatmul.mubr.msk.bf16.gmra.mrb[208].mxu1 %vm14399_vm8, %v14736_v39 }
 0x358   : > { %v4525_v48 = vsel %vm4512_vm15, %v4523_v5, %v4524_v9  ;;  %v4527_v36 = vsel %vm4512_vm15, %v4524_v9, %v4526_v46  ;;  %12715 = vmatprep.mubr.msk.bf16.mxu1 %vm14391_vm7, %v14637_v31 }
 0x359   : > { %v15764_v13 = vadd.f32 %v4525_v48, %v15306_v29  ;;  %v15767_v18 = vadd.f32 %v4527_v36, %v15309_v0 }
 0x35a   : > { %v12437_v52 = vpop.f32.mrb[108].mxu0 }
 0x35b   : > { %v3160_v39 = vpop.f32.mrb[109].mxu0  ;;  %v4531_v30 = vrot.slane %v12437_v52, 1 }
 0x35c   : > { %v12438_v55 = vpop.f32.mrb[110].mxu0  ;;  %v4528_v2 = vrot.slane %v3160_v39, 1 }
 0x35d   : > { %v3163_v23 = vpop.f32.mrb[111].mxu0 }
 0x35e   : > { %v4529_v8 = vrot.slane %v3163_v23, 1 }
 0x35f   : > { %12716 = vmatmul.mubr.msk.bf16.gmra.mrb[212].mxu1 %vm14399_vm8, %v14753_v47 }
 0x360   : > { %v4530_v31 = vsel %vm4512_vm15, %v4528_v2, %v4529_v8  ;;  %v4532_v29 = vsel %vm4512_vm15, %v4529_v8, %v4531_v30  ;;  %12719 = vmatprep.mubr.msk.bf16.mxu1 %vm14391_vm7, %v14658_v56  ;;  %vm4705_vm7 = vcmask 1045504  }
 0x361   : > { %v15781_v0 = vadd.f32 %v4530_v31, %v15324_v33  ;;  %v15784_v40 = vadd.f32 %v4532_v29, %v15327_v51 }
 0x362   : > { %v12441_v24 = vpop.f32.mrb[112].mxu0 }
 0x363   : > { %v3175_v22 = vpop.f32.mrb[113].mxu0  ;;  %v4536_v58 = vrot.slane %v12441_v24, 1 }
 0x364   : > { %v12442_v63 = vpop.f32.mrb[114].mxu0  ;;  %v4533_v47 = vrot.slane %v3175_v22, 1 }
 0x365   : > { %v3178_v4 = vpop.f32.mrb[115].mxu0 }
 0x366   : > { %v4534_v34 = vrot.slane %v3178_v4, 1 }
 0x367   : > { %12720 = vmatmul.mubr.msk.bf16.gmra.mrb[216].mxu1 %vm14399_vm8, %v14768_v28  ;;  %vm5017_vm8 = vcmask 1040384  }
 0x368   : > { %v4535_v15 = vsel %vm4512_vm15, %v4533_v47, %v4534_v34  ;;  %v4537_v56 = vsel %vm4512_vm15, %v4534_v34, %v4536_v58  ;;  %12723 = vmatprep.mubr.bf16.mxu1 %v17564_v26  ;;  %vm10039_vm2 = vmneg %vm5017_vm8 }
 0x369   : > { %v15793_v33 = vadd.f32 %v4535_v15, %v15342_v53  ;;  %v15796_v51 = vadd.f32 %v4537_v56, %v15345_v38  ;;  %vm15937_vm3 = vmpackc.low %vm14161_vm6, %vm10039_vm2 }
 0x36a   : > { %v12445_v3 = vpop.f32.mrb[116].mxu0  ;;  %vm15945_vm4 = vmpackc.low %vm14161_vm6, %vm5017_vm8 }
 0x36b   : > { %v3190_v50 = vpop.f32.mrb[117].mxu0  ;;  %v4541_v6 = vrot.slane %v12445_v3, 1 }
 0x36c   : > { %v12446_v17 = vpop.f32.mrb[118].mxu0  ;;  %v4538_v37 = vrot.slane %v3190_v50, 1 }
 0x36d   : > { %v3193_v28 = vpop.f32.mrb[119].mxu0 }
 0x36e   : > { %v4539_v27 = vrot.slane %v3193_v28, 1 }
 0x36f   : > { %12724 = vmatmul.mubr.bf16.gmra.mrb[220].mxu1 %v17564_v26 }
 0x370   : > { %v4540_v53 = vsel %vm4512_vm15, %v4538_v37, %v4539_v27  ;;  %v4542_v38 = vsel %vm4512_vm15, %v4539_v27, %v4541_v6  ;;  %12823 = vmatprep.mubr.bf16.mxu1 %v17564_v26 }
 0x371   : > { %v15809_v7 = vadd.f32 %v4540_v53, %v15358_v59  ;;  %v15812_v35 = vadd.f32 %v4542_v38, %v15364_v25  ;;  %v17583_v59 = vld [vmem:[#allocation14_spill] sm:$0xff] }
 0x372   : > { %v12449_v10 = vpop.f32.mrb[120].mxu0 }
 0x373   : > { %v3205_v43 = vpop.f32.mrb[121].mxu0  ;;  %v4546_v9 = vrot.slane %v12449_v10, 1 }
 0x374   : > { %v12450_v46 = vpop.f32.mrb[122].mxu0  ;;  %v4543_v48 = vrot.slane %v3205_v43, 1 }
 0x375   : > { %v3208_v5 = vpop.f32.mrb[123].mxu0 }
 0x376   : > { %v4544_v36 = vrot.slane %v3208_v5, 1 }
 0x377   : > { %12824 = vmatmul.mubr.bf16.vlgmr.msra.gmra.mrb[224].mxu1 %v17564_v26 }
 0x378   : > { %v4545_v44 = vsel %vm4512_vm15, %v4543_v48, %v4544_v36  ;;  %v4547_v52 = vsel %vm4512_vm15, %v4544_v36, %v4546_v9 }
 0x379   : > { %v15818_v39 = vadd.f32 %v4545_v44, %v15381_v54  ;;  %v15821_v55 = vadd.f32 %v4547_v52, %v17583_v59 }
 0x37a   : > { %v12453_v25 = vpop.f32.mrb[124].mxu0 }
 0x37b   : > { %v3220_v23 = vpop.f32.mrb[125].mxu0  ;;  %v4551_v8 = vrot.slane %v12453_v25, 1 }
 0x37c   : > { %v12454_v30 = vpop.f32.mrb[126].mxu0  ;;  %v4548_v31 = vrot.slane %v3220_v23, 1 }
 0x37d   : > { %v3223_v2 = vpop.f32.mrb[127].mxu0  ;;  %v17584_v30 = vld [vmem:[#allocation3_spill] sm:$0xff] }
 0x37e   : > { %v4549_v29 = vrot.slane %v3223_v2, 1 }
 0x380   : > { %v4550_v24 = vsel %vm4512_vm15, %v4548_v31, %v4549_v29  ;;  %v4552_v22 = vsel %vm4512_vm15, %v4549_v29, %v4551_v8  ;;  %v17585_v8 = vld [vmem:[#allocation4_spill] sm:$0xff] }
 0x381   : > { %v15826_v63 = vadd.f32 %v4550_v24, %v15405_v14  ;;  %v15829_v54 = vadd.f32 %v4552_v22, %v15408_v61 }
 0x382   : > { %v12457_v4 = vpop.f32.mrb[128].mxu0 }
 0x383   : > { %v3235_v58 = vpop.f32.mrb[129].mxu0  ;;  %v4556_v15 = vrot.slane %v12457_v4, 1 }
 0x384   : > { %v12458_v47 = vpop.f32.mrb[130].mxu0  ;;  %v4553_v56 = vrot.slane %v3235_v58, 1 }
 0x385   : > { %v3238_v34 = vpop.f32.mrb[131].mxu0 }
 0x386   : > { %v4554_v3 = vrot.slane %v3238_v34, 1 }
 0x388   : > { %v4555_v50 = vsel %vm4512_vm15, %v4553_v56, %v4554_v3  ;;  %v4557_v17 = vsel %vm4512_vm15, %v4554_v3, %v4556_v15  ;;  %v17586_v15 = vld [vmem:[#allocation5_spill] sm:$0xff]  ;;  %v17587_v3 = vld [vmem:[#allocation6_spill] sm:$0xff] }
 0x389   : > { %v15834_v28 = vadd.f32 %v4555_v50, %v15429_v62  ;;  %v15837_v14 = vadd.f32 %v4557_v17, %v15432_v32 }
 0x38a   : > { %v12461_v6 = vpop.f32.mrb[132].mxu0 }
 0x38b   : > { %v3250_v61 = vpop.f32.mrb[133].mxu0  ;;  %v4561_v53 = vrot.slane %v12461_v6, 1 }
 0x38c   : > { %v12462_v37 = vpop.f32.mrb[134].mxu0  ;;  %v4558_v38 = vrot.slane %v3250_v61, 1 }
 0x38d   : > { %v3253_v27 = vpop.f32.mrb[135].mxu0 }
 0x38e   : > { %v4559_v10 = vrot.slane %v3253_v27, 1 }
 0x390   : > { %v4560_v43 = vsel %vm4512_vm15, %v4558_v38, %v4559_v10  ;;  %v4562_v46 = vsel %vm4512_vm15, %v4559_v10, %v4561_v53 }
 0x391   : > { %v15842_v5 = vadd.f32 %v4560_v43, %v15450_v57  ;;  %v15845_v62 = vadd.f32 %v4562_v46, %v15453_v11  ;;  %v17588_v46 = vld [vmem:[#allocation7_spill] sm:$0xff] }
 0x392   : > { %v12465_v9 = vpop.f32.mrb[136].mxu0 }
 0x393   : > { %v3265_v32 = vpop.f32.mrb[137].mxu0  ;;  %v4566_v44 = vrot.slane %v12465_v9, 1 }
 0x394   : > { %v12466_v48 = vpop.f32.mrb[138].mxu0  ;;  %v4563_v52 = vrot.slane %v3265_v32, 1  ;;  %v17589_v32 = vld [vmem:[#allocation8_spill] sm:$0xff] }
 0x395   : > { %v3268_v36 = vpop.f32.mrb[139].mxu0 }
 0x396   : > { %v4564_v59 = vrot.slane %v3268_v36, 1 }
 0x398   : > { %v4565_v25 = vsel %vm4512_vm15, %v4563_v52, %v4564_v59  ;;  %v4567_v23 = vsel %vm4512_vm15, %v4564_v59, %v4566_v44 }
 0x399   : > { %v15850_v2 = vadd.f32 %v4565_v25, %v17584_v30  ;;  %v15853_v57 = vadd.f32 %v4567_v23, %v17585_v8 }
 0x39a   : > { %v12469_v31 = vpop.f32.mrb[140].mxu0 }
 0x39b   : > { %v3280_v11 = vpop.f32.mrb[141].mxu0  ;;  %v4571_v22 = vrot.slane %v12469_v31, 1 }
 0x39c   : > { %v12470_v29 = vpop.f32.mrb[142].mxu0  ;;  %v4568_v4 = vrot.slane %v3280_v11, 1 }
 0x39d   : > { %v3283_v24 = vpop.f32.mrb[143].mxu0 }
 0x39e   : > { %v4569_v58 = vrot.slane %v3283_v24, 1 }
 0x3a0   : > { %v4570_v47 = vsel %vm4512_vm15, %v4568_v4, %v4569_v58  ;;  %v4572_v34 = vsel %vm4512_vm15, %v4569_v58, %v4571_v22 }
 0x3a1   : > { %v15858_v56 = vadd.f32 %v4570_v47, %v17586_v15  ;;  %v15861_v50 = vadd.f32 %v4572_v34, %v17587_v3  ;;  %v14102_v47 = vld [vmem:[%s17539_s5 + $0x100] sm:$0xff]  }
 0x3a2   : > { %v12473_v17 = vpop.f32.mrb[144].mxu0  ;;  %12967 = vmatprep.subr.bf16.mxu1 %v14102_v47 }
 0x3a3   : > { %v3295_v6 = vpop.f32.mrb[145].mxu0  ;;  %v4576_v27 = vrot.slane %v12473_v17, 1  ;;  %12968 = vmatpush3.bf16.msra.mxu1 %v14102_v47  ;;  %v15921_v47 = vld [vmem:[%s17538_s4] ss:$0 sm:$0xff] }
 0x3a4   : > { %v12474_v61 = vpop.f32.mrb[146].mxu0  ;;  %v4573_v53 = vrot.slane %v3295_v6, 1 }
 0x3a5   : > { %v3298_v37 = vpop.f32.mrb[147].mxu0  ;;  %v14103_v61 = vld [vmem:[%s17539_s5 + $0x108] sm:$0xff]  }
 0x3a6   : > { %v4574_v38 = vrot.slane %v3298_v37, 1  ;;  %12969 = vmatprep.subr.bf16.mxu1 %v14103_v61 }
 0x3a7   : > { %12970 = vmatpush3.bf16.msra.mxu1 %v14103_v61 }
 0x3a8   : > { %v4575_v10 = vsel %vm4512_vm15, %v4573_v53, %v4574_v38  ;;  %v4577_v43 = vsel %vm4512_vm15, %v4574_v38, %v4576_v27 }
 0x3a9   : > { %v15866_v9 = vadd.f32 %v4575_v10, %v17588_v46  ;;  %v15869_v48 = vadd.f32 %v4577_v43, %v17589_v32  ;;  %v14105_v10 = vld [vmem:[%s17539_s5 + $0x110] sm:$0xff]  }
 0x3aa   : > { %v12477_v36 = vpop.f32.mrb[148].mxu0  ;;  %12971 = vmatprep.subr.bf16.mxu1 %v14105_v10 }
 0x3ab   : > { %v3310_v44 = vpop.f32.mrb[149].mxu0  ;;  %v4581_v25 = vrot.slane %v12477_v36, 1  ;;  %12972 = vmatpush3.bf16.msra.mxu1 %v14105_v10 }
 0x3ac   : > { %v12478_v52 = vpop.f32.mrb[150].mxu0  ;;  %v4578_v23 = vrot.slane %v3310_v44, 1 }
 0x3ad   : > { %v3313_v59 = vpop.f32.mrb[151].mxu0  ;;  %v14106_v52 = vld [vmem:[%s17539_s5 + $0x118] sm:$0xff]  }
 0x3ae   : > { %v4579_v30 = vrot.slane %v3313_v59, 1  ;;  %12973 = vmatprep.subr.bf16.mxu1 %v14106_v52  ;;  %v14107_v59 = vld [vmem:[%s17539_s5 + $0x120] sm:$0xff]  }
 0x3af   : > { %12974 = vmatpush3.bf16.msra.mxu1 %v14106_v52 }
 0x3b0   : > { %v4580_v8 = vsel %vm4512_vm15, %v4578_v23, %v4579_v30  ;;  %v4582_v31 = vsel %vm4512_vm15, %v4579_v30, %v4581_v25  ;;  %12975 = vmatprep.subr.bf16.mxu1 %v14107_v59 }
 0x3b1   : > { %v15874_v11 = vadd.f32 %v4580_v8, %v15522_v21  ;;  %v15877_v29 = vadd.f32 %v4582_v31, %v15525_v45  ;;  %v14110_v8 = vld [vmem:[%s17539_s5 + $0x130] sm:$0xff]  }
 0x3b2   : > { %v12481_v24 = vpop.f32.mrb[152].mxu0 }
 0x3b3   : > { %v3325_v22 = vpop.f32.mrb[153].mxu0  ;;  %v4586_v34 = vrot.slane %v12481_v24, 1  ;;  %12976 = vmatpush3.bf16.msra.mxu1 %v14107_v59 }
 0x3b4   : > { %v12482_v4 = vpop.f32.mrb[154].mxu0  ;;  %v4583_v15 = vrot.slane %v3325_v22, 1 }
 0x3b5   : > { %v3328_v58 = vpop.f32.mrb[155].mxu0 }
 0x3b6   : > { %v4584_v3 = vrot.slane %v3328_v58, 1 }
 0x3b8   : > { %v4585_v17 = vsel %vm4512_vm15, %v4583_v15, %v4584_v3  ;;  %v4587_v21 = vsel %vm4512_vm15, %v4584_v3, %v4586_v34  ;;  %v14111_v3 = vld [vmem:[%s17539_s5 + $0x138] sm:$0xff]  }
 0x3b9   : > { %v15885_v45 = vadd.f32 %v4585_v17, %v15540_v20  ;;  %v15888_v6 = vadd.f32 %v4587_v21, %v15543_v41 }
 0x3ba   : > { %v12485_v37 = vpop.f32.mrb[156].mxu0 }
 0x3bb   : > { %v3340_v27 = vpop.f32.mrb[157].mxu0  ;;  %v4591_v43 = vrot.slane %v12485_v37, 1 }
 0x3bc   : > { %v12486_v53 = vpop.f32.mrb[158].mxu0  ;;  %v4588_v20 = vrot.slane %v3340_v27, 1 }
 0x3bd   : > { %v3343_v38 = vpop.f32.mrb[159].mxu0 }
 0x3be   : > { %v4589_v46 = vrot.slane %v3343_v38, 1 }
 0x3c0   : > { %v4590_v41 = vsel %vm4512_vm15, %v4588_v20, %v4589_v46  ;;  %v4592_v32 = vsel %vm4512_vm15, %v4589_v46, %v4591_v43 }
 0x3c1   : > { %v15899_v36 = vadd.f32 %v4590_v41, %v15558_v49  ;;  %v15902_v44 = vadd.f32 %v4592_v32, %v15561_v16  ;;  %v14108_v49 = vld [vmem:[%s17539_s5 + $0x128] sm:$0xff]  }
 0x3c2   : > { %12977 = vmatprep.subr.bf16.mxu1 %v14108_v49 }
 0x3c3   : > { %12978 = vmatpush3.bf16.msra.mxu1 %v14108_v49 }
 0x3c4   : > { %12979 = vmatprep.subr.bf16.mxu1 %v14110_v8 }
 0x3c7   : > { %12980 = vmatpush3.bf16.msra.mxu1 %v14110_v8 }
 0x3c8   : > { %12981 = vmatprep.subr.bf16.mxu1 %v14111_v3 }
 0x3ca   : > { %v12665_v25 = vpop.f32.mrb[160].mxu1 }
 0x3cb   : > { %v4177_v23 = vpop.f32.mrb[161].mxu1  ;;  %v4709_v31 = vrot.slane %v12665_v25, 2  ;;  %12982 = vmatpush3.bf16.msra.mxu1 %v14111_v3 }
 0x3cc   : > { %v12666_v16 = vpop.f32.mrb[162].mxu1  ;;  %v4706_v24 = vrot.slane %v4177_v23, 2 }
 0x3cd   : > { %v4180_v30 = vpop.f32.mrb[163].mxu1 }
 0x3ce   : > { %v4707_v22 = vrot.slane %v4180_v30, 2 }
 0x3d0   : > { %v4708_v4 = vsel %vm4705_vm7, %v4706_v24, %v4707_v22  ;;  %v4710_v58 = vsel %vm4705_vm7, %v4707_v22, %v4709_v31  ;;  %v17594_v22 = vmov 0.0  }
 0x3d1   : > { %v4818_v34 = vadd.f32 %v4708_v4, %v15727_v60  ;;  %v4819_v15 = vadd.f32 %v4710_v58, %v15730_v12 }
 0x3d2   : > { %v12669_v17 = vpop.f32.mrb[164].mxu1 }
 0x3d3   : > { %v4857_v21 = vadd.f32 %v15921_v47, %v4818_v34  ;;  %v4858_v61 = vadd.f32 %v15921_v47, %v4819_v15  ;;  %v4192_v37 = vpop.f32.mrb[165].mxu1  ;;  %v4714_v38 = vrot.slane %v12669_v17, 2  ;;  %v14097_v34 = vld [vmem:[%s17539_s5 + $0x188] sm:$0xff]  }
 0x3d4   : > { %v12670_v27 = vpop.f32.mrb[166].mxu1  ;;  %v4711_v20 = vrot.slane %v4192_v37, 2 }
 0x3d5   : > { %vm4889_vm0 = vcmp.ge.f32.partialorder %v4857_v21, 0.0  ;;  %vm4890_vm1 = vcmp.ge.f32.partialorder %v4858_v61, 0.0  ;;  %v4921_v53 = vmul.f32 0.2, %v4857_v21  ;;  %v4922_v60 = vmul.f32 0.2, %v4858_v61 }
 0x3d6   : > { %v4195_v12 = vpop.f32.mrb[167].mxu1 }
 0x3d7   : > { %v4953_v10 = vsel %vm4889_vm0, %v4857_v21, %v4921_v53  ;;  %v4954_v43 = vsel %vm4890_vm1, %v4858_v61, %v4922_v60  ;;  %v4712_v46 = vrot.slane %v4195_v12, 2  ;;  %v14098_v60 = vld [vmem:[%s17539_s5 + $0x190] sm:$0xff]  }
 0x3d8   : > { %v5018_v41 = vrot.slane %v4953_v10, 7  ;;  %v5019_v32 = vrot.slane %v4954_v43, 7 }
 0x3d9   : > { %v4713_v52 = vsel %vm4705_vm7, %v4711_v20, %v4712_v46  ;;  %v4715_v59 = vsel %vm4705_vm7, %v4712_v46, %v4714_v38 }
 0x3da   : > { %v5020_v49 = vsel %vm5017_vm8, %v5018_v41, %v5019_v32  ;;  %v4820_v25 = vadd.f32 %v4713_v52, %v15747_v42  ;;  %v4821_v23 = vadd.f32 %v4715_v59, %v15750_v1  ;;  %v12673_v16 = vpop.f32.mrb[168].mxu1  ;;  %v15950_v4 = vpack.c.bf16 %v17594_v22, %v5019_v32 }
 0x3db   : > { %v15941_v8 = vpack.c.bf16 %v5020_v49, %v5018_v41  ;;  %v4207_v31 = vpop.f32.mrb[169].mxu1  ;;  %v4719_v21 = vrot.slane %v12673_v16, 2 }
 0x3dc   : > { %17595 = vst [vmem:[#allocation9_spill] sm:$0xff] %v15950_v4  ;;  %v4859_v42 = vadd.f32 %v15921_v47, %v4820_v25  ;;  %v4860_v1 = vadd.f32 %v15921_v47, %v4821_v23  ;;  %v12674_v58 = vpop.f32.mrb[170].mxu1  ;;  %v4716_v61 = vrot.slane %v4207_v31, 2 }
 0x3dd   : > { %v4210_v15 = vpop.f32.mrb[171].mxu1  ;;  %12743 = vmatprep.mubr.msk.bf16.mxu0 %vm15937_vm3, %v15941_v8  ;;  %12827 = vmatprep.mubr.msk.bf16.mxu1 %vm15937_vm3, %v15941_v8 }
 0x3de   : > { %vm4891_vm6 = vcmp.ge.f32.partialorder %v4859_v42, 0.0  ;;  %vm4892_vm5 = vcmp.ge.f32.partialorder %v4860_v1, 0.0  ;;  %v4923_v3 = vmul.f32 0.2, %v4859_v42  ;;  %v4924_v17 = vmul.f32 0.2, %v4860_v1  ;;  %12744 = vmatmul.mubr.msk.bf16.vlgmr.msra.gmra.mrb[160].mxu0 %vm15945_vm4, %v15950_v4  ;;  %12828 = vmatmul.mubr.msk.bf16.gmra.mrb[228].mxu1 %vm15945_vm4, %v15950_v4 }
 0x3df   : > { %v4717_v37 = vrot.slane %v4210_v15, 2  ;;  %12888 = vmatpush3.bf16.msra.mxu0 %v15801_v19 }
 0x3e0   : > { %v4955_v27 = vsel %vm4891_vm6, %v4859_v42, %v4923_v3  ;;  %v4956_v53 = vsel %vm4892_vm5, %v4860_v1, %v4924_v17  ;;  %12889 = vmatprep.subr.bf16.mxu0 %v14097_v34 }
 0x3e1   : > { %v5021_v38 = vrot.slane %v4955_v27, 7  ;;  %v5022_v12 = vrot.slane %v4956_v53, 7  ;;  %v4718_v10 = vsel %vm4705_vm7, %v4716_v61, %v4717_v37  ;;  %v4720_v43 = vsel %vm4705_vm7, %v4717_v37, %v4719_v21  ;;  %v14100_v37 = vld [vmem:[%s17539_s5 + $0x1a0] sm:$0xff]  }
 0x3e2   : > { %v4822_v20 = vadd.f32 %v4718_v10, %v15764_v13  ;;  %v4823_v46 = vadd.f32 %v4720_v43, %v15767_v18  ;;  %v12677_v41 = vpop.f32.mrb[172].mxu1  ;;  %v14099_v13 = vld [vmem:[%s17539_s5 + $0x198] sm:$0xff]  }
 0x3e3   : > { %v5023_v19 = vsel %vm5017_vm8, %v5021_v38, %v5022_v12  ;;  %v4222_v32 = vpop.f32.mrb[173].mxu1  ;;  %12890 = vmatpush3.bf16.msra.mxu0 %v14097_v34  ;;  %v15983_v23 = vpack.c.bf16 %v17594_v22, %v5022_v12  ;;  %v4724_v42 = vrot.slane %v12677_v41, 2 }
 0x3e4   : > { %v15978_v52 = vpack.c.bf16 %v5023_v19, %v5021_v38  ;;  %v4861_v59 = vadd.f32 %v15921_v47, %v4822_v20  ;;  %v4862_v49 = vadd.f32 %v15921_v47, %v4823_v46  ;;  %v12678_v25 = vpop.f32.mrb[174].mxu1  ;;  %12891 = vmatprep.subr.bf16.mxu0 %v14098_v60  ;;  %v4721_v1 = vrot.slane %v4222_v32, 2 }
 0x3e5   : > { %v4225_v16 = vpop.f32.mrb[175].mxu1 }
 0x3e6   : > { %vm4893_vm9 = vcmp.ge.f32.partialorder %v4861_v59, 0.0  ;;  %vm4894_vm10 = vcmp.ge.f32.partialorder %v4862_v49, 0.0  ;;  %v4925_v18 = vmul.f32 0.2, %v4861_v59  ;;  %v4926_v31 = vmul.f32 0.2, %v4862_v49  ;;  %12747 = vmatprep.mubr.msk.bf16.mxu0 %vm15937_vm3, %v15978_v52  ;;  %12831 = vmatprep.mubr.msk.bf16.mxu1 %vm15937_vm3, %v15978_v52 }
 0x3e7   : > { %v4722_v58 = vrot.slane %v4225_v16, 2  ;;  %12748 = vmatmul.mubr.msk.bf16.gmra.mrb[164].mxu0 %vm15945_vm4, %v15983_v23  ;;  %12832 = vmatmul.mubr.msk.bf16.gmra.mrb[232].mxu1 %vm15945_vm4, %v15983_v23 }
 0x3e8   : > { %v4957_v34 = vsel %vm4893_vm9, %v4861_v59, %v4925_v18  ;;  %v4958_v15 = vsel %vm4894_vm10, %v4862_v49, %v4926_v31  ;;  %12892 = vmatpush3.bf16.msra.mxu0 %v14098_v60 }
 0x3e9   : > { %v5024_v3 = vrot.slane %v4957_v34, 7  ;;  %v5025_v17 = vrot.slane %v4958_v15, 7  ;;  %v4723_v21 = vsel %vm4705_vm7, %v4721_v1, %v4722_v58  ;;  %v4725_v61 = vsel %vm4705_vm7, %v4722_v58, %v4724_v42  ;;  %12893 = vmatprep.subr.bf16.mxu0 %v14099_v13  ;;  %v14104_v58 = vld [vmem:[%s17539_s5 + $0x1b0] sm:$0xff]  }
 0x3ea   : > { %v4824_v27 = vadd.f32 %v4723_v21, %v15781_v0  ;;  %v4825_v53 = vadd.f32 %v4725_v61, %v15784_v40  ;;  %v12681_v38 = vpop.f32.mrb[176].mxu1  ;;  %v14101_v0 = vld [vmem:[%s17539_s5 + $0x1a8] sm:$0xff]  }
 0x3eb   : > { %v5026_v12 = vsel %vm5017_vm8, %v5024_v3, %v5025_v17  ;;  %v4237_v10 = vpop.f32.mrb[177].mxu1  ;;  %v16013_v41 = vpack.c.bf16 %v17594_v22, %v5025_v17  ;;  %v4729_v59 = vrot.slane %v12681_v38, 2 }
 0x3ec   : > { %v16008_v60 = vpack.c.bf16 %v5026_v12, %v5024_v3  ;;  %v4863_v43 = vadd.f32 %v15921_v47, %v4824_v27  ;;  %v4864_v20 = vadd.f32 %v15921_v47, %v4825_v53  ;;  %v12682_v46 = vpop.f32.mrb[178].mxu1  ;;  %12894 = vmatpush3.bf16.msra.mxu0 %v14099_v13  ;;  %v4726_v49 = vrot.slane %v4237_v10, 2 }
 0x3ed   : > { %v4240_v19 = vpop.f32.mrb[179].mxu1  ;;  %12895 = vmatprep.subr.bf16.mxu0 %v14100_v37 }
 0x3ee   : > { %vm4895_vm11 = vcmp.ge.f32.partialorder %v4863_v43, 0.0  ;;  %vm4896_vm12 = vcmp.ge.f32.partialorder %v4864_v20, 0.0  ;;  %v4927_v40 = vmul.f32 0.2, %v4863_v43  ;;  %v4928_v32 = vmul.f32 0.2, %v4864_v20  ;;  %12751 = vmatprep.mubr.msk.bf16.mxu0 %vm15937_vm3, %v16008_v60  ;;  %12835 = vmatprep.mubr.msk.bf16.mxu1 %vm15937_vm3, %v16008_v60 }
 0x3ef   : > { %v4727_v25 = vrot.slane %v4240_v19, 2  ;;  %12752 = vmatmul.mubr.msk.bf16.gmra.mrb[168].mxu0 %vm15945_vm4, %v16013_v41  ;;  %12836 = vmatmul.mubr.msk.bf16.gmra.mrb[236].mxu1 %vm15945_vm4, %v16013_v41 }
 0x3f0   : > { %v4959_v16 = vsel %vm4895_vm11, %v4863_v43, %v4927_v40  ;;  %v4960_v13 = vsel %vm4896_vm12, %v4864_v20, %v4928_v32  ;;  %12896 = vmatpush3.bf16.msra.mxu0 %v14100_v37 }
 0x3f1   : > { %v5027_v18 = vrot.slane %v4959_v16, 7  ;;  %v5028_v31 = vrot.slane %v4960_v13, 7  ;;  %v4728_v42 = vsel %vm4705_vm7, %v4726_v49, %v4727_v25  ;;  %v4730_v1 = vsel %vm4705_vm7, %v4727_v25, %v4729_v59  ;;  %12897 = vmatprep.subr.bf16.mxu0 %v14101_v0  ;;  %v16065_v25 = vld [vmem:[%s17539_s5 + $0x140] sm:$0xff]  }
 0x3f2   : > { %v4826_v34 = vadd.f32 %v4728_v42, %v15793_v33  ;;  %v4827_v15 = vadd.f32 %v4730_v1, %v15796_v51  ;;  %v12685_v3 = vpop.f32.mrb[180].mxu1  ;;  %v14109_v33 = vld [vmem:[%s17539_s5 + $0x1b8] sm:$0xff]  }
 0x3f3   : > { %v5029_v17 = vsel %vm5017_vm8, %v5027_v18, %v5028_v31  ;;  %v4252_v21 = vpop.f32.mrb[181].mxu1  ;;  %v16043_v38 = vpack.c.bf16 %v17594_v22, %v5028_v31  ;;  %v4734_v43 = vrot.slane %v12685_v3, 2 }
 0x3f4   : > { %v16038_v61 = vpack.c.bf16 %v5029_v17, %v5027_v18  ;;  %v4865_v37 = vadd.f32 %v15921_v47, %v4826_v34  ;;  %v4866_v27 = vadd.f32 %v15921_v47, %v4827_v15  ;;  %v12686_v53 = vpop.f32.mrb[182].mxu1  ;;  %12898 = vmatpush3.bf16.msra.mxu0 %v14101_v0  ;;  %v4731_v20 = vrot.slane %v4252_v21, 2 }
 0x3f5   : > { %v4255_v12 = vpop.f32.mrb[183].mxu1  ;;  %12899 = vmatprep.subr.bf16.mxu0 %v14104_v58 }
 0x3f6   : > { %vm4897_vm13 = vcmp.ge.f32.partialorder %v4865_v37, 0.0  ;;  %vm4898_vm14 = vcmp.ge.f32.partialorder %v4866_v27, 0.0  ;;  %v4929_v51 = vmul.f32 0.2, %v4865_v37  ;;  %v4930_v10 = vmul.f32 0.2, %v4866_v27  ;;  %12755 = vmatprep.mubr.msk.bf16.mxu0 %vm15937_vm3, %v16038_v61  ;;  %12839 = vmatprep.mubr.msk.bf16.mxu1 %vm15937_vm3, %v16038_v61 }
 0x3f7   : > { %v4732_v46 = vrot.slane %v4255_v12, 2  ;;  %12756 = vmatmul.mubr.msk.bf16.gmra.mrb[172].mxu0 %vm15945_vm4, %v16043_v38  ;;  %12840 = vmatmul.mubr.msk.bf16.gmra.mrb[240].mxu1 %vm15945_vm4, %v16043_v38 }
 0x3f8   : > { %v4961_v19 = vsel %vm4897_vm13, %v4865_v37, %v4929_v51  ;;  %v4962_v0 = vsel %vm4898_vm14, %v4866_v27, %v4930_v10  ;;  %12900 = vmatpush3.bf16.msra.mxu0 %v14104_v58 }
 0x3f9   : > { %v5030_v40 = vrot.slane %v4961_v19, 7  ;;  %v5031_v32 = vrot.slane %v4962_v0, 7  ;;  %v4733_v59 = vsel %vm4705_vm7, %v4731_v20, %v4732_v46  ;;  %v4735_v49 = vsel %vm4705_vm7, %v4732_v46, %v4734_v43  ;;  %12901 = vmatprep.subr.bf16.mxu0 %v14109_v33 }
 0x3fa   : > { %v4828_v16 = vadd.f32 %v4733_v59, %v15809_v7  ;;  %v4829_v13 = vadd.f32 %v4735_v49, %v15812_v35  ;;  %v12689_v18 = vpop.f32.mrb[184].mxu1 }
 0x3fb   : > { %v5032_v31 = vsel %vm5017_vm8, %v5030_v40, %v5031_v32  ;;  %v4267_v42 = vpop.f32.mrb[185].mxu1  ;;  %v16075_v3 = vpack.c.bf16 %v17594_v22, %v5031_v32  ;;  %v4739_v21 = vrot.slane %v12689_v18, 2 }
 0x3fc   : > { %v16070_v1 = vpack.c.bf16 %v5032_v31, %v5030_v40  ;;  %v4867_v58 = vadd.f32 %v15921_v47, %v4828_v16  ;;  %v4868_v34 = vadd.f32 %v15921_v47, %v4829_v13  ;;  %v12690_v15 = vpop.f32.mrb[186].mxu1  ;;  %12902 = vmatpush3.bf16.msra.mxu0 %v14109_v33  ;;  %v4736_v37 = vrot.slane %v4267_v42, 2 }
 0x3fd   : > { %v4270_v17 = vpop.f32.mrb[187].mxu1  ;;  %13207 = vmatprep.subr.bf16.mxu0 %v16065_v25 }
 0x3fe   : > { %vm4899_vm0 = vcmp.ge.f32.partialorder %v4867_v58, 0.0  ;;  %vm4900_vm1 = vcmp.ge.f32.partialorder %v4868_v34, 0.0  ;;  %v4931_v7 = vmul.f32 0.2, %v4867_v58  ;;  %v4932_v35 = vmul.f32 0.2, %v4868_v34  ;;  %12759 = vmatprep.mubr.msk.bf16.mxu0 %vm15937_vm3, %v16070_v1  ;;  %12843 = vmatprep.mubr.msk.bf16.mxu1 %vm15937_vm3, %v16070_v1 }
 0x3ff   : > { %v4737_v27 = vrot.slane %v4270_v17, 2  ;;  %12760 = vmatmul.mubr.msk.bf16.gmra.mrb[176].mxu0 %vm15945_vm4, %v16075_v3  ;;  %12844 = vmatmul.mubr.msk.bf16.gmra.mrb[244].mxu1 %vm15945_vm4, %v16075_v3 }
 0x400   : > { %v4963_v53 = vsel %vm4899_vm0, %v4867_v58, %v4931_v7  ;;  %v4964_v12 = vsel %vm4900_vm1, %v4868_v34, %v4932_v35 }
 0x401   : > { %v5033_v33 = vrot.slane %v4963_v53, 7  ;;  %v5034_v51 = vrot.slane %v4964_v12, 7  ;;  %v4738_v10 = vsel %vm4705_vm7, %v4736_v37, %v4737_v27  ;;  %v4740_v43 = vsel %vm4705_vm7, %v4737_v27, %v4739_v21 }
 0x402   : > { %v4830_v20 = vadd.f32 %v4738_v10, %v15818_v39  ;;  %v4831_v46 = vadd.f32 %v4740_v43, %v15821_v55  ;;  %v12693_v19 = vpop.f32.mrb[188].mxu1 }
 0x403   : > { %v5035_v0 = vsel %vm5017_vm8, %v5033_v33, %v5034_v51  ;;  %v4282_v40 = vpop.f32.mrb[189].mxu1  ;;  %v16100_v13 = vpack.c.bf16 %v17594_v22, %v5034_v51  ;;  %v4744_v55 = vrot.slane %v12693_v19, 2 }
 0x404   : > { %v16095_v32 = vpack.c.bf16 %v5035_v0, %v5033_v33  ;;  %v4869_v59 = vadd.f32 %v15921_v47, %v4830_v20  ;;  %v4870_v49 = vadd.f32 %v15921_v47, %v4831_v46  ;;  %v12694_v16 = vpop.f32.mrb[190].mxu1  ;;  %v4741_v42 = vrot.slane %v4282_v40, 2 }
 0x405   : > { %v4285_v18 = vpop.f32.mrb[191].mxu1 }
 0x406   : > { %vm4901_vm2 = vcmp.ge.f32.partialorder %v4869_v59, 0.0  ;;  %vm4902_vm6 = vcmp.ge.f32.partialorder %v4870_v49, 0.0  ;;  %v4933_v39 = vmul.f32 0.2, %v4869_v59  ;;  %v4934_v31 = vmul.f32 0.2, %v4870_v49  ;;  %12763 = vmatprep.mubr.msk.bf16.mxu0 %vm15937_vm3, %v16095_v32  ;;  %12847 = vmatprep.mubr.msk.bf16.mxu1 %vm15937_vm3, %v16095_v32 }
 0x407   : > { %v4742_v58 = vrot.slane %v4285_v18, 2  ;;  %12764 = vmatmul.mubr.msk.bf16.gmra.mrb[180].mxu0 %vm15945_vm4, %v16100_v13  ;;  %12848 = vmatmul.mubr.msk.bf16.gmra.mrb[248].mxu1 %vm15945_vm4, %v16100_v13 }
 0x408   : > { %v4965_v34 = vsel %vm4901_vm2, %v4869_v59, %v4933_v39  ;;  %v4966_v15 = vsel %vm4902_vm6, %v4870_v49, %v4934_v31 }
 0x409   : > { %v5036_v17 = vrot.slane %v4965_v34, 7  ;;  %v5037_v7 = vrot.slane %v4966_v15, 7  ;;  %v4743_v35 = vsel %vm4705_vm7, %v4741_v42, %v4742_v58  ;;  %v4745_v21 = vsel %vm4705_vm7, %v4742_v58, %v4744_v55 }
 0x40a   : > { %v4832_v37 = vadd.f32 %v4743_v35, %v15826_v63  ;;  %v4833_v27 = vadd.f32 %v4745_v21, %v15829_v54  ;;  %v12697_v53 = vpop.f32.mrb[192].mxu1 }
 0x40b   : > { %v5038_v12 = vsel %vm5017_vm8, %v5036_v17, %v5037_v7  ;;  %v4297_v33 = vpop.f32.mrb[193].mxu1  ;;  %v16124_v46 = vpack.c.bf16 %v17594_v22, %v5037_v7  ;;  %v4749_v54 = vrot.slane %v12697_v53, 2 }
 0x40c   : > { %v16119_v51 = vpack.c.bf16 %v5038_v12, %v5036_v17  ;;  %v4871_v10 = vadd.f32 %v15921_v47, %v4832_v37  ;;  %v4872_v43 = vadd.f32 %v15921_v47, %v4833_v27  ;;  %v12698_v20 = vpop.f32.mrb[194].mxu1  ;;  %v4746_v40 = vrot.slane %v4297_v33, 2 }
 0x40d   : > { %v4300_v19 = vpop.f32.mrb[195].mxu1 }
 0x40e   : > { %vm4903_vm5 = vcmp.ge.f32.partialorder %v4871_v10, 0.0  ;;  %vm4904_vm9 = vcmp.ge.f32.partialorder %v4872_v43, 0.0  ;;  %v4935_v63 = vmul.f32 0.2, %v4871_v10  ;;  %v4936_v0 = vmul.f32 0.2, %v4872_v43  ;;  %12767 = vmatprep.mubr.msk.bf16.mxu0 %vm15937_vm3, %v16119_v51  ;;  %12851 = vmatprep.mubr.msk.bf16.mxu1 %vm15937_vm3, %v16119_v51 }
 0x40f   : > { %v4747_v59 = vrot.slane %v4300_v19, 2  ;;  %12768 = vmatmul.mubr.msk.bf16.gmra.mrb[184].mxu0 %vm15945_vm4, %v16124_v46  ;;  %12852 = vmatmul.mubr.msk.bf16.gmra.mrb[252].mxu1 %vm15945_vm4, %v16124_v46 }
 0x410   : > { %v4967_v49 = vsel %vm4903_vm5, %v4871_v10, %v4935_v63  ;;  %v4968_v16 = vsel %vm4904_vm9, %v4872_v43, %v4936_v0 }
 0x411   : > { %v5039_v18 = vrot.slane %v4967_v49, 7  ;;  %v5040_v39 = vrot.slane %v4968_v16, 7  ;;  %v4748_v31 = vsel %vm4705_vm7, %v4746_v40, %v4747_v59  ;;  %v4750_v55 = vsel %vm4705_vm7, %v4747_v59, %v4749_v54 }
 0x412   : > { %v4834_v42 = vadd.f32 %v4748_v31, %v15834_v28  ;;  %v4835_v58 = vadd.f32 %v4750_v55, %v15837_v14  ;;  %v12701_v34 = vpop.f32.mrb[196].mxu1 }
 0x413   : > { %v5041_v15 = vsel %vm5017_vm8, %v5039_v18, %v5040_v39  ;;  %v4312_v17 = vpop.f32.mrb[197].mxu1  ;;  %v16148_v27 = vpack.c.bf16 %v17594_v22, %v5040_v39  ;;  %v4754_v14 = vrot.slane %v12701_v34, 2 }
 0x414   : > { %v16143_v7 = vpack.c.bf16 %v5041_v15, %v5039_v18  ;;  %v4873_v35 = vadd.f32 %v15921_v47, %v4834_v42  ;;  %v4874_v21 = vadd.f32 %v15921_v47, %v4835_v58  ;;  %v12702_v37 = vpop.f32.mrb[198].mxu1  ;;  %v4751_v33 = vrot.slane %v4312_v17, 2 }
 0x415   : > { %v4315_v53 = vpop.f32.mrb[199].mxu1 }
 0x416   : > { %vm4905_vm10 = vcmp.ge.f32.partialorder %v4873_v35, 0.0  ;;  %vm4906_vm11 = vcmp.ge.f32.partialorder %v4874_v21, 0.0  ;;  %v4937_v28 = vmul.f32 0.2, %v4873_v35  ;;  %v4938_v12 = vmul.f32 0.2, %v4874_v21  ;;  %12771 = vmatprep.mubr.msk.bf16.mxu0 %vm15937_vm3, %v16143_v7  ;;  %12855 = vmatprep.mubr.msk.bf16.mxu1 %vm15937_vm3, %v16143_v7 }
 0x417   : > { %v4752_v10 = vrot.slane %v4315_v53, 2  ;;  %12772 = vmatmul.mubr.msk.bf16.gmra.mrb[188].mxu0 %vm15945_vm4, %v16148_v27  ;;  %12856 = vmatmul.mubr.msk.bf16.gmra.mrb[0].mxu1 %vm15945_vm4, %v16148_v27 }
 0x418   : > { %v4969_v43 = vsel %vm4905_vm10, %v4873_v35, %v4937_v28  ;;  %v4970_v20 = vsel %vm4906_vm11, %v4874_v21, %v4938_v12 }
 0x419   : > { %v5042_v19 = vrot.slane %v4969_v43, 7  ;;  %v5043_v63 = vrot.slane %v4970_v20, 7  ;;  %v4753_v0 = vsel %vm4705_vm7, %v4751_v33, %v4752_v10  ;;  %v4755_v54 = vsel %vm4705_vm7, %v4752_v10, %v4754_v14 }
 0x41a   : > { %v4836_v40 = vadd.f32 %v4753_v0, %v15842_v5  ;;  %v4837_v59 = vadd.f32 %v4755_v54, %v15845_v62  ;;  %v12705_v49 = vpop.f32.mrb[200].mxu1 }
 0x41b   : > { %v5044_v16 = vsel %vm5017_vm8, %v5042_v19, %v5043_v63  ;;  %v4327_v18 = vpop.f32.mrb[201].mxu1  ;;  %v16172_v58 = vpack.c.bf16 %v17594_v22, %v5043_v63  ;;  %v4759_v62 = vrot.slane %v12705_v49, 2 }
 0x41c   : > { %v16167_v39 = vpack.c.bf16 %v5044_v16, %v5042_v19  ;;  %v4875_v31 = vadd.f32 %v15921_v47, %v4836_v40  ;;  %v4876_v55 = vadd.f32 %v15921_v47, %v4837_v59  ;;  %v12706_v42 = vpop.f32.mrb[202].mxu1  ;;  %v4756_v17 = vrot.slane %v4327_v18, 2 }
 0x41d   : > { %v4330_v34 = vpop.f32.mrb[203].mxu1 }
 0x41e   : > { %vm4907_vm12 = vcmp.ge.f32.partialorder %v4875_v31, 0.0  ;;  %vm4908_vm13 = vcmp.ge.f32.partialorder %v4876_v55, 0.0  ;;  %v4939_v5 = vmul.f32 0.2, %v4875_v31  ;;  %v4940_v15 = vmul.f32 0.2, %v4876_v55  ;;  %12775 = vmatprep.mubr.msk.bf16.mxu0 %vm15937_vm3, %v16167_v39  ;;  %12859 = vmatprep.mubr.msk.bf16.mxu1 %vm15937_vm3, %v16167_v39 }
 0x41f   : > { %v4757_v35 = vrot.slane %v4330_v34, 2  ;;  %12776 = vmatmul.mubr.msk.bf16.gmra.mrb[192].mxu0 %vm15945_vm4, %v16172_v58  ;;  %12860 = vmatmul.mubr.msk.bf16.gmra.mrb[4].mxu1 %vm15945_vm4, %v16172_v58 }
 0x420   : > { %v4971_v21 = vsel %vm4907_vm12, %v4875_v31, %v4939_v5  ;;  %v4972_v37 = vsel %vm4908_vm13, %v4876_v55, %v4940_v15 }
 0x421   : > { %v5045_v53 = vrot.slane %v4971_v21, 7  ;;  %v5046_v28 = vrot.slane %v4972_v37, 7  ;;  %v4758_v12 = vsel %vm4705_vm7, %v4756_v17, %v4757_v35  ;;  %v4760_v14 = vsel %vm4705_vm7, %v4757_v35, %v4759_v62 }
 0x422   : > { %v4838_v33 = vadd.f32 %v4758_v12, %v15850_v2  ;;  %v4839_v10 = vadd.f32 %v4760_v14, %v15853_v57  ;;  %v12709_v43 = vpop.f32.mrb[204].mxu1 }
 0x423   : > { %v5047_v20 = vsel %vm5017_vm8, %v5045_v53, %v5046_v28  ;;  %v4342_v19 = vpop.f32.mrb[205].mxu1  ;;  %v16196_v59 = vpack.c.bf16 %v17594_v22, %v5046_v28  ;;  %v4764_v57 = vrot.slane %v12709_v43, 2 }
 0x424   : > { %v16191_v63 = vpack.c.bf16 %v5047_v20, %v5045_v53  ;;  %v4877_v0 = vadd.f32 %v15921_v47, %v4838_v33  ;;  %v4878_v54 = vadd.f32 %v15921_v47, %v4839_v10  ;;  %v12710_v40 = vpop.f32.mrb[206].mxu1  ;;  %v4761_v18 = vrot.slane %v4342_v19, 2 }
 0x425   : > { %v4345_v49 = vpop.f32.mrb[207].mxu1 }
 0x426   : > { %vm4909_vm14 = vcmp.ge.f32.partialorder %v4877_v0, 0.0  ;;  %vm4910_vm0 = vcmp.ge.f32.partialorder %v4878_v54, 0.0  ;;  %v4941_v2 = vmul.f32 0.2, %v4877_v0  ;;  %v4942_v16 = vmul.f32 0.2, %v4878_v54  ;;  %12779 = vmatprep.mubr.msk.bf16.mxu0 %vm15937_vm3, %v16191_v63  ;;  %12863 = vmatprep.mubr.msk.bf16.mxu1 %vm15937_vm3, %v16191_v63 }
 0x427   : > { %v4762_v31 = vrot.slane %v4345_v49, 2  ;;  %12780 = vmatmul.mubr.msk.bf16.gmra.mrb[196].mxu0 %vm15945_vm4, %v16196_v59  ;;  %12864 = vmatmul.mubr.msk.bf16.gmra.mrb[8].mxu1 %vm15945_vm4, %v16196_v59 }
 0x428   : > { %v4973_v55 = vsel %vm4909_vm14, %v4877_v0, %v4941_v2  ;;  %v4974_v42 = vsel %vm4910_vm0, %v4878_v54, %v4942_v16 }
 0x429   : > { %v5048_v34 = vrot.slane %v4973_v55, 7  ;;  %v5049_v5 = vrot.slane %v4974_v42, 7  ;;  %v4763_v15 = vsel %vm4705_vm7, %v4761_v18, %v4762_v31  ;;  %v4765_v62 = vsel %vm4705_vm7, %v4762_v31, %v4764_v57 }
 0x42a   : > { %v4840_v17 = vadd.f32 %v4763_v15, %v15858_v56  ;;  %v4841_v35 = vadd.f32 %v4765_v62, %v15861_v50  ;;  %v12713_v21 = vpop.f32.mrb[208].mxu1 }
 0x42b   : > { %v5050_v37 = vsel %vm5017_vm8, %v5048_v34, %v5049_v5  ;;  %v4357_v53 = vpop.f32.mrb[209].mxu1  ;;  %v16220_v10 = vpack.c.bf16 %v17594_v22, %v5049_v5  ;;  %v4769_v50 = vrot.slane %v12713_v21, 2 }
 0x42c   : > { %v16215_v28 = vpack.c.bf16 %v5050_v37, %v5048_v34  ;;  %v4879_v12 = vadd.f32 %v15921_v47, %v4840_v17  ;;  %v4880_v14 = vadd.f32 %v15921_v47, %v4841_v35  ;;  %v12714_v33 = vpop.f32.mrb[210].mxu1  ;;  %v4766_v19 = vrot.slane %v4357_v53, 2 }
 0x42d   : > { %v4360_v43 = vpop.f32.mrb[211].mxu1 }
 0x42e   : > { %vm4911_vm1 = vcmp.ge.f32.partialorder %v4879_v12, 0.0  ;;  %vm4912_vm2 = vcmp.ge.f32.partialorder %v4880_v14, 0.0  ;;  %v4943_v56 = vmul.f32 0.2, %v4879_v12  ;;  %v4944_v20 = vmul.f32 0.2, %v4880_v14  ;;  %12783 = vmatprep.mubr.msk.bf16.mxu0 %vm15937_vm3, %v16215_v28  ;;  %12867 = vmatprep.mubr.msk.bf16.mxu1 %vm15937_vm3, %v16215_v28 }
 0x42f   : > { %v4767_v0 = vrot.slane %v4360_v43, 2  ;;  %12784 = vmatmul.mubr.msk.bf16.gmra.mrb[200].mxu0 %vm15945_vm4, %v16220_v10  ;;  %12868 = vmatmul.mubr.msk.bf16.gmra.mrb[12].mxu1 %vm15945_vm4, %v16220_v10 }
 0x430   : > { %v4975_v54 = vsel %vm4911_vm1, %v4879_v12, %v4943_v56  ;;  %v4976_v40 = vsel %vm4912_vm2, %v4880_v14, %v4944_v20  ;;  %v16261_v14 = vld [vmem:[%s17539_s5 + $0x40] sm:$0xff]  }
 0x431   : > { %v5051_v49 = vrot.slane %v4975_v54, 7  ;;  %v5052_v2 = vrot.slane %v4976_v40, 7  ;;  %v4768_v16 = vsel %vm4705_vm7, %v4766_v19, %v4767_v0  ;;  %v4770_v57 = vsel %vm4705_vm7, %v4767_v0, %v4769_v50  ;;  %13047 = vmatprep.subr.bf16.mxu1 %v16261_v14 }
 0x432   : > { %v4842_v18 = vadd.f32 %v4768_v16, %v15866_v9  ;;  %v4843_v31 = vadd.f32 %v4770_v57, %v15869_v48  ;;  %v12717_v55 = vpop.f32.mrb[212].mxu1 }
 0x433   : > { %v5053_v42 = vsel %vm5017_vm8, %v5051_v49, %v5052_v2  ;;  %v4372_v34 = vpop.f32.mrb[213].mxu1  ;;  %v16244_v35 = vpack.c.bf16 %v17594_v22, %v5052_v2  ;;  %v4774_v48 = vrot.slane %v12717_v55, 2 }
 0x434   : > { %v16239_v5 = vpack.c.bf16 %v5053_v42, %v5051_v49  ;;  %v4881_v15 = vadd.f32 %v15921_v47, %v4842_v18  ;;  %v4882_v62 = vadd.f32 %v15921_v47, %v4843_v31  ;;  %v12718_v17 = vpop.f32.mrb[214].mxu1  ;;  %v4771_v53 = vrot.slane %v4372_v34, 2 }
 0x435   : > { %v4375_v21 = vpop.f32.mrb[215].mxu1 }
 0x436   : > { %vm4913_vm6 = vcmp.ge.f32.partialorder %v4881_v15, 0.0  ;;  %vm4914_vm5 = vcmp.ge.f32.partialorder %v4882_v62, 0.0  ;;  %v4945_v9 = vmul.f32 0.2, %v4881_v15  ;;  %v4946_v37 = vmul.f32 0.2, %v4882_v62  ;;  %12787 = vmatprep.mubr.msk.bf16.mxu0 %vm15937_vm3, %v16239_v5  ;;  %12871 = vmatprep.mubr.msk.bf16.mxu1 %vm15937_vm3, %v16239_v5 }
 0x437   : > { %v4772_v12 = vrot.slane %v4375_v21, 2  ;;  %12788 = vmatmul.mubr.msk.bf16.gmra.mrb[204].mxu0 %vm15945_vm4, %v16244_v35  ;;  %12872 = vmatmul.mubr.msk.bf16.gmra.mrb[16].mxu1 %vm15945_vm4, %v16244_v35 }
 0x438   : > { %v4977_v33 = vsel %vm4913_vm6, %v4881_v15, %v4945_v9  ;;  %v4978_v43 = vsel %vm4914_vm5, %v4882_v62, %v4946_v37 }
 0x439   : > { %v5054_v56 = vrot.slane %v4977_v33, 7  ;;  %v5055_v20 = vrot.slane %v4978_v43, 7  ;;  %v4773_v50 = vsel %vm4705_vm7, %v4771_v53, %v4772_v12  ;;  %v4775_v19 = vsel %vm4705_vm7, %v4772_v12, %v4774_v48 }
 0x43a   : > { %v4844_v0 = vadd.f32 %v4773_v50, %v15874_v11  ;;  %v4845_v54 = vadd.f32 %v4775_v19, %v15877_v29  ;;  %v12721_v40 = vpop.f32.mrb[216].mxu1 }
 0x43b   : > { %v5056_v49 = vsel %vm5017_vm8, %v5054_v56, %v5055_v20  ;;  %v4387_v2 = vpop.f32.mrb[217].mxu1  ;;  %v16274_v55 = vpack.c.bf16 %v17594_v22, %v5055_v20  ;;  %v4779_v29 = vrot.slane %v12721_v40, 2 }
 0x43c   : > { %v16269_v16 = vpack.c.bf16 %v5056_v49, %v5054_v56  ;;  %v4883_v57 = vadd.f32 %v15921_v47, %v4844_v0  ;;  %v4884_v18 = vadd.f32 %v15921_v47, %v4845_v54  ;;  %v12722_v31 = vpop.f32.mrb[218].mxu1  ;;  %v4776_v15 = vrot.slane %v4387_v2, 2 }
 0x43d   : > { %v4390_v42 = vpop.f32.mrb[219].mxu1 }
 0x43e   : > { %vm4915_vm9 = vcmp.ge.f32.partialorder %v4883_v57, 0.0  ;;  %vm4916_vm10 = vcmp.ge.f32.partialorder %v4884_v18, 0.0  ;;  %v4947_v11 = vmul.f32 0.2, %v4883_v57  ;;  %v4948_v34 = vmul.f32 0.2, %v4884_v18  ;;  %12791 = vmatprep.mubr.msk.bf16.mxu0 %vm15937_vm3, %v16269_v16  ;;  %12875 = vmatprep.mubr.msk.bf16.mxu1 %vm15937_vm3, %v16269_v16 }
 0x43f   : > { %v4777_v62 = vrot.slane %v4390_v42, 2  ;;  %12792 = vmatmul.mubr.msk.bf16.gmra.mrb[208].mxu0 %vm15945_vm4, %v16274_v55  ;;  %12876 = vmatmul.mubr.msk.bf16.gmra.mrb[20].mxu1 %vm15945_vm4, %v16274_v55 }
 0x440   : > { %v4979_v17 = vsel %vm4915_vm9, %v4883_v57, %v4947_v11  ;;  %v4980_v21 = vsel %vm4916_vm10, %v4884_v18, %v4948_v34 }
 0x441   : > { %v5057_v9 = vrot.slane %v4979_v17, 7  ;;  %v5058_v37 = vrot.slane %v4980_v21, 7  ;;  %v4778_v48 = vsel %vm4705_vm7, %v4776_v15, %v4777_v62  ;;  %v4780_v53 = vsel %vm4705_vm7, %v4777_v62, %v4779_v29 }
 0x442   : > { %v4846_v12 = vadd.f32 %v4778_v48, %v15885_v45  ;;  %v4847_v33 = vadd.f32 %v4780_v53, %v15888_v6  ;;  %v12725_v43 = vpop.f32.mrb[220].mxu1 }
 0x443   : > { %v5059_v56 = vsel %vm5017_vm8, %v5057_v9, %v5058_v37  ;;  %v4402_v20 = vpop.f32.mrb[221].mxu1  ;;  %v16298_v40 = vpack.c.bf16 %v17594_v22, %v5058_v37  ;;  %v4784_v6 = vrot.slane %v12725_v43, 2 }
 0x444   : > { %v16293_v50 = vpack.c.bf16 %v5059_v56, %v5057_v9  ;;  %v4885_v19 = vadd.f32 %v15921_v47, %v4846_v12  ;;  %v4886_v0 = vadd.f32 %v15921_v47, %v4847_v33  ;;  %v12726_v54 = vpop.f32.mrb[222].mxu1  ;;  %v4781_v57 = vrot.slane %v4402_v20, 2 }
 0x445   : > { %v4405_v49 = vpop.f32.mrb[223].mxu1 }
 0x446   : > { %vm4917_vm11 = vcmp.ge.f32.partialorder %v4885_v19, 0.0  ;;  %vm4918_vm12 = vcmp.ge.f32.partialorder %v4886_v0, 0.0  ;;  %v4949_v45 = vmul.f32 0.2, %v4885_v19  ;;  %v4950_v2 = vmul.f32 0.2, %v4886_v0  ;;  %12795 = vmatprep.mubr.msk.bf16.mxu0 %vm15937_vm3, %v16293_v50  ;;  %12879 = vmatprep.mubr.msk.bf16.mxu1 %vm15937_vm3, %v16293_v50 }
 0x447   : > { %v4782_v18 = vrot.slane %v4405_v49, 2  ;;  %12796 = vmatmul.mubr.msk.bf16.gmra.mrb[212].mxu0 %vm15945_vm4, %v16298_v40  ;;  %12880 = vmatmul.mubr.msk.bf16.gmra.mrb[24].mxu1 %vm15945_vm4, %v16298_v40 }
 0x448   : > { %v4981_v31 = vsel %vm4917_vm11, %v4885_v19, %v4949_v45  ;;  %v4982_v42 = vsel %vm4918_vm12, %v4886_v0, %v4950_v2  ;;  %v14119_v2 = vld [vmem:[%s17539_s5 + $0x48] sm:$0xff]  }
 0x449   : > { %v5060_v11 = vrot.slane %v4981_v31, 7  ;;  %v5061_v34 = vrot.slane %v4982_v42, 7  ;;  %v4783_v29 = vsel %vm4705_vm7, %v4781_v57, %v4782_v18  ;;  %v4785_v15 = vsel %vm4705_vm7, %v4782_v18, %v4784_v6  ;;  %v14113_v6 = vld [vmem:[%s17539_s5 + $0x148] sm:$0xff]   ;;  %v14114_v57 = vld [vmem:[%s17539_s5 + $0x150] sm:$0xff]   ;;  %v14115_v18 = vld [vmem:[%s17539_s5 + $0x158] sm:$0xff]  }
 0x44a   : > { %v4848_v62 = vadd.f32 %v4783_v29, %v15899_v36  ;;  %v4849_v17 = vadd.f32 %v4785_v15, %v15902_v44  ;;  %v12825_v21 = vpop.f32.mrb[224].mxu1  ;;  %v14124_v31 = vld [vmem:[%s17539_s5 + $0x68] sm:$0xff]   ;;  %v14116_v42 = vld [vmem:[%s17539_s5 + $0x160] sm:$0xff]   ;;  %v14127_v29 = vld [vmem:[%s17539_s5 + $0x78] sm:$0xff]  }
 0x44b   : > { %v5062_v9 = vsel %vm5017_vm8, %v5060_v11, %v5061_v34  ;;  %v16317_v37 = vpop.f32.mrb[225].mxu1  ;;  %v16324_v43 = vpack.c.bf16 %v17594_v22, %v5061_v34  ;;  %v14117_v34 = vld [vmem:[%s17539_s5 + $0x168] sm:$0xff]   ;;  %v14120_v15 = vld [vmem:[%s17539_s5 + $0x170] sm:$0xff]  }
 0x44c   : > { %v16319_v48 = vpack.c.bf16 %v5062_v9, %v5060_v11  ;;  %v4887_v53 = vadd.f32 %v15921_v47, %v4848_v62  ;;  %v4888_v12 = vadd.f32 %v15921_v47, %v4849_v17  ;;  %v12826_v33 = vpop.f32.mrb[226].mxu1  ;;  %v14126_v11 = vld [vmem:[%s17539_s5 + $0x70] sm:$0xff]   ;;  %v14125_v62 = vld [vmem:[%s17539_s5 + $0x178] sm:$0xff]   ;;  %v16459_v17 = vld [vmem:[%s17539_s5 + $0x80] sm:$0xff]  }
 0x44d   : > { %v16326_v56 = vpop.f32.mrb[227].mxu1 }
 0x44e   : > { %vm4919_vm13 = vcmp.ge.f32.partialorder %v4887_v53, 0.0  ;;  %vm4920_vm14 = vcmp.ge.f32.partialorder %v4888_v12, 0.0  ;;  %v4951_v36 = vmul.f32 0.2, %v4887_v53  ;;  %v4952_v44 = vmul.f32 0.2, %v4888_v12  ;;  %12799 = vmatprep.mubr.msk.bf16.mxu0 %vm15937_vm3, %v16319_v48  ;;  %12883 = vmatprep.mubr.msk.bf16.mxu1 %vm15937_vm3, %v16319_v48 }
 0x44f   : > { %12800 = vmatmul.mubr.msk.bf16.gmra.mrb[216].mxu0 %vm15945_vm4, %v16324_v43  ;;  %12884 = vmatmul.mubr.msk.bf16.gmra.mrb[28].mxu1 %vm15945_vm4, %v16324_v43 }
 0x450   : > { %v4983_v47 = vsel %vm4919_vm13, %v4887_v53, %v4951_v36  ;;  %v4984_v20 = vsel %vm4920_vm14, %v4888_v12, %v4952_v44  ;;  %12983 = vmatprep.mubr.msk.bf16.mxu1 %vm15937_vm3, %v15941_v8 }
 0x451   : > { %v5063_v19 = vrot.slane %v4983_v47, 7  ;;  %v5064_v0 = vrot.slane %v4984_v20, 7 }
 0x453   : > { %v5065_v54 = vsel %vm5017_vm8, %v5063_v19, %v5064_v0  ;;  %v16347_v45 = vpack.c.bf16 %v17594_v22, %v5064_v0  ;;  %v14121_v22 = vld [vmem:[%s17539_s5 + $0x50] sm:$0xff]   ;;  %v16555_v0 = vld [vmem:[%s17539_s5 + $0x1c0] sm:$0xff]  }
 0x454   : > { %v16344_v49 = vpack.c.bf16 %v5065_v54, %v5063_v19 }
 0x456   : > { %12803 = vmatprep.mubr.msk.bf16.mxu0 %vm15937_vm3, %v16344_v49 }
 0x457   : > { %12804 = vmatmul.mubr.msk.bf16.gmra.mrb[220].mxu0 %vm15945_vm4, %v16347_v45  ;;  %12984 = vmatmul.mubr.msk.bf16.vlgmr.msra.gmra.mrb[32].mxu1 %vm15945_vm4, %v15950_v4 }
 0x458   : > { %12903 = vmatprep.mubr.msk.bf16.mxu0 %vm15937_vm3, %v15978_v52  ;;  %12987 = vmatprep.mubr.msk.bf16.mxu1 %vm15937_vm3, %v15978_v52 }
 0x459   : > { %13048 = vmatpush3.bf16.msra.mxu1 %v16261_v14  ;;  %v14122_v14 = vld [vmem:[%s17539_s5 + $0x58] sm:$0xff]  }
 0x45a   : > { %13049 = vmatprep.subr.bf16.mxu1 %v14119_v2 }
 0x45d   : > { %13050 = vmatpush3.bf16.msra.mxu1 %v14119_v2 }
 0x45e   : > { %13051 = vmatprep.subr.bf16.mxu1 %v14121_v22 }
 0x45f   : > { %12904 = vmatmul.mubr.msk.bf16.vlgmr.msra.gmra.mrb[224].mxu0 %vm15945_vm4, %v15983_v23  ;;  %12988 = vmatmul.mubr.msk.bf16.gmra.mrb[36].mxu1 %vm15945_vm4, %v15983_v23 }
 0x460   : > { %13208 = vmatpush3.bf16.msra.mxu0 %v16065_v25  ;;  %12907 = vmatprep.mubr.msk.bf16.mxu0 %vm15937_vm3, %v16008_v60  ;;  %v14123_v25 = vld [vmem:[%s17539_s5 + $0x60] sm:$0xff]  }
 0x461   : > { %12991 = vmatprep.mubr.msk.bf16.mxu1 %vm15937_vm3, %v16008_v60  ;;  %13209 = vmatprep.subr.bf16.mxu0 %v14113_v6 }
 0x462   : > { %13052 = vmatpush3.bf16.msra.mxu1 %v14121_v22 }
 0x463   : > { %13053 = vmatprep.subr.bf16.mxu1 %v14122_v14 }
 0x464   : > { %13210 = vmatpush3.bf16.msra.mxu0 %v14113_v6 }
 0x465   : > { %13211 = vmatprep.subr.bf16.mxu0 %v14114_v57 }
 0x466   : > { %13054 = vmatpush3.bf16.msra.mxu1 %v14122_v14 }
 0x467   : > { %12908 = vmatmul.mubr.msk.bf16.gmra.mrb[228].mxu0 %vm15945_vm4, %v16013_v41  ;;  %12992 = vmatmul.mubr.msk.bf16.gmra.mrb[40].mxu1 %vm15945_vm4, %v16013_v41 }
 0x468   : > { %12911 = vmatprep.mubr.msk.bf16.mxu0 %vm15937_vm3, %v16038_v61  ;;  %12995 = vmatprep.mubr.msk.bf16.mxu1 %vm15937_vm3, %v16038_v61 }
 0x469   : > { %13212 = vmatpush3.bf16.msra.mxu0 %v14114_v57  ;;  %13055 = vmatprep.subr.bf16.mxu1 %v14123_v25 }
 0x46a   : > { %13213 = vmatprep.subr.bf16.mxu0 %v14115_v18  ;;  %13056 = vmatpush3.bf16.msra.mxu1 %v14123_v25 }
 0x46b   : > { %13057 = vmatprep.subr.bf16.mxu1 %v14124_v31 }
 0x46d   : > { %13214 = vmatpush3.bf16.msra.mxu0 %v14115_v18 }
 0x46e   : > { %13215 = vmatprep.subr.bf16.mxu0 %v14116_v42  ;;  %13058 = vmatpush3.bf16.msra.mxu1 %v14124_v31 }
 0x46f   : > { %12912 = vmatmul.mubr.msk.bf16.gmra.mrb[232].mxu0 %vm15945_vm4, %v16043_v38  ;;  %12996 = vmatmul.mubr.msk.bf16.gmra.mrb[44].mxu1 %vm15945_vm4, %v16043_v38 }
 0x470   : > { %12915 = vmatprep.mubr.msk.bf16.mxu0 %vm15937_vm3, %v16070_v1  ;;  %12999 = vmatprep.mubr.msk.bf16.mxu1 %vm15937_vm3, %v16070_v1 }
 0x471   : > { %13216 = vmatpush3.bf16.msra.mxu0 %v14116_v42  ;;  %13059 = vmatprep.subr.bf16.mxu1 %v14126_v11 }
 0x472   : > { %13217 = vmatprep.subr.bf16.mxu0 %v14117_v34  ;;  %13060 = vmatpush3.bf16.msra.mxu1 %v14126_v11 }
 0x473   : > { %13061 = vmatprep.subr.bf16.mxu1 %v14127_v29 }
 0x475   : > { %13218 = vmatpush3.bf16.msra.mxu0 %v14117_v34 }
 0x476   : > { %13219 = vmatprep.subr.bf16.mxu0 %v14120_v15  ;;  %13062 = vmatpush3.bf16.msra.mxu1 %v14127_v29 }
 0x477   : > { %12916 = vmatmul.mubr.msk.bf16.gmra.mrb[236].mxu0 %vm15945_vm4, %v16075_v3  ;;  %13000 = vmatmul.mubr.msk.bf16.gmra.mrb[48].mxu1 %vm15945_vm4, %v16075_v3 }
 0x478   : > { %12919 = vmatprep.mubr.msk.bf16.mxu0 %vm15937_vm3, %v16095_v32  ;;  %13003 = vmatprep.mubr.msk.bf16.mxu1 %vm15937_vm3, %v16095_v32 }
 0x479   : > { %13220 = vmatpush3.bf16.msra.mxu0 %v14120_v15  ;;  %13127 = vmatprep.subr.bf16.mxu1 %v16555_v0 }
 0x47a   : > { %13221 = vmatprep.subr.bf16.mxu0 %v14125_v62 }
 0x47d   : > { %13222 = vmatpush3.bf16.msra.mxu0 %v14125_v62 }
 0x47e   : > { %13287 = vmatprep.subr.bf16.mxu0 %v16459_v17 }
 0x47f   : > { %12920 = vmatmul.mubr.msk.bf16.gmra.mrb[240].mxu0 %vm15945_vm4, %v16100_v13  ;;  %13004 = vmatmul.mubr.msk.bf16.gmra.mrb[52].mxu1 %vm15945_vm4, %v16100_v13 }
 0x480   : > { %12923 = vmatprep.mubr.msk.bf16.mxu0 %vm15937_vm3, %v16119_v51  ;;  %13007 = vmatprep.mubr.msk.bf16.mxu1 %vm15937_vm3, %v16119_v51 }
 0x487   : > { %12924 = vmatmul.mubr.msk.bf16.gmra.mrb[244].mxu0 %vm15945_vm4, %v16124_v46  ;;  %13008 = vmatmul.mubr.msk.bf16.gmra.mrb[56].mxu1 %vm15945_vm4, %v16124_v46 }
 0x488   : > { %12927 = vmatprep.mubr.msk.bf16.mxu0 %vm15937_vm3, %v16143_v7  ;;  %13011 = vmatprep.mubr.msk.bf16.mxu1 %vm15937_vm3, %v16143_v7 }
 0x48f   : > { %12928 = vmatmul.mubr.msk.bf16.gmra.mrb[248].mxu0 %vm15945_vm4, %v16148_v27  ;;  %13012 = vmatmul.mubr.msk.bf16.gmra.mrb[60].mxu1 %vm15945_vm4, %v16148_v27 }
 0x490   : > { %12931 = vmatprep.mubr.msk.bf16.mxu0 %vm15937_vm3, %v16167_v39  ;;  %13015 = vmatprep.mubr.msk.bf16.mxu1 %vm15937_vm3, %v16167_v39 }
 0x497   : > { %12932 = vmatmul.mubr.msk.bf16.gmra.mrb[252].mxu0 %vm15945_vm4, %v16172_v58  ;;  %13016 = vmatmul.mubr.msk.bf16.gmra.mrb[64].mxu1 %vm15945_vm4, %v16172_v58 }
 0x498   : > { %12935 = vmatprep.mubr.msk.bf16.mxu0 %vm15937_vm3, %v16191_v63  ;;  %13019 = vmatprep.mubr.msk.bf16.mxu1 %vm15937_vm3, %v16191_v63 }
 0x49f   : > { %12936 = vmatmul.mubr.msk.bf16.gmra.mrb[0].mxu0 %vm15945_vm4, %v16196_v59  ;;  %13020 = vmatmul.mubr.msk.bf16.gmra.mrb[68].mxu1 %vm15945_vm4, %v16196_v59 }
 0x4a0   : > { %12939 = vmatprep.mubr.msk.bf16.mxu0 %vm15937_vm3, %v16215_v28  ;;  %13023 = vmatprep.mubr.msk.bf16.mxu1 %vm15937_vm3, %v16215_v28 }
 0x4a7   : > { %12940 = vmatmul.mubr.msk.bf16.gmra.mrb[4].mxu0 %vm15945_vm4, %v16220_v10  ;;  %13024 = vmatmul.mubr.msk.bf16.gmra.mrb[72].mxu1 %vm15945_vm4, %v16220_v10 }
 0x4a8   : > { %12943 = vmatprep.mubr.msk.bf16.mxu0 %vm15937_vm3, %v16239_v5  ;;  %13027 = vmatprep.mubr.msk.bf16.mxu1 %vm15937_vm3, %v16239_v5 }
 0x4af   : > { %12944 = vmatmul.mubr.msk.bf16.gmra.mrb[8].mxu0 %vm15945_vm4, %v16244_v35  ;;  %13028 = vmatmul.mubr.msk.bf16.gmra.mrb[76].mxu1 %vm15945_vm4, %v16244_v35 }
 0x4b0   : > { %12947 = vmatprep.mubr.msk.bf16.mxu0 %vm15937_vm3, %v16269_v16  ;;  %13031 = vmatprep.mubr.msk.bf16.mxu1 %vm15937_vm3, %v16269_v16 }
 0x4b1   : > { %v12745_v21 = vpop.f32.mrb[160].mxu0  ;;  %v12829_v9 = vpop.f32.mrb[228].mxu1 }
 0x4b2   : > { %v5293_v53 = vpop.f32.mrb[161].mxu0  ;;  %v5612_v12 = vpop.f32.mrb[229].mxu1 }
 0x4b3   : > { %v16547_v33 = vadd.f32 %v16317_v37, %v5293_v53  ;;  %v12746_v36 = vpop.f32.mrb[162].mxu0  ;;  %v12830_v44 = vpop.f32.mrb[230].mxu1 }
 0x4b4   : > { %v5296_v47 = vpop.f32.mrb[163].mxu0  ;;  %v5615_v20 = vpop.f32.mrb[231].mxu1 }
 0x4b5   : > { %v16550_v19 = vadd.f32 %v16326_v56, %v5296_v47 }
 0x4b7   : > { %12948 = vmatmul.mubr.msk.bf16.gmra.mrb[12].mxu0 %vm15945_vm4, %v16274_v55  ;;  %13032 = vmatmul.mubr.msk.bf16.gmra.mrb[80].mxu1 %vm15945_vm4, %v16274_v55 }
 0x4b8   : > { %12951 = vmatprep.mubr.msk.bf16.mxu0 %vm15937_vm3, %v16293_v50  ;;  %13035 = vmatprep.mubr.msk.bf16.mxu1 %vm15937_vm3, %v16293_v50 }
 0x4ba   : > { %v12749_v37 = vpop.f32.mrb[164].mxu0  ;;  %v12833_v56 = vpop.f32.mrb[232].mxu1 }
 0x4bb   : > { %v5307_v54 = vpop.f32.mrb[165].mxu0  ;;  %v5626_v2 = vpop.f32.mrb[233].mxu1 }
 0x4bc   : > { %v16570_v22 = vadd.f32 %v5612_v12, %v5307_v54  ;;  %v12750_v6 = vpop.f32.mrb[166].mxu0  ;;  %v12834_v14 = vpop.f32.mrb[234].mxu1 }
 0x4bd   : > { %v5310_v57 = vpop.f32.mrb[167].mxu0  ;;  %v5629_v25 = vpop.f32.mrb[235].mxu1 }
 0x4be   : > { %v16572_v18 = vadd.f32 %v5615_v20, %v5310_v57 }
 0x4bf   : > { %12952 = vmatmul.mubr.msk.bf16.gmra.mrb[16].mxu0 %vm15945_vm4, %v16298_v40  ;;  %13036 = vmatmul.mubr.msk.bf16.gmra.mrb[84].mxu1 %vm15945_vm4, %v16298_v40 }
 0x4c0   : > { %12955 = vmatprep.mubr.msk.bf16.mxu0 %vm15937_vm3, %v16319_v48  ;;  %13039 = vmatprep.mubr.msk.bf16.mxu1 %vm15937_vm3, %v16319_v48 }
 0x4c2   : > { %v12753_v31 = vpop.f32.mrb[168].mxu0  ;;  %v12837_v42 = vpop.f32.mrb[236].mxu1 }
 0x4c3   : > { %v5321_v11 = vpop.f32.mrb[169].mxu0  ;;  %v5640_v34 = vpop.f32.mrb[237].mxu1 }
 0x4c4   : > { %v16586_v29 = vadd.f32 %v5626_v2, %v5321_v11  ;;  %v12754_v15 = vpop.f32.mrb[170].mxu0  ;;  %v12838_v62 = vpop.f32.mrb[238].mxu1 }
 0x4c5   : > { %v5324_v21 = vpop.f32.mrb[171].mxu0  ;;  %v5643_v9 = vpop.f32.mrb[239].mxu1 }
 0x4c6   : > { %v16588_v53 = vadd.f32 %v5629_v25, %v5324_v21 }
 0x4c7   : > { %12956 = vmatmul.mubr.msk.bf16.gmra.mrb[20].mxu0 %vm15945_vm4, %v16324_v43  ;;  %13040 = vmatmul.mubr.msk.bf16.gmra.mrb[88].mxu1 %vm15945_vm4, %v16324_v43 }
 0x4c8   : > { %12959 = vmatprep.mubr.msk.bf16.mxu0 %vm15937_vm3, %v16344_v49  ;;  %13043 = vmatprep.mubr.msk.bf16.mxu1 %vm15937_vm3, %v16344_v49 }
 0x4ca   : > { %v12757_v12 = vpop.f32.mrb[172].mxu0  ;;  %v12841_v36 = vpop.f32.mrb[240].mxu1 }
 0x4cb   : > { %v5335_v44 = vpop.f32.mrb[173].mxu0  ;;  %v5654_v47 = vpop.f32.mrb[241].mxu1 }
 0x4cc   : > { %v16602_v20 = vadd.f32 %v5640_v34, %v5335_v44  ;;  %v12758_v37 = vpop.f32.mrb[174].mxu0  ;;  %v12842_v56 = vpop.f32.mrb[242].mxu1  ;;  %v14137_v44 = vld [vmem:[%s17539_s5 + $0x1d0] sm:$0xff]  }
 0x4cd   : > { %v5338_v54 = vpop.f32.mrb[175].mxu0  ;;  %v5657_v2 = vpop.f32.mrb[243].mxu1 }
 0x4ce   : > { %v16604_v6 = vadd.f32 %v5643_v9, %v5338_v54  ;;  %v14135_v9 = vld [vmem:[%s17539_s5 + $0x1c8] sm:$0xff]  }
 0x4cf   : > { %12960 = vmatmul.mubr.msk.bf16.gmra.mrb[24].mxu0 %vm15945_vm4, %v16347_v45  ;;  %13044 = vmatmul.mubr.msk.bf16.gmra.mrb[92].mxu1 %vm15945_vm4, %v16347_v45 }
 0x4d0   : > { %12963 = vmatprep.mubr.bf16.mxu0 %v17564_v26  ;;  %13063 = vmatprep.mubr.bf16.mxu1 %v17564_v26 }
 0x4d2   : > { %v12761_v14 = vpop.f32.mrb[176].mxu0  ;;  %v12845_v57 = vpop.f32.mrb[244].mxu1 }
 0x4d3   : > { %v5349_v25 = vpop.f32.mrb[177].mxu0  ;;  %v5668_v31 = vpop.f32.mrb[245].mxu1 }
 0x4d4   : > { %v16614_v42 = vadd.f32 %v5654_v47, %v5349_v25  ;;  %v12762_v11 = vpop.f32.mrb[178].mxu0  ;;  %v12846_v34 = vpop.f32.mrb[246].mxu1  ;;  %v14129_v25 = vld [vmem:[%s17539_s5 + $0x88] sm:$0xff]  }
 0x4d5   : > { %v5352_v15 = vpop.f32.mrb[179].mxu0  ;;  %v5671_v62 = vpop.f32.mrb[247].mxu1  ;;  %v14130_v11 = vld [vmem:[%s17539_s5 + $0x90] sm:$0xff]  }
 0x4d6   : > { %v16616_v21 = vadd.f32 %v5657_v2, %v5352_v15 }
 0x4d7   : > { %12964 = vmatmul.mubr.bf16.gmra.mrb[28].mxu0 %v17564_v26  ;;  %13064 = vmatmul.mubr.bf16.vlgmr.msra.gmra.mrb[32].mxu1 %v17564_v26 }
 0x4d8   : > { %13067 = vmatprep.mubr.msk.bf16.mxu1 %vm15937_vm3, %v15941_v8  ;;  %13223 = vmatprep.mubr.msk.bf16.mxu0 %vm15937_vm3, %v15941_v8 }
 0x4d9   : > { %13128 = vmatpush3.bf16.msra.mxu1 %v16555_v0 }
 0x4da   : > { %v12765_v12 = vpop.f32.mrb[180].mxu0  ;;  %v12849_v36 = vpop.f32.mrb[248].mxu1  ;;  %13129 = vmatprep.subr.bf16.mxu1 %v14135_v9 }
 0x4db   : > { %v5363_v47 = vpop.f32.mrb[181].mxu0  ;;  %v5682_v37 = vpop.f32.mrb[249].mxu1 }
 0x4dc   : > { %v16633_v56 = vadd.f32 %v5668_v31, %v5363_v47  ;;  %v12766_v54 = vpop.f32.mrb[182].mxu0  ;;  %v12850_v2 = vpop.f32.mrb[250].mxu1  ;;  %v14138_v31 = vld [vmem:[%s17539_s5 + $0x1d8] sm:$0xff]  }
 0x4dd   : > { %v5366_v14 = vpop.f32.mrb[183].mxu0  ;;  %v5685_v57 = vpop.f32.mrb[251].mxu1  ;;  %13130 = vmatpush3.bf16.msra.mxu1 %v14135_v9  ;;  %v14139_v2 = vld [vmem:[%s17539_s5 + $0x1e0] sm:$0xff]  }
 0x4de   : > { %v16638_v0 = vadd.f32 %v5671_v62, %v5366_v14  ;;  %13131 = vmatprep.subr.bf16.mxu1 %v14137_v44 }
 0x4df   : > { %13068 = vmatmul.mubr.msk.bf16.gmra.mrb[36].mxu1 %vm15945_vm4, %v15950_v4  ;;  %13224 = vmatmul.mubr.msk.bf16.vlgmr.msra.gmra.mrb[32].mxu0 %vm15945_vm4, %v15950_v4 }
 0x4e0   : > { %13288 = vmatpush3.bf16.msra.mxu0 %v16459_v17  ;;  %13071 = vmatprep.mubr.msk.bf16.mxu1 %vm15937_vm3, %v15978_v52 }
 0x4e1   : > { %13227 = vmatprep.mubr.msk.bf16.mxu0 %vm15937_vm3, %v15978_v52  ;;  %13289 = vmatprep.subr.bf16.mxu0 %v14129_v25 }
 0x4e2   : > { %v12769_v34 = vpop.f32.mrb[184].mxu0  ;;  %v12853_v15 = vpop.f32.mrb[252].mxu1  ;;  %13132 = vmatpush3.bf16.msra.mxu1 %v14137_v44  ;;  %v14131_v44 = vld [vmem:[%s17539_s5 + $0x98] sm:$0xff]  }
 0x4e3   : > { %v5377_v62 = vpop.f32.mrb[185].mxu0  ;;  %v5696_v9 = vpop.f32.mrb[253].mxu1  ;;  %13133 = vmatprep.subr.bf16.mxu1 %v14138_v31 }
 0x4e4   : > { %v16659_v17 = vadd.f32 %v5682_v37, %v5377_v62  ;;  %v12770_v12 = vpop.f32.mrb[186].mxu0  ;;  %v12854_v36 = vpop.f32.mrb[254].mxu1  ;;  %13290 = vmatpush3.bf16.msra.mxu0 %v14129_v25  ;;  %v14140_v37 = vld [vmem:[%s17539_s5 + $0x1e8] sm:$0xff]  }
 0x4e5   : > { %v5380_v47 = vpop.f32.mrb[187].mxu0  ;;  %v5699_v54 = vpop.f32.mrb[255].mxu1  ;;  %13291 = vmatprep.subr.bf16.mxu0 %v14130_v11 }
 0x4e6   : > { %v16664_v14 = vadd.f32 %v5685_v57, %v5380_v47  ;;  %13134 = vmatpush3.bf16.msra.mxu1 %v14138_v31  ;;  %v14132_v31 = vld [vmem:[%s17539_s5 + $0xa0] sm:$0xff]  }
 0x4e7   : > { %13072 = vmatmul.mubr.msk.bf16.gmra.mrb[40].mxu1 %vm15945_vm4, %v15983_v23  ;;  %13228 = vmatmul.mubr.msk.bf16.gmra.mrb[36].mxu0 %vm15945_vm4, %v15983_v23 }
 0x4e8   : > { %13075 = vmatprep.mubr.msk.bf16.mxu1 %vm15937_vm3, %v16008_v60  ;;  %13231 = vmatprep.mubr.msk.bf16.mxu0 %vm15937_vm3, %v16008_v60 }
 0x4e9   : > { %13292 = vmatpush3.bf16.msra.mxu0 %v14130_v11  ;;  %13135 = vmatprep.subr.bf16.mxu1 %v14139_v2  ;;  %v14142_v11 = vld [vmem:[%s17539_s5 + $0x1f0] sm:$0xff]  }
 0x4ea   : > { %v12773_v57 = vpop.f32.mrb[188].mxu0  ;;  %v12857_v25 = vpop.f32.mrb[0].mxu1  ;;  %13293 = vmatprep.subr.bf16.mxu0 %v14131_v44  ;;  %13136 = vmatpush3.bf16.msra.mxu1 %v14139_v2  ;;  %v14133_v2 = vld [vmem:[%s17539_s5 + $0xa8] sm:$0xff]  }
 0x4eb   : > { %v5391_v34 = vpop.f32.mrb[189].mxu0  ;;  %v5710_v15 = vpop.f32.mrb[1].mxu1  ;;  %13137 = vmatprep.subr.bf16.mxu1 %v14140_v37 }
 0x4ec   : > { %v16687_v62 = vadd.f32 %v5696_v9, %v5391_v34  ;;  %v12774_v12 = vpop.f32.mrb[190].mxu0  ;;  %v12858_v36 = vpop.f32.mrb[2].mxu1  ;;  %v14143_v9 = vld [vmem:[%s17539_s5 + $0x1f8] sm:$0xff]  }
 0x4ed   : > { %v5394_v47 = vpop.f32.mrb[191].mxu0  ;;  %v5713_v4 = vpop.f32.mrb[3].mxu1  ;;  %13294 = vmatpush3.bf16.msra.mxu0 %v14131_v44 }
 0x4ee   : > { %17596 = vst [vmem:[#allocation10_spill] sm:$0xff] %v16687_v62  ;;  %v16692_v57 = vadd.f32 %v5699_v54, %v5394_v47  ;;  %13295 = vmatprep.subr.bf16.mxu0 %v14132_v31  ;;  %13138 = vmatpush3.bf16.msra.mxu1 %v14140_v37  ;;  %v14136_v37 = vld [vmem:[%s17539_s5 + $0xb0] sm:$0xff]  }
 0x4ef   : > { %13076 = vmatmul.mubr.msk.bf16.gmra.mrb[44].mxu1 %vm15945_vm4, %v16013_v41  ;;  %13232 = vmatmul.mubr.msk.bf16.gmra.mrb[40].mxu0 %vm15945_vm4, %v16013_v41 }
 0x4f0   : > { %17597 = vst [vmem:[#allocation11_spill] sm:$0xff] %v16692_v57  ;;  %13079 = vmatprep.mubr.msk.bf16.mxu1 %vm15937_vm3, %v16038_v61  ;;  %13235 = vmatprep.mubr.msk.bf16.mxu0 %vm15937_vm3, %v16038_v61 }
 0x4f1   : > { %13296 = vmatpush3.bf16.msra.mxu0 %v14132_v31  ;;  %13139 = vmatprep.subr.bf16.mxu1 %v14142_v11 }
 0x4f2   : > { %v12777_v54 = vpop.f32.mrb[192].mxu0  ;;  %v12861_v44 = vpop.f32.mrb[4].mxu1  ;;  %13297 = vmatprep.subr.bf16.mxu0 %v14133_v2  ;;  %13140 = vmatpush3.bf16.msra.mxu1 %v14142_v11  ;;  %v16737_v11 = vld [vmem:[%s17539_s5 + $0x200] sm:$0xff]  }
 0x4f3   : > { %v5405_v25 = vpop.f32.mrb[193].mxu0  ;;  %v5724_v34 = vpop.f32.mrb[5].mxu1  ;;  %13141 = vmatprep.subr.bf16.mxu1 %v14143_v9  ;;  %v14141_v54 = vld [vmem:[%s17539_s5 + $0xb8] sm:$0xff]  }
 0x4f4   : > { %v16715_v12 = vadd.f32 %v5710_v15, %v5405_v25  ;;  %v12778_v36 = vpop.f32.mrb[194].mxu0  ;;  %v12862_v47 = vpop.f32.mrb[6].mxu1 }
 0x4f5   : > { %v5408_v57 = vpop.f32.mrb[195].mxu0  ;;  %v5727_v62 = vpop.f32.mrb[7].mxu1  ;;  %13298 = vmatpush3.bf16.msra.mxu0 %v14133_v2 }
 0x4f6   : > { %v16717_v31 = vadd.f32 %v5713_v4, %v5408_v57  ;;  %13299 = vmatprep.subr.bf16.mxu0 %v14136_v37  ;;  %13142 = vmatpush3.bf16.msra.mxu1 %v14143_v9 }
 0x4f7   : > { %13080 = vmatmul.mubr.msk.bf16.gmra.mrb[48].mxu1 %vm15945_vm4, %v16043_v38  ;;  %13236 = vmatmul.mubr.msk.bf16.gmra.mrb[44].mxu0 %vm15945_vm4, %v16043_v38 }
 0x4f8   : > { %17598 = vst [vmem:[#allocation12_spill] sm:$0xff] %v16717_v31  ;;  %13083 = vmatprep.mubr.msk.bf16.mxu1 %vm15937_vm3, %v16070_v1  ;;  %13239 = vmatprep.mubr.msk.bf16.mxu0 %vm15937_vm3, %v16070_v1 }
 0x4f9   : > { %13300 = vmatpush3.bf16.msra.mxu0 %v14136_v37 }
 0x4fa   : > { %v12781_v4 = vpop.f32.mrb[196].mxu0  ;;  %v12865_v15 = vpop.f32.mrb[8].mxu1  ;;  %13301 = vmatprep.subr.bf16.mxu0 %v14141_v54 }
 0x4fb   : > { %v5419_v57 = vpop.f32.mrb[197].mxu0  ;;  %v5738_v2 = vpop.f32.mrb[9].mxu1 }
 0x4fc   : > { %v16739_v9 = vadd.f32 %v5724_v34, %v5419_v57  ;;  %v12782_v44 = vpop.f32.mrb[198].mxu0  ;;  %v12866_v25 = vpop.f32.mrb[10].mxu1 }
 0x4fd   : > { %v5422_v36 = vpop.f32.mrb[199].mxu0  ;;  %v5741_v47 = vpop.f32.mrb[11].mxu1  ;;  %13302 = vmatpush3.bf16.msra.mxu0 %v14141_v54 }
 0x4fe   : > { %v16741_v31 = vadd.f32 %v5727_v62, %v5422_v36  ;;  %13367 = vmatprep.subr.bf16.mxu0 %v16737_v11 }
 0x4ff   : > { %13084 = vmatmul.mubr.msk.bf16.gmra.mrb[52].mxu1 %vm15945_vm4, %v16075_v3  ;;  %13240 = vmatmul.mubr.msk.bf16.gmra.mrb[48].mxu0 %vm15945_vm4, %v16075_v3 }
 0x500   : > { %13087 = vmatprep.mubr.msk.bf16.mxu1 %vm15937_vm3, %v16095_v32  ;;  %13243 = vmatprep.mubr.msk.bf16.mxu0 %vm15937_vm3, %v16095_v32 }
 0x502   : > { %v12785_v62 = vpop.f32.mrb[200].mxu0  ;;  %v12869_v37 = vpop.f32.mrb[12].mxu1 }
 0x503   : > { %v5433_v34 = vpop.f32.mrb[201].mxu0  ;;  %v5752_v54 = vpop.f32.mrb[13].mxu1 }
 0x504   : > { %v16756_v4 = vadd.f32 %v5738_v2, %v5433_v34  ;;  %v12786_v15 = vpop.f32.mrb[202].mxu0  ;;  %v12870_v57 = vpop.f32.mrb[14].mxu1 }
 0x505   : > { %v5436_v44 = vpop.f32.mrb[203].mxu0  ;;  %v5755_v25 = vpop.f32.mrb[15].mxu1 }
 0x506   : > { %17599 = vst [vmem:[#allocation13_spill] sm:$0xff] %v16756_v4  ;;  %v16758_v36 = vadd.f32 %v5741_v47, %v5436_v44 }
 0x507   : > { %13088 = vmatmul.mubr.msk.bf16.gmra.mrb[56].mxu1 %vm15945_vm4, %v16100_v13  ;;  %13244 = vmatmul.mubr.msk.bf16.gmra.mrb[52].mxu0 %vm15945_vm4, %v16100_v13 }
 0x508   : > { %17600 = vst [vmem:[#allocation14_spill] sm:$0xff] %v16758_v36  ;;  %13091 = vmatprep.mubr.msk.bf16.mxu1 %vm15937_vm3, %v16119_v51  ;;  %13247 = vmatprep.mubr.msk.bf16.mxu0 %vm15937_vm3, %v16119_v51 }
 0x50a   : > { %v12789_v2 = vpop.f32.mrb[204].mxu0  ;;  %v12873_v62 = vpop.f32.mrb[16].mxu1 }
 0x50b   : > { %v5447_v47 = vpop.f32.mrb[205].mxu0  ;;  %v5766_v37 = vpop.f32.mrb[17].mxu1 }
 0x50c   : > { %v16772_v34 = vadd.f32 %v5752_v54, %v5447_v47  ;;  %v12790_v15 = vpop.f32.mrb[206].mxu0  ;;  %v12874_v57 = vpop.f32.mrb[18].mxu1 }
 0x50d   : > { %v5450_v44 = vpop.f32.mrb[207].mxu0  ;;  %v5769_v36 = vpop.f32.mrb[19].mxu1 }
 0x50e   : > { %17601 = vst [vmem:[#allocation3_spill] sm:$0xff] %v16772_v34  ;;  %v16774_v4 = vadd.f32 %v5755_v25, %v5450_v44 }
 0x50f   : > { %13092 = vmatmul.mubr.msk.bf16.gmra.mrb[60].mxu1 %vm15945_vm4, %v16124_v46  ;;  %13248 = vmatmul.mubr.msk.bf16.gmra.mrb[56].mxu0 %vm15945_vm4, %v16124_v46 }
 0x510   : > { %17602 = vst [vmem:[#allocation4_spill] sm:$0xff] %v16774_v4  ;;  %13095 = vmatprep.mubr.msk.bf16.mxu1 %vm15937_vm3, %v16143_v7  ;;  %13251 = vmatprep.mubr.msk.bf16.mxu0 %vm15937_vm3, %v16143_v7 }
 0x512   : > { %v12793_v54 = vpop.f32.mrb[208].mxu0  ;;  %v12877_v2 = vpop.f32.mrb[20].mxu1 }
 0x513   : > { %v5461_v25 = vpop.f32.mrb[209].mxu0  ;;  %v5780_v62 = vpop.f32.mrb[21].mxu1 }
 0x514   : > { %v16788_v47 = vadd.f32 %v5766_v37, %v5461_v25  ;;  %v12794_v15 = vpop.f32.mrb[210].mxu0  ;;  %v12878_v57 = vpop.f32.mrb[22].mxu1 }
 0x515   : > { %v5464_v44 = vpop.f32.mrb[211].mxu0  ;;  %v5783_v4 = vpop.f32.mrb[23].mxu1 }
 0x516   : > { %17603 = vst [vmem:[#allocation5_spill] sm:$0xff] %v16788_v47  ;;  %v16790_v34 = vadd.f32 %v5769_v36, %v5464_v44 }
 0x517   : > { %13096 = vmatmul.mubr.msk.bf16.gmra.mrb[64].mxu1 %vm15945_vm4, %v16148_v27  ;;  %13252 = vmatmul.mubr.msk.bf16.gmra.mrb[60].mxu0 %vm15945_vm4, %v16148_v27 }
 0x518   : > { %17604 = vst [vmem:[#allocation6_spill] sm:$0xff] %v16790_v34  ;;  %13099 = vmatprep.mubr.msk.bf16.mxu1 %vm15937_vm3, %v16167_v39  ;;  %13255 = vmatprep.mubr.msk.bf16.mxu0 %vm15937_vm3, %v16167_v39 }
 0x51a   : > { %v12797_v37 = vpop.f32.mrb[212].mxu0  ;;  %v12881_v54 = vpop.f32.mrb[24].mxu1 }
 0x51b   : > { %v5475_v36 = vpop.f32.mrb[213].mxu0  ;;  %v5794_v2 = vpop.f32.mrb[25].mxu1 }
 0x51c   : > { %v16804_v25 = vadd.f32 %v5780_v62, %v5475_v36  ;;  %v12798_v15 = vpop.f32.mrb[214].mxu0  ;;  %v12882_v57 = vpop.f32.mrb[26].mxu1 }
 0x51d   : > { %v5478_v44 = vpop.f32.mrb[215].mxu0  ;;  %v5797_v34 = vpop.f32.mrb[27].mxu1 }
 0x51e   : > { %17605 = vst [vmem:[#allocation7_spill] sm:$0xff] %v16804_v25  ;;  %v16806_v47 = vadd.f32 %v5783_v4, %v5478_v44 }
 0x51f   : > { %13100 = vmatmul.mubr.msk.bf16.gmra.mrb[68].mxu1 %vm15945_vm4, %v16172_v58  ;;  %13256 = vmatmul.mubr.msk.bf16.gmra.mrb[64].mxu0 %vm15945_vm4, %v16172_v58 }
 0x520   : > { %17606 = vst [vmem:[#allocation8_spill] sm:$0xff] %v16806_v47  ;;  %13103 = vmatprep.mubr.msk.bf16.mxu1 %vm15937_vm3, %v16191_v63  ;;  %13259 = vmatprep.mubr.msk.bf16.mxu0 %vm15937_vm3, %v16191_v63 }
 0x522   : > { %v12801_v62 = vpop.f32.mrb[216].mxu0  ;;  %v12885_v37 = vpop.f32.mrb[28].mxu1 }
 0x523   : > { %v5489_v4 = vpop.f32.mrb[217].mxu0  ;;  %v5808_v54 = vpop.f32.mrb[29].mxu1 }
 0x524   : > { %v16820_v36 = vadd.f32 %v5794_v2, %v5489_v4  ;;  %v12802_v15 = vpop.f32.mrb[218].mxu0  ;;  %v12886_v57 = vpop.f32.mrb[30].mxu1 }
 0x525   : > { %v5492_v44 = vpop.f32.mrb[219].mxu0  ;;  %v5811_v47 = vpop.f32.mrb[31].mxu1 }
 0x526   : > { %v16822_v25 = vadd.f32 %v5797_v34, %v5492_v44 }
 0x527   : > { %13104 = vmatmul.mubr.msk.bf16.gmra.mrb[72].mxu1 %vm15945_vm4, %v16196_v59  ;;  %13260 = vmatmul.mubr.msk.bf16.gmra.mrb[68].mxu0 %vm15945_vm4, %v16196_v59 }
 0x528   : > { %13107 = vmatprep.mubr.msk.bf16.mxu1 %vm15937_vm3, %v16215_v28  ;;  %13263 = vmatprep.mubr.msk.bf16.mxu0 %vm15937_vm3, %v16215_v28 }
 0x52a   : > { %v12805_v2 = vpop.f32.mrb[220].mxu0 }
 0x52b   : > { %v5503_v62 = vpop.f32.mrb[221].mxu0 }
 0x52c   : > { %v16836_v34 = vadd.f32 %v5808_v54, %v5503_v62  ;;  %v12806_v37 = vpop.f32.mrb[222].mxu0 }
 0x52d   : > { %v5506_v4 = vpop.f32.mrb[223].mxu0 }
 0x52e   : > { %v16838_v15 = vadd.f32 %v5811_v47, %v5506_v4 }
 0x52f   : > { %13108 = vmatmul.mubr.msk.bf16.gmra.mrb[76].mxu1 %vm15945_vm4, %v16220_v10  ;;  %13264 = vmatmul.mubr.msk.bf16.gmra.mrb[72].mxu0 %vm15945_vm4, %v16220_v10 }
 0x530   : > { %13111 = vmatprep.mubr.msk.bf16.mxu1 %vm15937_vm3, %v16239_v5  ;;  %13267 = vmatprep.mubr.msk.bf16.mxu0 %vm15937_vm3, %v16239_v5 }
 0x532   : > { %v12905_v54 = vpop.f32.mrb[224].mxu0 }
 0x533   : > { %v5920_v57 = vpop.f32.mrb[225].mxu0 }
 0x534   : > { %v16853_v47 = vadd.f32 %v5920_v57, %v16547_v33  ;;  %v12906_v44 = vpop.f32.mrb[226].mxu0 }
 0x535   : > { %v5923_v2 = vpop.f32.mrb[227].mxu0 }
 0x536   : > { %v16856_v62 = vadd.f32 %v5923_v2, %v16550_v19 }
 0x537   : > { %13112 = vmatmul.mubr.msk.bf16.gmra.mrb[80].mxu1 %vm15945_vm4, %v16244_v35  ;;  %13268 = vmatmul.mubr.msk.bf16.gmra.mrb[76].mxu0 %vm15945_vm4, %v16244_v35 }
 0x538   : > { %13115 = vmatprep.mubr.msk.bf16.mxu1 %vm15937_vm3, %v16269_v16  ;;  %13271 = vmatprep.mubr.msk.bf16.mxu0 %vm15937_vm3, %v16269_v16 }
 0x53a   : > { %v12909_v33 = vpop.f32.mrb[228].mxu0 }
 0x53b   : > { %v5934_v37 = vpop.f32.mrb[229].mxu0 }
 0x53c   : > { %v16871_v19 = vadd.f32 %v5934_v37, %v16570_v22  ;;  %v12910_v4 = vpop.f32.mrb[230].mxu0 }
 0x53d   : > { %v5937_v54 = vpop.f32.mrb[231].mxu0 }
 0x53e   : > { %v16874_v57 = vadd.f32 %v5937_v54, %v16572_v18 }
 0x53f   : > { %13116 = vmatmul.mubr.msk.bf16.gmra.mrb[84].mxu1 %vm15945_vm4, %v16274_v55  ;;  %13272 = vmatmul.mubr.msk.bf16.gmra.mrb[80].mxu0 %vm15945_vm4, %v16274_v55 }
 0x540   : > { %13119 = vmatprep.mubr.msk.bf16.mxu1 %vm15937_vm3, %v16293_v50  ;;  %13275 = vmatprep.mubr.msk.bf16.mxu0 %vm15937_vm3, %v16293_v50 }
 0x542   : > { %v12913_v22 = vpop.f32.mrb[232].mxu0 }
 0x543   : > { %v5948_v44 = vpop.f32.mrb[233].mxu0 }
 0x544   : > { %v16889_v18 = vadd.f32 %v5948_v44, %v16586_v29  ;;  %v12914_v2 = vpop.f32.mrb[234].mxu0 }
 0x545   : > { %v5951_v33 = vpop.f32.mrb[235].mxu0 }
 0x546   : > { %v16892_v37 = vadd.f32 %v5951_v33, %v16588_v53 }
 0x547   : > { %13120 = vmatmul.mubr.msk.bf16.gmra.mrb[88].mxu1 %vm15945_vm4, %v16298_v40  ;;  %13276 = vmatmul.mubr.msk.bf16.gmra.mrb[84].mxu0 %vm15945_vm4, %v16298_v40 }
 0x548   : > { %13123 = vmatprep.mubr.msk.bf16.mxu1 %vm15937_vm3, %v16319_v48  ;;  %13279 = vmatprep.mubr.msk.bf16.mxu0 %vm15937_vm3, %v16319_v48 }
 0x54a   : > { %v12917_v29 = vpop.f32.mrb[236].mxu0 }
 0x54b   : > { %v5962_v4 = vpop.f32.mrb[237].mxu0 }
 0x54c   : > { %v16907_v53 = vadd.f32 %v5962_v4, %v16602_v20  ;;  %v12918_v54 = vpop.f32.mrb[238].mxu0 }
 0x54d   : > { %v5965_v22 = vpop.f32.mrb[239].mxu0 }
 0x54e   : > { %v16910_v44 = vadd.f32 %v5965_v22, %v16604_v6 }
 0x54f   : > { %13124 = vmatmul.mubr.msk.bf16.gmra.mrb[92].mxu1 %vm15945_vm4, %v16324_v43  ;;  %13280 = vmatmul.mubr.msk.bf16.gmra.mrb[88].mxu0 %vm15945_vm4, %v16324_v43 }
 0x550   : > { %13143 = vmatprep.mubr.msk.bf16.mxu1 %vm15937_vm3, %v15978_v52  ;;  %13283 = vmatprep.mubr.msk.bf16.mxu0 %vm15937_vm3, %v16344_v49 }
 0x552   : > { %v12921_v20 = vpop.f32.mrb[240].mxu0 }
 0x553   : > { %v5976_v2 = vpop.f32.mrb[241].mxu0 }
 0x554   : > { %v16925_v6 = vadd.f32 %v5976_v2, %v16614_v42  ;;  %v12922_v33 = vpop.f32.mrb[242].mxu0  ;;  %v14145_v2 = vld [vmem:[%s17539_s5 + $0x208] sm:$0xff]  }
 0x555   : > { %v5979_v29 = vpop.f32.mrb[243].mxu0 }
 0x556   : > { %v16928_v4 = vadd.f32 %v5979_v29, %v16616_v21 }
 0x557   : > { %13144 = vmatmul.mubr.msk.bf16.vlgmr.msra.gmra.mrb[32].mxu1 %vm15945_vm4, %v15983_v23  ;;  %13284 = vmatmul.mubr.msk.bf16.gmra.mrb[92].mxu0 %vm15945_vm4, %v16347_v45 }
 0x558   : > { %13147 = vmatprep.mubr.msk.bf16.mxu1 %vm15937_vm3, %v16008_v60  ;;  %13303 = vmatprep.mubr.bf16.mxu0 %v17564_v26 }
 0x55a   : > { %v12925_v42 = vpop.f32.mrb[244].mxu0 }
 0x55b   : > { %v5990_v54 = vpop.f32.mrb[245].mxu0 }
 0x55c   : > { %v16941_v22 = vadd.f32 %v5990_v54, %v16633_v56  ;;  %v12926_v21 = vpop.f32.mrb[246].mxu0  ;;  %v14146_v56 = vld [vmem:[%s17539_s5 + $0x210] sm:$0xff]  }
 0x55d   : > { %v5993_v20 = vpop.f32.mrb[247].mxu0 }
 0x55e   : > { %v16947_v33 = vadd.f32 %v5993_v20, %v16638_v0  ;;  %v17608_v20 = vld [vmem:[#allocation9_spill] sm:$0xff] }
 0x55f   : > { %13148 = vmatmul.mubr.msk.bf16.gmra.mrb[36].mxu1 %vm15945_vm4, %v16013_v41  ;;  %13304 = vmatmul.mubr.bf16.vlgmr.msra.gmra.mrb[32].mxu0 %v17564_v26 }
 0x560   : > { %13368 = vmatpush3.bf16.msra.mxu0 %v16737_v11  ;;  %13151 = vmatprep.mubr.msk.bf16.mxu1 %vm15937_vm3, %v16038_v61 }
 0x561   : > { %13307 = vmatprep.mubr.msk.bf16.mxu0 %vm15937_vm3, %v15941_v8  ;;  %13369 = vmatprep.subr.bf16.mxu0 %v14145_v2  ;;  %v14147_v8 = vld [vmem:[%s17539_s5 + $0x218] sm:$0xff]  }
 0x562   : > { %v12929_v0 = vpop.f32.mrb[248].mxu0 }
 0x563   : > { %v6004_v29 = vpop.f32.mrb[249].mxu0  ;;  %v17609_v0 = vld [vmem:[#allocation10_spill] sm:$0xff] }
 0x564   : > { %v16964_v42 = vadd.f32 %v6004_v29, %v16659_v17  ;;  %v12930_v54 = vpop.f32.mrb[250].mxu0  ;;  %13370 = vmatpush3.bf16.msra.mxu0 %v14145_v2 }
 0x565   : > { %v6007_v11 = vpop.f32.mrb[251].mxu0  ;;  %13371 = vmatprep.subr.bf16.mxu0 %v14146_v56 }
 0x566   : > { %v16967_v21 = vadd.f32 %v6007_v11, %v16664_v14  ;;  %v14148_v14 = vld [vmem:[%s17539_s5 + $0x220] sm:$0xff]  }
 0x567   : > { %13152 = vmatmul.mubr.msk.bf16.gmra.mrb[40].mxu1 %vm15945_vm4, %v16043_v38  ;;  %13308 = vmatmul.mubr.msk.bf16.gmra.mrb[36].mxu0 %vm15945_vm4, %v17608_v20  ;;  %v17610_v20 = vld [vmem:[#allocation11_spill] sm:$0xff] }
 0x568   : > { %17607 = vst [vmem:[#allocation15_spill] sm:$0xff] %v16967_v21  ;;  %13155 = vmatprep.mubr.msk.bf16.mxu1 %vm15937_vm3, %v16070_v1  ;;  %13311 = vmatprep.mubr.msk.bf16.mxu0 %vm15937_vm3, %v15978_v52 }
 0x569   : > { %13372 = vmatpush3.bf16.msra.mxu0 %v14146_v56  ;;  %v14149_v56 = vld [vmem:[%s17539_s5 + $0x228] sm:$0xff]  }
 0x56a   : > { %v12933_v17 = vpop.f32.mrb[252].mxu0  ;;  %13373 = vmatprep.subr.bf16.mxu0 %v14147_v8 }
 0x56b   : > { %v6018_v2 = vpop.f32.mrb[253].mxu0  ;;  %v14150_v17 = vld [vmem:[%s17539_s5 + $0x230] sm:$0xff]  }
 0x56c   : > { %v16988_v29 = vadd.f32 %v6018_v2, %v17609_v0  ;;  %v12934_v54 = vpop.f32.mrb[254].mxu0 }
 0x56d   : > { %v6021_v11 = vpop.f32.mrb[255].mxu0  ;;  %13374 = vmatpush3.bf16.msra.mxu0 %v14147_v8 }
 0x56e   : > { %v16991_v21 = vadd.f32 %v6021_v11, %v17610_v20  ;;  %13375 = vmatprep.subr.bf16.mxu0 %v14148_v14  ;;  %v17612_v20 = vld [vmem:[#allocation12_spill] sm:$0xff] }
 0x56f   : > { %13156 = vmatmul.mubr.msk.bf16.gmra.mrb[44].mxu1 %vm15945_vm4, %v16075_v3  ;;  %13312 = vmatmul.mubr.msk.bf16.gmra.mrb[40].mxu0 %vm15945_vm4, %v15983_v23 }
 0x570   : > { %17611 = vst [vmem:[#allocation9_spill] sm:$0xff] %v16991_v21  ;;  %13159 = vmatprep.mubr.msk.bf16.mxu1 %vm15937_vm3, %v16095_v32  ;;  %13315 = vmatprep.mubr.msk.bf16.mxu0 %vm15937_vm3, %v16008_v60 }
 0x571   : > { %13376 = vmatpush3.bf16.msra.mxu0 %v14148_v14  ;;  %v14151_v14 = vld [vmem:[%s17539_s5 + $0x238] sm:$0xff]  }
 0x572   : > { %v12937_v8 = vpop.f32.mrb[0].mxu0  ;;  %13377 = vmatprep.subr.bf16.mxu0 %v14149_v56 }
 0x573   : > { %v6032_v2 = vpop.f32.mrb[1].mxu0 }
 0x574   : > { %v17012_v0 = vadd.f32 %v6032_v2, %v16715_v12  ;;  %v12938_v54 = vpop.f32.mrb[2].mxu0 }
 0x575   : > { %v6035_v11 = vpop.f32.mrb[3].mxu0  ;;  %13378 = vmatpush3.bf16.msra.mxu0 %v14149_v56 }
 0x576   : > { %v17015_v21 = vadd.f32 %v6035_v11, %v17612_v20  ;;  %13379 = vmatprep.subr.bf16.mxu0 %v14150_v17 }
 0x577   : > { %13160 = vmatmul.mubr.msk.bf16.gmra.mrb[48].mxu1 %vm15945_vm4, %v16100_v13  ;;  %13316 = vmatmul.mubr.msk.bf16.gmra.mrb[44].mxu0 %vm15945_vm4, %v16013_v41 }
 0x578   : > { %13163 = vmatprep.mubr.msk.bf16.mxu1 %vm15937_vm3, %v16119_v51  ;;  %13319 = vmatprep.mubr.msk.bf16.mxu0 %vm15937_vm3, %v16038_v61 }
 0x579   : > { %13380 = vmatpush3.bf16.msra.mxu0 %v14150_v17 }
 0x57a   : > { %v12941_v12 = vpop.f32.mrb[4].mxu0  ;;  %13381 = vmatprep.subr.bf16.mxu0 %v14151_v14 }
 0x57b   : > { %v6046_v56 = vpop.f32.mrb[5].mxu0 }
 0x57c   : > { %v17033_v8 = vadd.f32 %v6046_v56, %v16739_v9  ;;  %v12942_v2 = vpop.f32.mrb[6].mxu0  ;;  %v17614_v56 = vld [vmem:[#allocation14_spill] sm:$0xff] }
 0x57d   : > { %v6049_v54 = vpop.f32.mrb[7].mxu0  ;;  %13382 = vmatpush3.bf16.msra.mxu0 %v14151_v14 }
 0x57e   : > { %v17036_v11 = vadd.f32 %v6049_v54, %v16741_v31  ;;  %v17613_v31 = vld [vmem:[#allocation13_spill] sm:$0xff] }
 0x57f   : > { %13164 = vmatmul.mubr.msk.bf16.gmra.mrb[52].mxu1 %vm15945_vm4, %v16124_v46  ;;  %13320 = vmatmul.mubr.msk.bf16.gmra.mrb[48].mxu0 %vm15945_vm4, %v16043_v38 }
 0x580   : > { %13167 = vmatprep.mubr.msk.bf16.mxu1 %vm15937_vm3, %v16143_v7  ;;  %13323 = vmatprep.mubr.msk.bf16.mxu0 %vm15937_vm3, %v16070_v1 }
 0x582   : > { %v12945_v9 = vpop.f32.mrb[8].mxu0 }
 0x583   : > { %v6060_v17 = vpop.f32.mrb[9].mxu0 }
 0x584   : > { %v17051_v20 = vadd.f32 %v6060_v17, %v17613_v31  ;;  %v12946_v14 = vpop.f32.mrb[10].mxu0  ;;  %v17616_v17 = vld [vmem:[#allocation3_spill] sm:$0xff] }
 0x585   : > { %v6063_v12 = vpop.f32.mrb[11].mxu0 }
 0x586   : > { %v17054_v2 = vadd.f32 %v6063_v12, %v17614_v56  ;;  %v17618_v56 = vld [vmem:[#allocation4_spill] sm:$0xff] }
 0x587   : > { %13168 = vmatmul.mubr.msk.bf16.gmra.mrb[56].mxu1 %vm15945_vm4, %v16148_v27  ;;  %13324 = vmatmul.mubr.msk.bf16.gmra.mrb[52].mxu0 %vm15945_vm4, %v16075_v3 }
 0x588   : > { %17615 = vst [vmem:[#allocation10_spill] sm:$0xff] %v17054_v2  ;;  %13171 = vmatprep.mubr.msk.bf16.mxu1 %vm15937_vm3, %v16167_v39  ;;  %13327 = vmatprep.mubr.msk.bf16.mxu0 %vm15937_vm3, %v16095_v32 }
 0x58a   : > { %v12949_v54 = vpop.f32.mrb[12].mxu0 }
 0x58b   : > { %v6074_v9 = vpop.f32.mrb[13].mxu0 }
 0x58c   : > { %v17069_v31 = vadd.f32 %v6074_v9, %v17616_v17  ;;  %v12950_v14 = vpop.f32.mrb[14].mxu0  ;;  %v17620_v17 = vld [vmem:[#allocation5_spill] sm:$0xff] }
 0x58d   : > { %v6077_v12 = vpop.f32.mrb[15].mxu0 }
 0x58e   : > { %17617 = vst [vmem:[#allocation11_spill] sm:$0xff] %v17069_v31  ;;  %v17072_v2 = vadd.f32 %v6077_v12, %v17618_v56 }
 0x58f   : > { %13172 = vmatmul.mubr.msk.bf16.gmra.mrb[60].mxu1 %vm15945_vm4, %v16172_v58  ;;  %13328 = vmatmul.mubr.msk.bf16.gmra.mrb[56].mxu0 %vm15945_vm4, %v16100_v13 }
 0x590   : > { %17619 = vst [vmem:[#allocation12_spill] sm:$0xff] %v17072_v2  ;;  %13175 = vmatprep.mubr.msk.bf16.mxu1 %vm15937_vm3, %v16191_v63  ;;  %13331 = vmatprep.mubr.msk.bf16.mxu0 %vm15937_vm3, %v16119_v51  ;;  %v17622_v2 = vld [vmem:[#allocation6_spill] sm:$0xff] }
 0x592   : > { %v12953_v54 = vpop.f32.mrb[16].mxu0 }
 0x593   : > { %v6088_v9 = vpop.f32.mrb[17].mxu0 }
 0x594   : > { %v17087_v14 = vadd.f32 %v6088_v9, %v17620_v17  ;;  %v12954_v12 = vpop.f32.mrb[18].mxu0 }
 0x595   : > { %v6091_v56 = vpop.f32.mrb[19].mxu0 }
 0x596   : > { %17621 = vst [vmem:[#allocation13_spill] sm:$0xff] %v17087_v14  ;;  %v17090_v31 = vadd.f32 %v6091_v56, %v17622_v2  ;;  %v17624_v2 = vld [vmem:[#allocation7_spill] sm:$0xff] }
 0x597   : > { %13176 = vmatmul.mubr.msk.bf16.gmra.mrb[64].mxu1 %vm15945_vm4, %v16196_v59  ;;  %13332 = vmatmul.mubr.msk.bf16.gmra.mrb[60].mxu0 %vm15945_vm4, %v16124_v46 }
 0x598   : > { %17623 = vst [vmem:[#allocation14_spill] sm:$0xff] %v17090_v31  ;;  %13179 = vmatprep.mubr.msk.bf16.mxu1 %vm15937_vm3, %v16215_v28  ;;  %13335 = vmatprep.mubr.msk.bf16.mxu0 %vm15937_vm3, %v16143_v7  ;;  %v17625_v31 = vld [vmem:[#allocation8_spill] sm:$0xff] }
 0x59a   : > { %v12957_v54 = vpop.f32.mrb[20].mxu0 }
 0x59b   : > { %v6102_v9 = vpop.f32.mrb[21].mxu0 }
 0x59c   : > { %v17105_v17 = vadd.f32 %v6102_v9, %v17624_v2  ;;  %v12958_v12 = vpop.f32.mrb[22].mxu0 }
 0x59d   : > { %v6105_v56 = vpop.f32.mrb[23].mxu0 }
 0x59e   : > { %v17108_v14 = vadd.f32 %v6105_v56, %v17625_v31 }
 0x59f   : > { %13180 = vmatmul.mubr.msk.bf16.gmra.mrb[68].mxu1 %vm15945_vm4, %v16220_v10  ;;  %13336 = vmatmul.mubr.msk.bf16.gmra.mrb[64].mxu0 %vm15945_vm4, %v16148_v27 }
 0x5a0   : > { %13183 = vmatprep.mubr.msk.bf16.mxu1 %vm15937_vm3, %v16239_v5  ;;  %13339 = vmatprep.mubr.msk.bf16.mxu0 %vm15937_vm3, %v16167_v39 }
 0x5a2   : > { %v12961_v54 = vpop.f32.mrb[24].mxu0 }
 0x5a3   : > { %v6116_v9 = vpop.f32.mrb[25].mxu0 }
 0x5a4   : > { %v17123_v31 = vadd.f32 %v6116_v9, %v16820_v36  ;;  %v12962_v2 = vpop.f32.mrb[26].mxu0 }
 0x5a5   : > { %v6119_v12 = vpop.f32.mrb[27].mxu0 }
 0x5a6   : > { %v17126_v56 = vadd.f32 %v6119_v12, %v16822_v25 }
 0x5a7   : > { %13184 = vmatmul.mubr.msk.bf16.gmra.mrb[72].mxu1 %vm15945_vm4, %v16244_v35  ;;  %13340 = vmatmul.mubr.msk.bf16.gmra.mrb[68].mxu0 %vm15945_vm4, %v16172_v58 }
 0x5a8   : > { %13187 = vmatprep.mubr.msk.bf16.mxu1 %vm15937_vm3, %v16269_v16  ;;  %13343 = vmatprep.mubr.msk.bf16.mxu0 %vm15937_vm3, %v16191_v63 }
 0x5aa   : > { %v12965_v36 = vpop.f32.mrb[28].mxu0 }
 0x5ab   : > { %v6130_v54 = vpop.f32.mrb[29].mxu0 }
 0x5ac   : > { %v17141_v25 = vadd.f32 %v6130_v54, %v16836_v34  ;;  %v12966_v9 = vpop.f32.mrb[30].mxu0 }
 0x5ad   : > { %v6133_v2 = vpop.f32.mrb[31].mxu0 }
 0x5ae   : > { %v17144_v12 = vadd.f32 %v6133_v2, %v16838_v15 }
 0x5af   : > { %13188 = vmatmul.mubr.msk.bf16.gmra.mrb[76].mxu1 %vm15945_vm4, %v16274_v55  ;;  %13344 = vmatmul.mubr.msk.bf16.gmra.mrb[72].mxu0 %vm15945_vm4, %v16196_v59 }
 0x5b0   : > { %13191 = vmatprep.mubr.msk.bf16.mxu1 %vm15937_vm3, %v16293_v50  ;;  %13347 = vmatprep.mubr.msk.bf16.mxu0 %vm15937_vm3, %v16215_v28 }
 0x5b7   : > { %13192 = vmatmul.mubr.msk.bf16.gmra.mrb[80].mxu1 %vm15945_vm4, %v16298_v40  ;;  %13348 = vmatmul.mubr.msk.bf16.gmra.mrb[76].mxu0 %vm15945_vm4, %v16220_v10 }
 0x5b8   : > { %13195 = vmatprep.mubr.msk.bf16.mxu1 %vm15937_vm3, %v16319_v48  ;;  %13351 = vmatprep.mubr.msk.bf16.mxu0 %vm15937_vm3, %v16239_v5 }
 0x5bf   : > { %13196 = vmatmul.mubr.msk.bf16.gmra.mrb[84].mxu1 %vm15945_vm4, %v16324_v43  ;;  %13352 = vmatmul.mubr.msk.bf16.gmra.mrb[80].mxu0 %vm15945_vm4, %v16244_v35 }
 0x5c0   : > { %13199 = vmatprep.mubr.msk.bf16.mxu1 %vm15937_vm3, %v16344_v49  ;;  %13355 = vmatprep.mubr.msk.bf16.mxu0 %vm15937_vm3, %v16269_v16 }
 0x5c7   : > { %13200 = vmatmul.mubr.msk.bf16.gmra.mrb[88].mxu1 %vm15945_vm4, %v16347_v45  ;;  %13356 = vmatmul.mubr.msk.bf16.gmra.mrb[84].mxu0 %vm15945_vm4, %v16274_v55 }
 0x5c8   : > { %13359 = vmatprep.mubr.msk.bf16.mxu0 %vm15937_vm3, %v16293_v50  ;;  %13203 = vmatprep.mubr.bf16.mxu1 %v17564_v26 }
 0x5cf   : > { %13204 = vmatmul.mubr.bf16.gmra.mrb[92].mxu1 %v17564_v26  ;;  %13360 = vmatmul.mubr.msk.bf16.gmra.mrb[88].mxu0 %vm15945_vm4, %v16298_v40 }
 0x5d0   : > { %13363 = vmatprep.mubr.msk.bf16.mxu0 %vm15937_vm3, %v16319_v48 }
 0x5d7   : > { %13364 = vmatmul.mubr.msk.bf16.gmra.mrb[92].mxu0 %vm15945_vm4, %v16324_v43 }
 0x5d8   : > { %13383 = vmatprep.mubr.msk.bf16.mxu0 %vm15937_vm3, %v15978_v52 }
 0x5df   : > { %13384 = vmatmul.mubr.msk.bf16.vlgmr.msra.gmra.mrb[32].mxu0 %vm15945_vm4, %v15983_v23 }
 0x5e0   : > { %13387 = vmatprep.mubr.msk.bf16.mxu0 %vm15937_vm3, %v16008_v60 }
 0x5e7   : > { %13388 = vmatmul.mubr.msk.bf16.gmra.mrb[36].mxu0 %vm15945_vm4, %v16013_v41 }
 0x5e8   : > { %13391 = vmatprep.mubr.msk.bf16.mxu0 %vm15937_vm3, %v16038_v61 }
 0x5ef   : > { %13392 = vmatmul.mubr.msk.bf16.gmra.mrb[40].mxu0 %vm15945_vm4, %v16043_v38 }
 0x5f0   : > { %13395 = vmatprep.mubr.msk.bf16.mxu0 %vm15937_vm3, %v16070_v1 }
 0x5f7   : > { %13396 = vmatmul.mubr.msk.bf16.gmra.mrb[44].mxu0 %vm15945_vm4, %v16075_v3 }
 0x5f8   : > { %13399 = vmatprep.mubr.msk.bf16.mxu0 %vm15937_vm3, %v16095_v32 }
 0x5ff   : > { %13400 = vmatmul.mubr.msk.bf16.gmra.mrb[48].mxu0 %vm15945_vm4, %v16100_v13 }
 0x600   : > { %13403 = vmatprep.mubr.msk.bf16.mxu0 %vm15937_vm3, %v16119_v51 }
 0x607   : > { %13404 = vmatmul.mubr.msk.bf16.gmra.mrb[52].mxu0 %vm15945_vm4, %v16124_v46 }
 0x608   : > { %13407 = vmatprep.mubr.msk.bf16.mxu0 %vm15937_vm3, %v16143_v7 }
 0x60f   : > { %13408 = vmatmul.mubr.msk.bf16.gmra.mrb[56].mxu0 %vm15945_vm4, %v16148_v27 }
 0x610   : > { %13411 = vmatprep.mubr.msk.bf16.mxu0 %vm15937_vm3, %v16167_v39 }
 0x617   : > { %13412 = vmatmul.mubr.msk.bf16.gmra.mrb[60].mxu0 %vm15945_vm4, %v16172_v58 }
 0x618   : > { %13415 = vmatprep.mubr.msk.bf16.mxu0 %vm15937_vm3, %v16191_v63 }
 0x61f   : > { %13416 = vmatmul.mubr.msk.bf16.gmra.mrb[64].mxu0 %vm15945_vm4, %v16196_v59 }
 0x620   : > { %13419 = vmatprep.mubr.msk.bf16.mxu0 %vm15937_vm3, %v16215_v28 }
 0x627   : > { %13420 = vmatmul.mubr.msk.bf16.gmra.mrb[68].mxu0 %vm15945_vm4, %v16220_v10 }
 0x628   : > { %13423 = vmatprep.mubr.msk.bf16.mxu0 %vm15937_vm3, %v16239_v5 }
 0x62a   : > { %v13145_v52 = vpop.f32.mrb[32].mxu1 }
 0x62b   : > { %v6950_v23 = vpop.f32.mrb[33].mxu1  ;;  %v8350_v61 = vrot.slane %v13145_v52, 1 }
 0x62c   : > { %v13146_v60 = vpop.f32.mrb[34].mxu1  ;;  %v8347_v38 = vrot.slane %v6950_v23, 1 }
 0x62d   : > { %v6953_v41 = vpop.f32.mrb[35].mxu1 }
 0x62e   : > { %v8348_v1 = vrot.slane %v6953_v41, 1 }
 0x62f   : > { %13424 = vmatmul.mubr.msk.bf16.gmra.mrb[72].mxu0 %vm15945_vm4, %v16244_v35 }
 0x630   : > { %v8349_v3 = vsel %vm4512_vm15, %v8347_v38, %v8348_v1  ;;  %v8351_v32 = vsel %vm4512_vm15, %v8348_v1, %v8350_v61  ;;  %13427 = vmatprep.mubr.msk.bf16.mxu0 %vm15937_vm3, %v16269_v16 }
 0x631   : > { %v17274_v13 = vadd.f32 %v8349_v3, %v16853_v47  ;;  %v17277_v51 = vadd.f32 %v8351_v32, %v16856_v62 }
 0x632   : > { %v13149_v46 = vpop.f32.mrb[36].mxu1 }
 0x633   : > { %v6965_v7 = vpop.f32.mrb[37].mxu1  ;;  %v8355_v58 = vrot.slane %v13149_v46, 1 }
 0x634   : > { %v13150_v27 = vpop.f32.mrb[38].mxu1  ;;  %v8352_v63 = vrot.slane %v6965_v7, 1 }
 0x635   : > { %v6968_v39 = vpop.f32.mrb[39].mxu1 }
 0x636   : > { %v8353_v59 = vrot.slane %v6968_v39, 1 }
 0x637   : > { %13428 = vmatmul.mubr.msk.bf16.gmra.mrb[76].mxu0 %vm15945_vm4, %v16274_v55 }
 0x638   : > { %v8354_v28 = vsel %vm4512_vm15, %v8352_v63, %v8353_v59  ;;  %v8356_v10 = vsel %vm4512_vm15, %v8353_v59, %v8355_v58  ;;  %13431 = vmatprep.mubr.msk.bf16.mxu0 %vm15937_vm3, %v16293_v50 }
 0x639   : > { %v17288_v5 = vadd.f32 %v8354_v28, %v16871_v19  ;;  %v17291_v35 = vadd.f32 %v8356_v10, %v16874_v57 }
 0x63a   : > { %v13153_v16 = vpop.f32.mrb[40].mxu1 }
 0x63b   : > { %v6980_v34 = vpop.f32.mrb[41].mxu1  ;;  %v8360_v62 = vrot.slane %v13153_v16, 1 }
 0x63c   : > { %v13154_v15 = vpop.f32.mrb[42].mxu1  ;;  %v8357_v55 = vrot.slane %v6980_v34, 1 }
 0x63d   : > { %v6983_v47 = vpop.f32.mrb[43].mxu1 }
 0x63e   : > { %v8358_v36 = vrot.slane %v6983_v47, 1 }
 0x63f   : > { %13432 = vmatmul.mubr.msk.bf16.gmra.mrb[80].mxu0 %vm15945_vm4, %v16298_v40 }
 0x640   : > { %v8359_v54 = vsel %vm4512_vm15, %v8357_v55, %v8358_v36  ;;  %v8361_v50 = vsel %vm4512_vm15, %v8358_v36, %v8360_v62  ;;  %13435 = vmatprep.mubr.msk.bf16.mxu0 %vm15937_vm3, %v16319_v48 }
 0x641   : > { %v17302_v19 = vadd.f32 %v8359_v54, %v16889_v18  ;;  %v17305_v57 = vadd.f32 %v8361_v50, %v16892_v37 }
 0x642   : > { %v13157_v9 = vpop.f32.mrb[44].mxu1 }
 0x643   : > { %v6995_v2 = vpop.f32.mrb[45].mxu1  ;;  %v8365_v60 = vrot.slane %v13157_v9, 1  ;;  %v17626_v9 = vld [vmem:[#allocation15_spill] sm:$0xff] }
 0x644   : > { %v13158_v52 = vpop.f32.mrb[46].mxu1  ;;  %v8362_v40 = vrot.slane %v6995_v2, 1 }
 0x645   : > { %v6998_v23 = vpop.f32.mrb[47].mxu1 }
 0x646   : > { %v8363_v41 = vrot.slane %v6998_v23, 1 }
 0x647   : > { %13436 = vmatmul.mubr.msk.bf16.gmra.mrb[84].mxu0 %vm15945_vm4, %v16324_v43 }
 0x648   : > { %v8364_v61 = vsel %vm4512_vm15, %v8362_v40, %v8363_v41  ;;  %v8366_v48 = vsel %vm4512_vm15, %v8363_v41, %v8365_v60  ;;  %13439 = vmatprep.mubr.msk.bf16.mxu0 %vm15937_vm3, %v16344_v49 }
 0x649   : > { %v17316_v18 = vadd.f32 %v8364_v61, %v16907_v53  ;;  %v17319_v37 = vadd.f32 %v8366_v48, %v16910_v44 }
 0x64a   : > { %v13161_v38 = vpop.f32.mrb[48].mxu1 }
 0x64b   : > { %v7010_v1 = vpop.f32.mrb[49].mxu1  ;;  %v8370_v46 = vrot.slane %v13161_v38, 1 }
 0x64c   : > { %v13162_v3 = vpop.f32.mrb[50].mxu1  ;;  %v8367_v43 = vrot.slane %v7010_v1, 1  ;;  %v17627_v1 = vld [vmem:[#allocation9_spill] sm:$0xff] }
 0x64d   : > { %v7013_v32 = vpop.f32.mrb[51].mxu1 }
 0x64e   : > { %v8368_v7 = vrot.slane %v7013_v32, 1 }
 0x64f   : > { %13440 = vmatmul.mubr.msk.bf16.gmra.mrb[88].mxu0 %vm15945_vm4, %v16347_v45 }
 0x650   : > { %v8369_v30 = vsel %vm4512_vm15, %v8367_v43, %v8368_v7  ;;  %v8371_v49 = vsel %vm4512_vm15, %v8368_v7, %v8370_v46  ;;  %13443 = vmatprep.mubr.bf16.mxu0 %v17564_v26 }
 0x651   : > { %v17328_v53 = vadd.f32 %v8369_v30, %v16925_v6  ;;  %v17331_v44 = vadd.f32 %v8371_v49, %v16928_v4 }
 0x652   : > { %v13165_v27 = vpop.f32.mrb[52].mxu1 }
 0x653   : > { %v7025_v39 = vpop.f32.mrb[53].mxu1  ;;  %v8375_v59 = vrot.slane %v13165_v27, 1 }
 0x654   : > { %v13166_v58 = vpop.f32.mrb[54].mxu1  ;;  %v8372_v28 = vrot.slane %v7025_v39, 1 }
 0x655   : > { %v7028_v63 = vpop.f32.mrb[55].mxu1 }
 0x656   : > { %v8373_v24 = vrot.slane %v7028_v63, 1 }
 0x657   : > { %13444 = vmatmul.mubr.bf16.gmra.mrb[92].mxu0 %v17564_v26 }
 0x658   : > { %v8374_v45 = vsel %vm4512_vm15, %v8372_v28, %v8373_v24  ;;  %v8376_v10 = vsel %vm4512_vm15, %v8373_v24, %v8375_v59 }
 0x659   : > { %v17337_v16 = vadd.f32 %v8374_v45, %v16941_v22  ;;  %v17340_v6 = vadd.f32 %v8376_v10, %v16947_v33 }
 0x65a   : > { %v13169_v4 = vpop.f32.mrb[56].mxu1 }
 0x65b   : > { %v7040_v34 = vpop.f32.mrb[57].mxu1  ;;  %v8380_v62 = vrot.slane %v13169_v4, 1 }
 0x65c   : > { %v13170_v15 = vpop.f32.mrb[58].mxu1  ;;  %v8377_v55 = vrot.slane %v7040_v34, 1 }
 0x65d   : > { %v7043_v47 = vpop.f32.mrb[59].mxu1 }
 0x65e   : > { %v8378_v36 = vrot.slane %v7043_v47, 1 }
 0x660   : > { %v8379_v54 = vsel %vm4512_vm15, %v8377_v55, %v8378_v36  ;;  %v8381_v26 = vsel %vm4512_vm15, %v8378_v36, %v8380_v62 }
 0x661   : > { %v17345_v50 = vadd.f32 %v8379_v54, %v16964_v42  ;;  %v17348_v22 = vadd.f32 %v8381_v26, %v17626_v9 }
 0x662   : > { %v13173_v2 = vpop.f32.mrb[60].mxu1 }
 0x663   : > { %v7055_v33 = vpop.f32.mrb[61].mxu1  ;;  %v8385_v60 = vrot.slane %v13173_v2, 1 }
 0x664   : > { %v13174_v52 = vpop.f32.mrb[62].mxu1  ;;  %v8382_v40 = vrot.slane %v7055_v33, 1 }
 0x665   : > { %v7058_v23 = vpop.f32.mrb[63].mxu1 }
 0x666   : > { %v8383_v41 = vrot.slane %v7058_v23, 1  ;;  %v17628_v23 = vld [vmem:[#allocation10_spill] sm:$0xff] }
 0x668   : > { %v8384_v61 = vsel %vm4512_vm15, %v8382_v40, %v8383_v41  ;;  %v8386_v48 = vsel %vm4512_vm15, %v8383_v41, %v8385_v60 }
 0x669   : > { %v17353_v38 = vadd.f32 %v8384_v61, %v16988_v29  ;;  %v17356_v42 = vadd.f32 %v8386_v48, %v17627_v1 }
 0x66a   : > { %v13177_v3 = vpop.f32.mrb[64].mxu1 }
 0x66b   : > { %v7070_v32 = vpop.f32.mrb[65].mxu1  ;;  %v8390_v7 = vrot.slane %v13177_v3, 1 }
 0x66c   : > { %v13178_v46 = vpop.f32.mrb[66].mxu1  ;;  %v8387_v30 = vrot.slane %v7070_v32, 1 }
 0x66d   : > { %v7073_v43 = vpop.f32.mrb[67].mxu1  ;;  %v17629_v46 = vld [vmem:[#allocation11_spill] sm:$0xff] }
 0x66e   : > { %v8388_v49 = vrot.slane %v7073_v43, 1 }
 0x670   : > { %v8389_v27 = vsel %vm4512_vm15, %v8387_v30, %v8388_v49  ;;  %v8391_v39 = vsel %vm4512_vm15, %v8388_v49, %v8390_v7  ;;  %v17630_v7 = vld [vmem:[#allocation12_spill] sm:$0xff] }
 0x671   : > { %v17361_v58 = vadd.f32 %v8389_v27, %v17012_v0  ;;  %v17364_v29 = vadd.f32 %v8391_v39, %v17015_v21 }
 0x672   : > { %v13181_v63 = vpop.f32.mrb[68].mxu1 }
 0x673   : > { %v7085_v59 = vpop.f32.mrb[69].mxu1  ;;  %v8395_v45 = vrot.slane %v13181_v63, 1 }
 0x674   : > { %v13182_v28 = vpop.f32.mrb[70].mxu1  ;;  %v8392_v10 = vrot.slane %v7085_v59, 1 }
 0x675   : > { %v7088_v24 = vpop.f32.mrb[71].mxu1 }
 0x676   : > { %v8393_v4 = vrot.slane %v7088_v24, 1 }
 0x678   : > { %v8394_v34 = vsel %vm4512_vm15, %v8392_v10, %v8393_v4  ;;  %v8396_v15 = vsel %vm4512_vm15, %v8393_v4, %v8395_v45  ;;  %v17631_v10 = vld [vmem:[#allocation13_spill] sm:$0xff] }
 0x679   : > { %v17369_v47 = vadd.f32 %v8394_v34, %v17033_v8  ;;  %v17372_v0 = vadd.f32 %v8396_v15, %v17036_v11  ;;  %v17632_v34 = vld [vmem:[#allocation14_spill] sm:$0xff] }
 0x67a   : > { %v13185_v62 = vpop.f32.mrb[72].mxu1 }
 0x67b   : > { %v7100_v21 = vpop.f32.mrb[73].mxu1  ;;  %v8400_v54 = vrot.slane %v13185_v62, 1 }
 0x67c   : > { %v13186_v55 = vpop.f32.mrb[74].mxu1  ;;  %v8397_v26 = vrot.slane %v7100_v21, 1 }
 0x67d   : > { %v7103_v36 = vpop.f32.mrb[75].mxu1 }
 0x67e   : > { %v8398_v9 = vrot.slane %v7103_v36, 1 }
 0x680   : > { %v8399_v2 = vsel %vm4512_vm15, %v8397_v26, %v8398_v9  ;;  %v8401_v33 = vsel %vm4512_vm15, %v8398_v9, %v8400_v54 }
 0x681   : > { %v17377_v52 = vadd.f32 %v8399_v2, %v17051_v20  ;;  %v17380_v8 = vadd.f32 %v8401_v33, %v17628_v23 }
 0x682   : > { %v13189_v60 = vpop.f32.mrb[76].mxu1 }
 0x683   : > { %v7115_v11 = vpop.f32.mrb[77].mxu1  ;;  %v8405_v61 = vrot.slane %v13189_v60, 1 }
 0x684   : > { %v13190_v40 = vpop.f32.mrb[78].mxu1  ;;  %v8402_v48 = vrot.slane %v7115_v11, 1 }
 0x685   : > { %v7118_v41 = vpop.f32.mrb[79].mxu1 }
 0x686   : > { %v8403_v1 = vrot.slane %v7118_v41, 1 }
 0x688   : > { %v8404_v3 = vsel %vm4512_vm15, %v8402_v48, %v8403_v1  ;;  %v8406_v32 = vsel %vm4512_vm15, %v8403_v1, %v8405_v61 }
 0x689   : > { %v17385_v43 = vadd.f32 %v8404_v3, %v17629_v46  ;;  %v17388_v20 = vadd.f32 %v8406_v32, %v17630_v7 }
 0x68a   : > { %v13193_v30 = vpop.f32.mrb[80].mxu1 }
 0x68b   : > { %v7130_v49 = vpop.f32.mrb[81].mxu1  ;;  %v8410_v63 = vrot.slane %v13193_v30, 1 }
 0x68c   : > { %v13194_v27 = vpop.f32.mrb[82].mxu1  ;;  %v8407_v59 = vrot.slane %v7130_v49, 1 }
 0x68d   : > { %v7133_v39 = vpop.f32.mrb[83].mxu1 }
 0x68e   : > { %v8408_v28 = vrot.slane %v7133_v39, 1 }
 0x690   : > { %v8409_v24 = vsel %vm4512_vm15, %v8407_v59, %v8408_v28  ;;  %v8411_v45 = vsel %vm4512_vm15, %v8408_v28, %v8410_v63 }
 0x691   : > { %v17393_v4 = vadd.f32 %v8409_v24, %v17631_v10  ;;  %v17396_v15 = vadd.f32 %v8411_v45, %v17632_v34 }
 0x692   : > { %v13197_v62 = vpop.f32.mrb[84].mxu1 }
 0x693   : > { %v7145_v21 = vpop.f32.mrb[85].mxu1  ;;  %v8415_v54 = vrot.slane %v13197_v62, 1 }
 0x694   : > { %v13198_v55 = vpop.f32.mrb[86].mxu1  ;;  %v8412_v26 = vrot.slane %v7145_v21, 1 }
 0x695   : > { %v7148_v36 = vpop.f32.mrb[87].mxu1 }
 0x696   : > { %v8413_v9 = vrot.slane %v7148_v36, 1 }
 0x698   : > { %v8414_v2 = vsel %vm4512_vm15, %v8412_v26, %v8413_v9  ;;  %v8416_v33 = vsel %vm4512_vm15, %v8413_v9, %v8415_v54 }
 0x699   : > { %v17401_v23 = vadd.f32 %v8414_v2, %v17105_v17  ;;  %v17404_v60 = vadd.f32 %v8416_v33, %v17108_v14 }
 0x69a   : > { %v13201_v11 = vpop.f32.mrb[88].mxu1 }
 0x69b   : > { %v7160_v40 = vpop.f32.mrb[89].mxu1  ;;  %v8420_v48 = vrot.slane %v13201_v11, 1 }
 0x69c   : > { %v13202_v41 = vpop.f32.mrb[90].mxu1  ;;  %v8417_v1 = vrot.slane %v7160_v40, 1 }
 0x69d   : > { %v7163_v61 = vpop.f32.mrb[91].mxu1 }
 0x69e   : > { %v8418_v3 = vrot.slane %v7163_v61, 1 }
 0x6a0   : > { %v8419_v32 = vsel %vm4512_vm15, %v8417_v1, %v8418_v3  ;;  %v8421_v46 = vsel %vm4512_vm15, %v8418_v3, %v8420_v48 }
 0x6a1   : > { %v17409_v7 = vadd.f32 %v8419_v32, %v17123_v31  ;;  %v17412_v17 = vadd.f32 %v8421_v46, %v17126_v56 }
 0x6a2   : > { %v13205_v30 = vpop.f32.mrb[92].mxu1 }
 0x6a3   : > { %v7175_v14 = vpop.f32.mrb[93].mxu1  ;;  %v8425_v39 = vrot.slane %v13205_v30, 1 }
 0x6a4   : > { %v13206_v49 = vpop.f32.mrb[94].mxu1  ;;  %v8422_v63 = vrot.slane %v7175_v14, 1 }
 0x6a5   : > { %v7178_v27 = vpop.f32.mrb[95].mxu1 }
 0x6a6   : > { %v8423_v59 = vrot.slane %v7178_v27, 1 }
 0x6a8   : > { %v8424_v28 = vsel %vm4512_vm15, %v8422_v63, %v8423_v59  ;;  %v8426_v24 = vsel %vm4512_vm15, %v8423_v59, %v8425_v39 }
 0x6a9   : > { %v17417_v45 = vadd.f32 %v8424_v28, %v17141_v25  ;;  %v17420_v31 = vadd.f32 %v8426_v24, %v17144_v12  ;;  %v17429_v12 = vld [vmem:[%s17540_s6] ss:$0 sm:$0xff] }
 0x6b2   : > { %v13385_v10 = vpop.f32.mrb[32].mxu0 }
 0x6b3   : > { %v8012_v56 = vpop.f32.mrb[33].mxu0  ;;  %v8542_v21 = vrot.slane %v13385_v10, 2 }
 0x6b4   : > { %v13386_v34 = vpop.f32.mrb[34].mxu0  ;;  %v8539_v55 = vrot.slane %v8012_v56, 2 }
 0x6b5   : > { %v8015_v62 = vpop.f32.mrb[35].mxu0 }
 0x6b6   : > { %v8540_v36 = vrot.slane %v8015_v62, 2 }
 0x6b8   : > { %v8541_v54 = vsel %vm4705_vm7, %v8539_v55, %v8540_v36  ;;  %v8543_v26 = vsel %vm4705_vm7, %v8540_v36, %v8542_v21 }
 0x6b9   : > { %v8651_v9 = vadd.f32 %v8541_v54, %v17274_v13  ;;  %v8652_v2 = vadd.f32 %v8543_v26, %v17277_v51 }
 0x6ba   : > { %v13389_v25 = vpop.f32.mrb[36].mxu0 }
 0x6bb   : > { %v8027_v33 = vpop.f32.mrb[37].mxu0  ;;  %v8547_v41 = vrot.slane %v13389_v25, 2  ;;  %v8690_v1 = vadd.f32 %v17429_v12, %v8651_v9  ;;  %v8691_v3 = vadd.f32 %v17429_v12, %v8652_v2 }
 0x6bc   : > { %v13390_v11 = vpop.f32.mrb[38].mxu0  ;;  %v8544_v61 = vrot.slane %v8027_v33, 2 }
 0x6bd   : > { %v8030_v40 = vpop.f32.mrb[39].mxu0  ;;  %v8754_v49 = vmul.f32 0.2, %v8690_v1  ;;  %v8755_v27 = vmul.f32 0.2, %v8691_v3  ;;  %vm8722_vm15 = vcmp.ge.f32.partialorder %v8690_v1, 0.0 }
 0x6be   : > { %v8545_v48 = vrot.slane %v8030_v40, 2  ;;  %vm8723_vm3 = vcmp.ge.f32.partialorder %v8691_v3, 0.0 }
 0x6bf   : > { %v8787_v62 = vsel %vm8723_vm3, %v8691_v3, %v8755_v27 }
 0x6c0   : > { %v8546_v13 = vsel %vm4705_vm7, %v8544_v61, %v8545_v48  ;;  %v8548_v51 = vsel %vm4705_vm7, %v8545_v48, %v8547_v41 }
 0x6c1   : > { %v8653_v32 = vadd.f32 %v8546_v13, %v17288_v5  ;;  %v8654_v46 = vadd.f32 %v8548_v51, %v17291_v35  ;;  %v8786_v35 = vsel %vm8722_vm15, %v8690_v1, %v8754_v49 }
 0x6c2   : > { %v13393_v30 = vpop.f32.mrb[40].mxu0 }
 0x6c3   : > { %v8042_v14 = vpop.f32.mrb[41].mxu0  ;;  %v8692_v39 = vadd.f32 %v17429_v12, %v8653_v32  ;;  %v8693_v63 = vadd.f32 %v17429_v12, %v8654_v46  ;;  %v8552_v56 = vrot.slane %v13393_v30, 2 }
 0x6c4   : > { %v13394_v59 = vpop.f32.mrb[42].mxu0  ;;  %v8549_v5 = vrot.slane %v8042_v14, 2 }
 0x6c5   : > { %v8045_v28 = vpop.f32.mrb[43].mxu0  ;;  %vm8724_vm4 = vcmp.ge.f32.partialorder %v8692_v39, 0.0  ;;  %vm8725_vm0 = vcmp.ge.f32.partialorder %v8693_v63, 0.0  ;;  %v8756_v24 = vmul.f32 0.2, %v8692_v39 }
 0x6c6   : > { %v8757_v10 = vmul.f32 0.2, %v8693_v63  ;;  %v8550_v34 = vrot.slane %v8045_v28, 2 }
 0x6c7   : > { %v8788_v21 = vsel %vm8724_vm4, %v8692_v39, %v8756_v24 }
 0x6c8   : > { %v8789_v55 = vsel %vm8725_vm0, %v8693_v63, %v8757_v10  ;;  %v8818_v36 = vadd.f32 %v8788_v21, %v8786_v35  ;;  %v8551_v26 = vsel %vm4705_vm7, %v8549_v5, %v8550_v34  ;;  %v8553_v9 = vsel %vm4705_vm7, %v8550_v34, %v8552_v56 }
 0x6c9   : > { %v8833_v54 = vadd.f32 %v8789_v55, %v8787_v62  ;;  %v8655_v2 = vadd.f32 %v8551_v26, %v17302_v19  ;;  %v8656_v25 = vadd.f32 %v8553_v9, %v17305_v57 }
 0x6ca   : > { %v13397_v33 = vpop.f32.mrb[44].mxu0 }
 0x6cb   : > { %v8057_v11 = vpop.f32.mrb[45].mxu0  ;;  %v8694_v40 = vadd.f32 %v17429_v12, %v8655_v2  ;;  %v8695_v41 = vadd.f32 %v17429_v12, %v8656_v25  ;;  %v8557_v13 = vrot.slane %v13397_v33, 2 }
 0x6cc   : > { %v13398_v61 = vpop.f32.mrb[46].mxu0  ;;  %v8554_v51 = vrot.slane %v8057_v11, 2 }
 0x6cd   : > { %v8060_v48 = vpop.f32.mrb[47].mxu0  ;;  %vm8726_vm1 = vcmp.ge.f32.partialorder %v8694_v40, 0.0  ;;  %vm8727_vm2 = vcmp.ge.f32.partialorder %v8695_v41, 0.0  ;;  %v8758_v1 = vmul.f32 0.2, %v8694_v40 }
 0x6ce   : > { %v8759_v3 = vmul.f32 0.2, %v8695_v41  ;;  %v8555_v32 = vrot.slane %v8060_v48, 2 }
 0x6cf   : > { %v8790_v46 = vsel %vm8726_vm1, %v8694_v40, %v8758_v1 }
 0x6d0   : > { %v8791_v30 = vsel %vm8727_vm2, %v8695_v41, %v8759_v3  ;;  %v8819_v19 = vadd.f32 %v8818_v36, %v8790_v46  ;;  %v8556_v57 = vsel %vm4705_vm7, %v8554_v51, %v8555_v32  ;;  %v8558_v49 = vsel %vm4705_vm7, %v8555_v32, %v8557_v13 }
 0x6d1   : > { %v8834_v14 = vadd.f32 %v8833_v54, %v8791_v30  ;;  %v8657_v27 = vadd.f32 %v8556_v57, %v17316_v18  ;;  %v8658_v39 = vadd.f32 %v8558_v49, %v17319_v37 }
 0x6d2   : > { %v13401_v63 = vpop.f32.mrb[48].mxu0 }
 0x6d3   : > { %v8072_v59 = vpop.f32.mrb[49].mxu0  ;;  %v8696_v28 = vadd.f32 %v17429_v12, %v8657_v27  ;;  %v8697_v24 = vadd.f32 %v17429_v12, %v8658_v39  ;;  %v8562_v35 = vrot.slane %v13401_v63, 2 }
 0x6d4   : > { %v13402_v10 = vpop.f32.mrb[50].mxu0  ;;  %v8559_v62 = vrot.slane %v8072_v59, 2 }
 0x6d5   : > { %v8075_v56 = vpop.f32.mrb[51].mxu0  ;;  %vm8728_vm6 = vcmp.ge.f32.partialorder %v8696_v28, 0.0  ;;  %vm8729_vm5 = vcmp.ge.f32.partialorder %v8697_v24, 0.0  ;;  %v8760_v5 = vmul.f32 0.2, %v8696_v28 }
 0x6d6   : > { %v8761_v34 = vmul.f32 0.2, %v8697_v24  ;;  %v8560_v21 = vrot.slane %v8075_v56, 2 }
 0x6d7   : > { %v8792_v55 = vsel %vm8728_vm6, %v8696_v28, %v8760_v5 }
 0x6d8   : > { %v8793_v36 = vsel %vm8729_vm5, %v8697_v24, %v8761_v34  ;;  %v8820_v18 = vadd.f32 %v8819_v19, %v8792_v55  ;;  %v8561_v37 = vsel %vm4705_vm7, %v8559_v62, %v8560_v21  ;;  %v8563_v26 = vsel %vm4705_vm7, %v8560_v21, %v8562_v35 }
 0x6d9   : > { %v8835_v54 = vadd.f32 %v8834_v14, %v8793_v36  ;;  %v8659_v9 = vadd.f32 %v8561_v37, %v17328_v53  ;;  %v8660_v2 = vadd.f32 %v8563_v26, %v17331_v44 }
 0x6da   : > { %v13405_v25 = vpop.f32.mrb[52].mxu0 }
 0x6db   : > { %v8087_v33 = vpop.f32.mrb[53].mxu0  ;;  %v8698_v11 = vadd.f32 %v17429_v12, %v8659_v9  ;;  %v8699_v40 = vadd.f32 %v17429_v12, %v8660_v2  ;;  %v8567_v3 = vrot.slane %v13405_v25, 2 }
 0x6dc   : > { %v13406_v41 = vpop.f32.mrb[54].mxu0  ;;  %v8564_v13 = vrot.slane %v8087_v33, 2 }
 0x6dd   : > { %v8090_v61 = vpop.f32.mrb[55].mxu0  ;;  %vm8730_vm9 = vcmp.ge.f32.partialorder %v8698_v11, 0.0  ;;  %vm8731_vm10 = vcmp.ge.f32.partialorder %v8699_v40, 0.0  ;;  %v8762_v48 = vmul.f32 0.2, %v8698_v11 }
 0x6de   : > { %v8763_v1 = vmul.f32 0.2, %v8699_v40  ;;  %v8565_v51 = vrot.slane %v8090_v61, 2 }
 0x6df   : > { %v8794_v32 = vsel %vm8730_vm9, %v8698_v11, %v8762_v48 }
 0x6e0   : > { %v8795_v46 = vsel %vm8731_vm10, %v8699_v40, %v8763_v1  ;;  %v8821_v53 = vadd.f32 %v8820_v18, %v8794_v32  ;;  %v8566_v44 = vsel %vm4705_vm7, %v8564_v13, %v8565_v51  ;;  %v8568_v19 = vsel %vm4705_vm7, %v8565_v51, %v8567_v3 }
 0x6e1   : > { %v8836_v30 = vadd.f32 %v8835_v54, %v8795_v46  ;;  %v8661_v14 = vadd.f32 %v8566_v44, %v17337_v16  ;;  %v8662_v57 = vadd.f32 %v8568_v19, %v17340_v6 }
 0x6e2   : > { %v13409_v49 = vpop.f32.mrb[56].mxu0 }
 0x6e3   : > { %v8102_v27 = vpop.f32.mrb[57].mxu0  ;;  %v8700_v39 = vadd.f32 %v17429_v12, %v8661_v14  ;;  %v8701_v63 = vadd.f32 %v17429_v12, %v8662_v57  ;;  %v8572_v56 = vrot.slane %v13409_v49, 2 }
 0x6e4   : > { %v13410_v59 = vpop.f32.mrb[58].mxu0  ;;  %v8569_v5 = vrot.slane %v8102_v27, 2 }
 0x6e5   : > { %v8105_v28 = vpop.f32.mrb[59].mxu0  ;;  %vm8732_vm11 = vcmp.ge.f32.partialorder %v8700_v39, 0.0  ;;  %vm8733_vm12 = vcmp.ge.f32.partialorder %v8701_v63, 0.0  ;;  %v8764_v24 = vmul.f32 0.2, %v8700_v39 }
 0x6e6   : > { %v8765_v10 = vmul.f32 0.2, %v8701_v63  ;;  %v8570_v34 = vrot.slane %v8105_v28, 2 }
 0x6e7   : > { %v8796_v35 = vsel %vm8732_vm11, %v8700_v39, %v8764_v24 }
 0x6e8   : > { %v8797_v62 = vsel %vm8733_vm12, %v8701_v63, %v8765_v10  ;;  %v8822_v16 = vadd.f32 %v8821_v53, %v8796_v35  ;;  %v8571_v6 = vsel %vm4705_vm7, %v8569_v5, %v8570_v34  ;;  %v8573_v55 = vsel %vm4705_vm7, %v8570_v34, %v8572_v56 }
 0x6e9   : > { %v8837_v21 = vadd.f32 %v8836_v30, %v8797_v62  ;;  %v8663_v36 = vadd.f32 %v8571_v6, %v17345_v50  ;;  %v8664_v18 = vadd.f32 %v8573_v55, %v17348_v22 }
 0x6ea   : > { %v13413_v54 = vpop.f32.mrb[60].mxu0 }
 0x6eb   : > { %v8117_v37 = vpop.f32.mrb[61].mxu0  ;;  %v8702_v26 = vadd.f32 %v17429_v12, %v8663_v36  ;;  %v8703_v9 = vadd.f32 %v17429_v12, %v8664_v18  ;;  %v8577_v40 = vrot.slane %v13413_v54, 2 }
 0x6ec   : > { %v13414_v2 = vpop.f32.mrb[62].mxu0  ;;  %v8574_v41 = vrot.slane %v8117_v37, 2 }
 0x6ed   : > { %v8120_v25 = vpop.f32.mrb[63].mxu0  ;;  %vm8734_vm13 = vcmp.ge.f32.partialorder %v8702_v26, 0.0  ;;  %vm8735_vm14 = vcmp.ge.f32.partialorder %v8703_v9, 0.0  ;;  %v8766_v33 = vmul.f32 0.2, %v8702_v26 }
 0x6ee   : > { %v8767_v11 = vmul.f32 0.2, %v8703_v9  ;;  %v8575_v61 = vrot.slane %v8120_v25, 2 }
 0x6ef   : > { %v8798_v48 = vsel %vm8734_vm13, %v8702_v26, %v8766_v33 }
 0x6f0   : > { %v8799_v1 = vsel %vm8735_vm14, %v8703_v9, %v8767_v11  ;;  %v8823_v50 = vadd.f32 %v8822_v16, %v8798_v48  ;;  %v8576_v22 = vsel %vm4705_vm7, %v8574_v41, %v8575_v61  ;;  %v8578_v13 = vsel %vm4705_vm7, %v8575_v61, %v8577_v40 }
 0x6f1   : > { %v8838_v3 = vadd.f32 %v8837_v21, %v8799_v1  ;;  %v8665_v51 = vadd.f32 %v8576_v22, %v17353_v38  ;;  %v8666_v32 = vadd.f32 %v8578_v13, %v17356_v42 }
 0x6f2   : > { %v13417_v46 = vpop.f32.mrb[64].mxu0 }
 0x6f3   : > { %v8132_v53 = vpop.f32.mrb[65].mxu0  ;;  %v8704_v30 = vadd.f32 %v17429_v12, %v8665_v51  ;;  %v8705_v44 = vadd.f32 %v17429_v12, %v8666_v32  ;;  %v8582_v27 = vrot.slane %v13417_v46, 2 }
 0x6f4   : > { %v13418_v19 = vpop.f32.mrb[66].mxu0  ;;  %v8579_v39 = vrot.slane %v8132_v53, 2 }
 0x6f5   : > { %v8135_v14 = vpop.f32.mrb[67].mxu0  ;;  %vm8736_vm15 = vcmp.ge.f32.partialorder %v8704_v30, 0.0  ;;  %vm8737_vm3 = vcmp.ge.f32.partialorder %v8705_v44, 0.0  ;;  %v8768_v57 = vmul.f32 0.2, %v8704_v30 }
 0x6f6   : > { %v8769_v49 = vmul.f32 0.2, %v8705_v44  ;;  %v8580_v63 = vrot.slane %v8135_v14, 2 }
 0x6f7   : > { %v8800_v59 = vsel %vm8736_vm15, %v8704_v30, %v8768_v57 }
 0x6f8   : > { %v8801_v28 = vsel %vm8737_vm3, %v8705_v44, %v8769_v49  ;;  %v8824_v38 = vadd.f32 %v8823_v50, %v8800_v59  ;;  %v8581_v42 = vsel %vm4705_vm7, %v8579_v39, %v8580_v63  ;;  %v8583_v10 = vsel %vm4705_vm7, %v8580_v63, %v8582_v27 }
 0x6f9   : > { %v8839_v24 = vadd.f32 %v8838_v3, %v8801_v28  ;;  %v8667_v56 = vadd.f32 %v8581_v42, %v17361_v58  ;;  %v8668_v5 = vadd.f32 %v8583_v10, %v17364_v29 }
 0x6fa   : > { %v13421_v34 = vpop.f32.mrb[68].mxu0 }
 0x6fb   : > { %v8147_v35 = vpop.f32.mrb[69].mxu0  ;;  %v8706_v62 = vadd.f32 %v17429_v12, %v8667_v56  ;;  %v8707_v16 = vadd.f32 %v17429_v12, %v8668_v5  ;;  %v8587_v18 = vrot.slane %v13421_v34, 2 }
 0x6fc   : > { %v13422_v21 = vpop.f32.mrb[70].mxu0  ;;  %v8584_v54 = vrot.slane %v8147_v35, 2 }
 0x6fd   : > { %v8150_v6 = vpop.f32.mrb[71].mxu0  ;;  %vm8738_vm4 = vcmp.ge.f32.partialorder %v8706_v62, 0.0  ;;  %vm8739_vm0 = vcmp.ge.f32.partialorder %v8707_v16, 0.0  ;;  %v8770_v55 = vmul.f32 0.2, %v8706_v62 }
 0x6fe   : > { %v8771_v36 = vmul.f32 0.2, %v8707_v16  ;;  %v8585_v37 = vrot.slane %v8150_v6, 2 }
 0x6ff   : > { %v8802_v26 = vsel %vm8738_vm4, %v8706_v62, %v8770_v55 }
 0x700   : > { %v8803_v9 = vsel %vm8739_vm0, %v8707_v16, %v8771_v36  ;;  %v8825_v58 = vadd.f32 %v8824_v38, %v8802_v26  ;;  %v8586_v29 = vsel %vm4705_vm7, %v8584_v54, %v8585_v37  ;;  %v8588_v25 = vsel %vm4705_vm7, %v8585_v37, %v8587_v18 }
 0x701   : > { %v8840_v2 = vadd.f32 %v8839_v24, %v8803_v9  ;;  %v8669_v33 = vadd.f32 %v8586_v29, %v17369_v47  ;;  %v8670_v11 = vadd.f32 %v8588_v25, %v17372_v0 }
 0x702   : > { %v13425_v40 = vpop.f32.mrb[72].mxu0 }
 0x703   : > { %v8162_v41 = vpop.f32.mrb[73].mxu0  ;;  %v8708_v61 = vadd.f32 %v17429_v12, %v8669_v33  ;;  %v8709_v48 = vadd.f32 %v17429_v12, %v8670_v11  ;;  %v8592_v13 = vrot.slane %v13425_v40, 2 }
 0x704   : > { %v13426_v1 = vpop.f32.mrb[74].mxu0  ;;  %v8589_v51 = vrot.slane %v8162_v41, 2 }
 0x705   : > { %v8165_v50 = vpop.f32.mrb[75].mxu0  ;;  %vm8740_vm1 = vcmp.ge.f32.partialorder %v8708_v61, 0.0  ;;  %vm8741_vm2 = vcmp.ge.f32.partialorder %v8709_v48, 0.0  ;;  %v8772_v3 = vmul.f32 0.2, %v8708_v61 }
 0x706   : > { %v8773_v22 = vmul.f32 0.2, %v8709_v48  ;;  %v8590_v32 = vrot.slane %v8165_v50, 2 }
 0x707   : > { %v8804_v46 = vsel %vm8740_vm1, %v8708_v61, %v8772_v3 }
 0x708   : > { %v8805_v53 = vsel %vm8741_vm2, %v8709_v48, %v8773_v22  ;;  %v8826_v47 = vadd.f32 %v8825_v58, %v8804_v46  ;;  %v8591_v0 = vsel %vm4705_vm7, %v8589_v51, %v8590_v32  ;;  %v8593_v44 = vsel %vm4705_vm7, %v8590_v32, %v8592_v13 }
 0x709   : > { %v8841_v30 = vadd.f32 %v8840_v2, %v8805_v53  ;;  %v8671_v19 = vadd.f32 %v8591_v0, %v17377_v52  ;;  %v8672_v14 = vadd.f32 %v8593_v44, %v17380_v8 }
 0x70a   : > { %v13429_v57 = vpop.f32.mrb[76].mxu0 }
 0x70b   : > { %v8177_v49 = vpop.f32.mrb[77].mxu0  ;;  %v8710_v27 = vadd.f32 %v17429_v12, %v8671_v19  ;;  %v8711_v39 = vadd.f32 %v17429_v12, %v8672_v14  ;;  %v8597_v24 = vrot.slane %v13429_v57, 2 }
 0x70c   : > { %v13430_v63 = vpop.f32.mrb[78].mxu0  ;;  %v8594_v42 = vrot.slane %v8177_v49, 2 }
 0x70d   : > { %v8180_v59 = vpop.f32.mrb[79].mxu0  ;;  %vm8742_vm6 = vcmp.ge.f32.partialorder %v8710_v27, 0.0  ;;  %vm8743_vm5 = vcmp.ge.f32.partialorder %v8711_v39, 0.0  ;;  %v8774_v28 = vmul.f32 0.2, %v8710_v27 }
 0x70e   : > { %v8775_v38 = vmul.f32 0.2, %v8711_v39  ;;  %v8595_v10 = vrot.slane %v8180_v59, 2 }
 0x70f   : > { %v8806_v56 = vsel %vm8742_vm6, %v8710_v27, %v8774_v28 }
 0x710   : > { %v8807_v5 = vsel %vm8743_vm5, %v8711_v39, %v8775_v38  ;;  %v8827_v52 = vadd.f32 %v8826_v47, %v8806_v56  ;;  %v8596_v8 = vsel %vm4705_vm7, %v8594_v42, %v8595_v10  ;;  %v8598_v35 = vsel %vm4705_vm7, %v8595_v10, %v8597_v24 }
 0x711   : > { %v8842_v34 = vadd.f32 %v8841_v30, %v8807_v5  ;;  %v8673_v62 = vadd.f32 %v8596_v8, %v17385_v43  ;;  %v8674_v16 = vadd.f32 %v8598_v35, %v17388_v20 }
 0x712   : > { %v13433_v21 = vpop.f32.mrb[80].mxu0 }
 0x713   : > { %v8192_v6 = vpop.f32.mrb[81].mxu0  ;;  %v8712_v55 = vadd.f32 %v17429_v12, %v8673_v62  ;;  %v8713_v36 = vadd.f32 %v17429_v12, %v8674_v16  ;;  %v8602_v9 = vrot.slane %v13433_v21, 2 }
 0x714   : > { %v13434_v18 = vpop.f32.mrb[82].mxu0  ;;  %v8599_v58 = vrot.slane %v8192_v6, 2 }
 0x715   : > { %v8195_v54 = vpop.f32.mrb[83].mxu0  ;;  %vm8744_vm9 = vcmp.ge.f32.partialorder %v8712_v55, 0.0  ;;  %vm8745_vm10 = vcmp.ge.f32.partialorder %v8713_v36, 0.0  ;;  %v8776_v37 = vmul.f32 0.2, %v8712_v55 }
 0x716   : > { %v8777_v26 = vmul.f32 0.2, %v8713_v36  ;;  %v8600_v2 = vrot.slane %v8195_v54, 2 }
 0x717   : > { %v8808_v29 = vsel %vm8744_vm9, %v8712_v55, %v8776_v37 }
 0x718   : > { %v8809_v25 = vsel %vm8745_vm10, %v8713_v36, %v8777_v26  ;;  %v8828_v43 = vadd.f32 %v8827_v52, %v8808_v29  ;;  %v8601_v20 = vsel %vm4705_vm7, %v8599_v58, %v8600_v2  ;;  %v8603_v11 = vsel %vm4705_vm7, %v8600_v2, %v8602_v9 }
 0x719   : > { %v8843_v33 = vadd.f32 %v8842_v34, %v8809_v25  ;;  %v8675_v40 = vadd.f32 %v8601_v20, %v17393_v4  ;;  %v8676_v41 = vadd.f32 %v8603_v11, %v17396_v15 }
 0x71a   : > { %v13437_v61 = vpop.f32.mrb[84].mxu0 }
 0x71b   : > { %v8207_v48 = vpop.f32.mrb[85].mxu0  ;;  %v8714_v1 = vadd.f32 %v17429_v12, %v8675_v40  ;;  %v8715_v50 = vadd.f32 %v17429_v12, %v8676_v41  ;;  %v8607_v32 = vrot.slane %v13437_v61, 2 }
 0x71c   : > { %v13438_v3 = vpop.f32.mrb[86].mxu0  ;;  %v8604_v46 = vrot.slane %v8207_v48, 2 }
 0x71d   : > { %v8210_v22 = vpop.f32.mrb[87].mxu0  ;;  %vm8746_vm11 = vcmp.ge.f32.partialorder %v8714_v1, 0.0  ;;  %vm8747_vm12 = vcmp.ge.f32.partialorder %v8715_v50, 0.0  ;;  %v8778_v13 = vmul.f32 0.2, %v8714_v1 }
 0x71e   : > { %v8779_v51 = vmul.f32 0.2, %v8715_v50  ;;  %v8605_v53 = vrot.slane %v8210_v22, 2 }
 0x71f   : > { %v8810_v47 = vsel %vm8746_vm11, %v8714_v1, %v8778_v13 }
 0x720   : > { %v8811_v30 = vsel %vm8747_vm12, %v8715_v50, %v8779_v51  ;;  %v8829_v4 = vadd.f32 %v8828_v43, %v8810_v47  ;;  %v8606_v15 = vsel %vm4705_vm7, %v8604_v46, %v8605_v53  ;;  %v8608_v44 = vsel %vm4705_vm7, %v8605_v53, %v8607_v32 }
 0x721   : > { %v8844_v0 = vadd.f32 %v8843_v33, %v8811_v30  ;;  %v8677_v19 = vadd.f32 %v8606_v15, %v17401_v23  ;;  %v8678_v14 = vadd.f32 %v8608_v44, %v17404_v60  ;;  %v8861_v30 = vld [vmem:[#allocation2] sm:$0x1] }
 0x722   : > { %v13441_v57 = vpop.f32.mrb[88].mxu0 }
 0x723   : > { %v8222_v49 = vpop.f32.mrb[89].mxu0  ;;  %v8716_v27 = vadd.f32 %v17429_v12, %v8677_v19  ;;  %v8717_v39 = vadd.f32 %v17429_v12, %v8678_v14  ;;  %v8612_v24 = vrot.slane %v13441_v57, 2 }
 0x724   : > { %v13442_v63 = vpop.f32.mrb[90].mxu0  ;;  %v8609_v42 = vrot.slane %v8222_v49, 2 }
 0x725   : > { %v8225_v59 = vpop.f32.mrb[91].mxu0  ;;  %vm8748_vm13 = vcmp.ge.f32.partialorder %v8716_v27, 0.0  ;;  %vm8749_vm14 = vcmp.ge.f32.partialorder %v8717_v39, 0.0  ;;  %v8780_v28 = vmul.f32 0.2, %v8716_v27 }
 0x726   : > { %v8781_v38 = vmul.f32 0.2, %v8717_v39  ;;  %v8610_v10 = vrot.slane %v8225_v59, 2 }
 0x727   : > { %v8812_v56 = vsel %vm8748_vm13, %v8716_v27, %v8780_v28 }
 0x728   : > { %v8813_v5 = vsel %vm8749_vm14, %v8717_v39, %v8781_v38  ;;  %v8830_v23 = vadd.f32 %v8829_v4, %v8812_v56  ;;  %v8611_v60 = vsel %vm4705_vm7, %v8609_v42, %v8610_v10  ;;  %v8613_v34 = vsel %vm4705_vm7, %v8610_v10, %v8612_v24 }
 0x729   : > { %v8845_v52 = vadd.f32 %v8844_v0, %v8813_v5  ;;  %v8679_v8 = vadd.f32 %v8611_v60, %v17409_v7  ;;  %v8680_v35 = vadd.f32 %v8613_v34, %v17412_v17 }
 0x72a   : > { %v13445_v62 = vpop.f32.mrb[92].mxu0 }
 0x72b   : > { %v8237_v16 = vpop.f32.mrb[93].mxu0  ;;  %v8718_v21 = vadd.f32 %v17429_v12, %v8679_v8  ;;  %v8719_v6 = vadd.f32 %v17429_v12, %v8680_v35  ;;  %v8617_v37 = vrot.slane %v13445_v62, 2 }
 0x72c   : > { %v13446_v55 = vpop.f32.mrb[94].mxu0  ;;  %v8614_v26 = vrot.slane %v8237_v16, 2 }
 0x72d   : > { %v8240_v36 = vpop.f32.mrb[95].mxu0  ;;  %vm8750_vm15 = vcmp.ge.f32.partialorder %v8718_v21, 0.0  ;;  %vm8751_vm3 = vcmp.ge.f32.partialorder %v8719_v6, 0.0  ;;  %v8782_v18 = vmul.f32 0.2, %v8718_v21 }
 0x72e   : > { %v8783_v54 = vmul.f32 0.2, %v8719_v6  ;;  %v8615_v9 = vrot.slane %v8240_v36, 2 }
 0x72f   : > { %v8814_v58 = vsel %vm8750_vm15, %v8718_v21, %v8782_v18 }
 0x730   : > { %v8815_v2 = vsel %vm8751_vm3, %v8719_v6, %v8783_v54  ;;  %v8831_v7 = vadd.f32 %v8830_v23, %v8814_v58  ;;  %v8616_v17 = vsel %vm4705_vm7, %v8614_v26, %v8615_v9  ;;  %v8618_v25 = vsel %vm4705_vm7, %v8615_v9, %v8617_v37 }
 0x731   : > { %v8846_v29 = vadd.f32 %v8845_v52, %v8815_v2  ;;  %v8681_v43 = vadd.f32 %v8616_v17, %v17417_v45  ;;  %v8682_v33 = vadd.f32 %v8618_v25, %v17420_v31  ;;  %v8855_v31 = vld [vmem:[%s17541_s7] sm:$0x1]  ;;  %vm8863_vm7 = vcmask 0  }
 0x733   : > { %v8720_v20 = vadd.f32 %v17429_v12, %v8681_v43  ;;  %v8721_v11 = vadd.f32 %v17429_v12, %v8682_v33 }
 0x735   : > { %vm8752_vm4 = vcmp.ge.f32.partialorder %v8720_v20, 0.0  ;;  %vm8753_vm0 = vcmp.ge.f32.partialorder %v8721_v11, 0.0  ;;  %v8784_v40 = vmul.f32 0.2, %v8720_v20  ;;  %v8785_v41 = vmul.f32 0.2, %v8721_v11 }
 0x737   : > { %v8816_v61 = vsel %vm8752_vm4, %v8720_v20, %v8784_v40  ;;  %v8817_v48 = vsel %vm8753_vm0, %v8721_v11, %v8785_v41 }
 0x738   : > { %v8832_v1 = vadd.f32 %v8831_v7, %v8816_v61  ;;  %v8847_v50 = vadd.f32 %v8846_v29, %v8817_v48 }
 0x73a   : > { %v8848_v3 = vadd.f32 %v8847_v50, %v8832_v1 }
 0x73c   : > { %v8849_v22 = vrot.slane %v8848_v3, 4 }
 0x73e   : > { %v8850_v13 = vadd.f32 %v8849_v22, %v8848_v3 }
 0x740   : > { %v8851_v51 = vrot.slane %v8850_v13, 2 }
 0x742   : > { %v8852_v45 = vadd.f32 %v8851_v51, %v8850_v13 }
 0x744   : > { %v8853_v32 = vrot.slane %v8852_v45, 1 }
 0x746   : > { %v8854_v12 = vadd.f32 %v8853_v32, %v8852_v45 }
 0x748   : > { %v8856_v46 = vmul.f32 %v8855_v31, %v8854_v12 }
 0x74a   : > { %v8857_v53 = vsel %vm5017_vm8, %v8856_v46, 0.0 }
 0x74b   : > { %8858 = vadd.xlane.f32.xlu0 %v8857_v53 }
 0x7d8   : > { %v8859_v47 = vpop.xlane.xlu0 %8858 }
 0x7d9   : > { %v8860_v4 = vmul.f32 0.00390625, %v8859_v47 }
 0x7db   : > { %v8862_v0 = vadd.f32 %v8861_v30, %v8860_v4 }
 0x7dd   : > { %8864 = vst.msk [vmem:[%s330_s18] sm:$0x1] %vm8863_vm7, %v8862_v0 }
 0x7de PF: > { %s21_s11 = sadd.s32 1, %s14158_s11  }
 0x7df   : > { %p18_p4 = scmp.ge.s32.totalorder %s21_s11, 4  }
 0x7e1   :  { %20 = sbr.rel (!%p18_p4) target bundleno = 3 (0x3), region = 102 }

</bundles_post_ra>
